<compile_context>
chip_gen: v7x
topology: tpu7x:2x2x1
jax: 0.10.0
libtpu: 0.0.40
codegen_flags: <defaults>
</compile_context>

<pallas_src>
import functools

import numpy as np
import jax
import jax.numpy as jnp
from jax.experimental import pallas as pl
from jax.experimental.pallas import tpu as pltpu

W_HID = 16                      # MLP hidden width (module default W=16)
RGB_LATENT = 15                 # rgb_latent_dim default
MULTIRES = 6
TRIG_DIM = 3 * 2 * MULTIRES     # 36 sin/cos features per row
EMB_DIM = 3 + TRIG_DIM          # 39 (include_inputs=True)
DIR_IN = RGB_LATENT + EMB_DIM   # 54

GROUP = 8                       # rows packed into the lane axis per "super row"
HID_P = GROUP * W_HID           # 128  -> fully lane-dense hidden activations
OUT_P = GROUP * 4               # 32   -> packed [density, rgb] output lanes
TRIG_P = GROUP * TRIG_DIM       # 288
VHL_P = 2 * 3 * GROUP           # 48   -> [v_hi(24) | v_lo(24)] packed viewdirs


def _round_up(x, m):
    return (x + m - 1) // m * m


# -------------------- directional encoder (reference / pack helpers) --------
def embed_dirs(v):
    """NeRF embedding: [v, sin(2^0 v), cos(2^0 v), ..., sin(2^5 v), cos(2^5 v)]."""
    outs = [v]
    for i in range(MULTIRES):
        f = 2.0 ** i
        outs.append(jnp.sin(v * f))
        outs.append(jnp.cos(v * f))
    return jnp.concatenate(outs, axis=-1)   # [N, 39]


def _make_freq_basis():
    """A (3,36), phase (1,36) such that sin(v @ A + phase) == trig part of embed_dirs(v)."""
    A = np.zeros((3, TRIG_DIM), np.float32)
    phase = np.zeros((1, TRIG_DIM), np.float32)
    for i in range(MULTIRES):
        for trig in range(2):               # 0 -> sin, 1 -> cos
            for c in range(3):
                col = (2 * i + trig) * 3 + c
                A[c, col] = 2.0 ** i
                phase[0, col] = 0.0 if trig == 0 else np.pi / 2.0
    return A, phase


# -------------------- Pallas kernel: embedding + both MLPs fused ------------
def decoder_kernel(lat_ref, vhl_ref, w_ref, a_ref, f_ref, out_ref, *,
                   lat_cols, offw, offf):
    f32, bf16 = jnp.float32, jnp.bfloat16

    def w(name, rows, cols=HID_P):          # static slices of the bf16 weight blob
        o = offw[name]
        return w_ref[o:o + rows, 0:cols]

    def b(name, cols):                      # static slices of the f32 bias/phase blob
        o = offf[name]
        return f_ref[o:o + 1, 0:cols]

    relu = lambda t: jnp.maximum(t, 0.0)
    dot = lambda a, m: jnp.dot(a, m, preferred_element_type=f32)

    x = lat_ref[...]                        # (tp, 8*L)  bf16, 8 rows lane-packed per group
    vhl = vhl_ref[...]                      # (tp, 48)   bf16 [v_hi | v_lo]
    A = a_ref[...]                          # (48, 288)  bf16 stacked power-of-two basis

    # ---- positional MLP (block-diagonal weights -> 128-lane-dense activations) ----
    h = relu(dot(x, w("pw0", lat_cols)) + b("pb0", HID_P))
    h1 = relu(dot(h.astype(bf16), w("pw1", HID_P)) + b("pb1", HID_P))
    h1b = h1.astype(bf16)
    # density at lane 16g+0 (zero-weighted downstream), rgb_latent at lanes 16g+1..15
    pos = dot(h1b, w("pw2", HID_P)) + b("pb2", HID_P)

    # ---- directional embedding, fully in-kernel ----
    # angles = f32(v) * 2^i + phase, computed as (v_hi + v_lo) @ A on the MXU.
    # A holds exact powers of two (exact in bf16), so the hi/lo split keeps ~f32
    # accuracy even at the 2^5 frequency.  cos(x) = sin(x + pi/2) merges sin/cos.
    ang = dot(vhl, A) + b("phase", TRIG_P)
    trig = jnp.sin(ang)                                   # (tp, 288)  EUP

    # ---- directional MLP; layer 0 over [pos | v | trig], density lanes hit zero rows ----
    g = relu(dot(pos.astype(bf16), w("dw0_pos", HID_P))
             + dot(vhl, w("dw0_v", VHL_P))                # hi+lo merged in one matmul
             + dot(trig.astype(bf16), w("dw0_trig", TRIG_P))
             + b("db0", HID_P))
    g = relu(dot(g.astype(bf16), w("dw1", HID_P)) + b("db1", HID_P))
    g = relu(dot(g.astype(bf16), w("dw2", HID_P)) + b("db2", HID_P))

    # ---- fused [density | rgb] epilogue straight into the packed (tp, 32) output ----
    out = (dot(h1b, w("wout_d", HID_P, OUT_P))            # pw2 density column -> lane 4g
           + dot(g.astype(bf16), w("wout_rgb", HID_P, OUT_P))   # dw3 -> lanes 4g+1..3
           + b("bout", OUT_P))
    out_ref[...] = out.astype(out_ref.dtype)


# -------------------- parameter init (deterministic, synthetic) -------------
def init_params(key, latent_dim):
    """Weights stored transposed to [in, out] so the math is x @ W + b."""
    shapes = [
        # positional MLP
        ("pw0", (latent_dim, W_HID)), ("pb0", (1, W_HID)),
        ("pw1", (W_HID, W_HID)),      ("pb1", (1, W_HID)),
        ("pw2", (W_HID, 1 + RGB_LATENT)), ("pb2", (1, 1 + RGB_LATENT)),
        # directional MLP
        ("dw0", (DIR_IN, W_HID)), ("db0", (1, W_HID)),
        ("dw1", (W_HID, W_HID)),  ("db1", (1, W_HID)),
        ("dw2", (W_HID, W_HID)),  ("db2", (1, W_HID)),
        ("dw3", (W_HID, 3)),      ("db3", (1, 3)),
    ]
    params = {}
    for name, shp in shapes:
        key, sub = jax.random.split(key)
        fan_in = shp[0] if name.startswith(("pw", "dw")) else shp[1]
        scale = 1.0 / jnp.sqrt(jnp.float32(fan_in))
        params[name] = jax.random.uniform(sub, shp, jnp.float32, -1.0, 1.0) * scale
    return params


# -------------------- pack params into three resident blobs ------------------
def _block_diag(w, g=GROUP):
    k, n = w.shape
    out = np.zeros((g * k, g * n), np.float32)
    for i in range(g):
        out[i * k:(i + 1) * k, i * n:(i + 1) * n] = w
    return out


def pack_params(params):
    p = {k: np.asarray(v, np.float32) for k, v in params.items()}
    A, phase = _make_freq_basis()

    dw0 = p["dw0"]
    # density lane of `pos` (lane 16g+0) is skipped by a zero weight row.
    dw0_pos = np.concatenate([np.zeros((1, W_HID), np.float32), dw0[:RGB_LATENT]], 0)
    dw0_v = _block_diag(dw0[RGB_LATENT:RGB_LATENT + 3])          # (24, 128)
    dw0_trig = _block_diag(dw0[RGB_LATENT + 3:])                 # (288, 128)

    # fused output projections: per group member g, out lane 4g -> density, 4g+1..3 -> rgb
    wout_d = np.zeros((HID_P, OUT_P), np.float32)
    wout_rgb = np.zeros((HID_P, OUT_P), np.float32)
    bout = np.zeros((1, OUT_P), np.float32)
    for g in range(GROUP):
        wout_d[g * W_HID:(g + 1) * W_HID, g * 4] = p["pw2"][:, 0]
        wout_rgb[g * W_HID:(g + 1) * W_HID, g * 4 + 1:g * 4 + 4] = p["dw3"]
        bout[0, g * 4] = p["pb2"][0, 0]
        bout[0, g * 4 + 1:g * 4 + 4] = p["db3"][0]

    w_entries = [
        ("pw0", _block_diag(p["pw0"])),                          # (8L, 128)
        ("pw1", _block_diag(p["pw1"])),
        ("pw2", _block_diag(p["pw2"])),
        ("dw0_pos", _block_diag(dw0_pos)),
        ("dw0_v", np.concatenate([dw0_v, dw0_v], axis=0)),       # (48, 128): hi + lo
        ("dw0_trig", dw0_trig),
        ("dw1", _block_diag(p["dw1"])),
        ("dw2", _block_diag(p["dw2"])),
        ("wout_d", wout_d),                                      # (128, 32)
        ("wout_rgb", wout_rgb),                                  # (128, 32)
    ]
    A_bd = _block_diag(A)                                        # (24, 288), powers of two
    a_stack = np.concatenate([A_bd, A_bd], axis=0)               # (48, 288): hi + lo

    f_entries = [
        ("pb0", np.tile(p["pb0"], (1, GROUP))),
        ("pb1", np.tile(p["pb1"], (1, GROUP))),
        ("pb2", np.tile(p["pb2"], (1, GROUP))),
        ("db0", np.tile(p["db0"], (1, GROUP))),
        ("db1", np.tile(p["db1"], (1, GROUP))),
        ("db2", np.tile(p["db2"], (1, GROUP))),
        ("bout", bout),
        ("phase", np.tile(phase, (1, GROUP))),                   # (1, 288)
    ]

    W_ALIGN, F_ALIGN = 16, 8      # bf16 / f32 sublane-tile alignment for row offsets
    offw, rw = {}, 0
    for name, a in w_entries:
        offw[name] = rw
        rw += _round_up(a.shape[0], W_ALIGN)
    offf, rf = {}, 0
    for name, a in f_entries:
        offf[name] = rf
        rf += _round_up(a.shape[0], F_ALIGN)

    wblob = np.zeros((rw, HID_P), np.float32)
    for name, a in w_entries:
        wblob[offw[name]:offw[name] + a.shape[0], :a.shape[1]] = a
    fblob = np.zeros((rf, TRIG_P), np.float32)
    for name, a in f_entries:
        fblob[offf[name]:offf[name] + a.shape[0], :a.shape[1]] = a

    return (jnp.asarray(wblob, jnp.bfloat16),
            jnp.asarray(a_stack, jnp.bfloat16),
            jnp.asarray(fblob, jnp.float32),
            offw, offf)


# -------------------- wrapper ------------------------------------------------
def decoder_forward(latent, viewdirs, packed, *, tile_rows=1024):
    """tile_rows = packed rows (= 8 original rows each) per grid step."""
    wblob, ablob, fblob, offw, offf = packed
    N, L = latent.shape

    m0 = -(-N // GROUP)                               # packed rows needed
    tp = max(64, (int(tile_rows) // 64) * 64)
    # cap so the parallel grid axis has >=2 steps whenever possible
    # (v7x has 2 TensorCores and only 64 MiB VMEM per core).
    tp = min(tp, max(64, _round_up(-(-m0 // 2), 64)))
    m_pad = _round_up(m0, tp)
    n_pad = m_pad * GROUP

    lat = latent.astype(jnp.bfloat16)
    vd = viewdirs.astype(jnp.float32)
    if n_pad != N:
        lat = jnp.pad(lat, ((0, n_pad - N), (0, 0)))
        vd = jnp.pad(vd, ((0, n_pad - N), (0, 0)))

    # free, contiguous HBM reshapes: pack 8 consecutive rows into the lane axis
    lat_p = lat.reshape(m_pad, GROUP * L)
    v_hi = vd.astype(jnp.bfloat16)
    v_lo = (vd - v_hi.astype(jnp.float32)).astype(jnp.bfloat16)   # exact hi/lo split
    vhl = jnp.concatenate([v_hi.reshape(m_pad, 3 * GROUP),
                           v_lo.reshape(m_pad, 3 * GROUP)], axis=-1)   # (m_pad, 48)

    kernel = functools.partial(decoder_kernel, lat_cols=GROUP * L, offw=offw, offf=offf)

    out = pl.pallas_call(
        kernel,
        out_shape=jax.ShapeDtypeStruct((m_pad, OUT_P), jnp.float32),
        grid_spec=pltpu.PrefetchScalarGridSpec(
            num_scalar_prefetch=0,
            grid=(m_pad // tp,),
            in_specs=[
                pl.BlockSpec((tp, GROUP * L), lambda i: (i, 0)),
                pl.BlockSpec((tp, VHL_P), lambda i: (i, 0)),
                pl.BlockSpec(wblob.shape, lambda i: (0, 0)),   # resident weight blob
                pl.BlockSpec(ablob.shape, lambda i: (0, 0)),   # resident frequency basis
                pl.BlockSpec(fblob.shape, lambda i: (0, 0)),   # resident biases / phase
            ],
            out_specs=pl.BlockSpec((tp, OUT_P), lambda i: (i, 0)),
        ),
        compiler_params=pltpu.CompilerParams(
            dimension_semantics=("parallel",),                 # megacore-shardable on v7x
            vmem_limit_bytes=48 * 1024 * 1024,                 # <= v7x physical VMEM
        ),
    )(lat_p, vhl, wblob, ablob, fblob)

    # keep this slice: padded rows carry bias-only garbage
    return out.reshape(n_pad, 4)[:N]


# -------------------- pure-JAX reference (module math, kernel precision) ----
def decoder_ref(latent, viewdirs, params):
    """Module forward in plain JAX at bf16-matmul / f32-accumulate precision."""
    bf16 = jnp.bfloat16
    dot = lambda a, b: jnp.dot(a.astype(bf16), b.astype(bf16),
                               preferred_element_type=jnp.float32)
    relu = lambda t: jnp.maximum(t, 0.0)
    h = relu(dot(latent, params["pw0"]) + params["pb0"])
    h = relu(dot(h, params["pw1"]) + params["pb1"])
    pos = dot(h, params["pw2"]) + params["pb2"]
    density, rgb_latent = pos[:, 0:1], pos[:, 1:]
    feat = jnp.concatenate([rgb_latent, embed_dirs(viewdirs)], axis=-1)
    g = relu(dot(feat, params["dw0"]) + params["db0"])
    g = relu(dot(g, params["dw1"]) + params["db1"])
    g = relu(dot(g, params["dw2"]) + params["db2"])
    rgb = dot(g, params["dw3"]) + params["db3"]
    return jnp.concatenate([density, rgb], axis=-1)


if __name__ == "__main__":
    key = jax.random.PRNGKey(0)
    k_lat, k_dir, k_par = jax.random.split(key, 3)

    N = 1000          # ragged batch: exercises pad + slice and the >=2-step grid cap
    LATENT_DIM = 8

    latent = jax.random.normal(k_lat, (N, LATENT_DIM), jnp.float32)
    viewdirs = jax.random.normal(k_dir, (N, 3), jnp.float32)
    viewdirs = viewdirs / jnp.linalg.norm(viewdirs, axis=-1, keepdims=True)

    params = init_params(k_par, LATENT_DIM)
    packed = pack_params(params)

    out = decoder_forward(latent, viewdirs, packed)
    out = jax.block_until_ready(out)

    ref = decoder_ref(latent, viewdirs, params)
    assert out.shape == (N, 4)
    max_err = float(jnp.max(jnp.abs(out - ref)))
    assert jnp.allclose(out, ref, atol=2e-2, rtol=2e-2), \
        f"mismatch vs. JAX reference (max abs err {max_err})"

    print("KERNEL_OK")
</pallas_src>

<mosaic_0001>
module attributes {stable_mosaic.version = 11 : i64} {
  func.func @decoder_kernel(%arg0: i32, %arg1: memref<64x64xbf16, #tpu.memory_space<vmem>>, %arg2: memref<64x48xbf16, #tpu.memory_space<vmem>>, %arg3: memref<1296x128xbf16, #tpu.memory_space<vmem>>, %arg4: memref<48x288xbf16, #tpu.memory_space<vmem>>, %arg5: memref<64x288xf32, #tpu.memory_space<vmem>>, %arg6: memref<64x32xf32, #tpu.memory_space<vmem>>) attributes {dimension_semantics = [#tpu.dimension_semantics<parallel>], iteration_bounds = array<i64: 2>, scalar_prefetch = 0 : i64, scratch_operands = 0 : i64, tpu.core_type = #tpu.core_type<tc>, window_params = [{transform_indices = @transform_0, window_bounds = array<i64: 64, 64>}, {transform_indices = @transform_1, window_bounds = array<i64: 64, 48>}, {pipeline_mode = #tpu.pipeline_mode<synchronous>, transform_indices = @transform_2, window_bounds = array<i64: 1296, 128>}, {pipeline_mode = #tpu.pipeline_mode<synchronous>, transform_indices = @transform_3, window_bounds = array<i64: 48, 288>}, {pipeline_mode = #tpu.pipeline_mode<synchronous>, transform_indices = @transform_4, window_bounds = array<i64: 64, 288>}, {transform_indices = @transform_5, window_bounds = array<i64: 64, 32>}]} {
    %c0 = arith.constant 0 : index
    %c0_0 = arith.constant 0 : index
    %0 = vector.load %arg1[%c0, %c0_0] : memref<64x64xbf16, #tpu.memory_space<vmem>>, vector<64x64xbf16>
    %c0_1 = arith.constant 0 : index
    %c0_2 = arith.constant 0 : index
    %1 = vector.load %arg2[%c0_1, %c0_2] : memref<64x48xbf16, #tpu.memory_space<vmem>>, vector<64x48xbf16>
    %c0_3 = arith.constant 0 : index
    %c0_4 = arith.constant 0 : index
    %2 = vector.load %arg4[%c0_3, %c0_4] : memref<48x288xbf16, #tpu.memory_space<vmem>>, vector<48x288xbf16>
    %c0_5 = arith.constant 0 : index
    %c0_6 = arith.constant 0 : index
    %3 = vector.load %arg3[%c0_5, %c0_6] : memref<1296x128xbf16, #tpu.memory_space<vmem>>, vector<64x128xbf16>
    %cst = arith.constant dense<0.000000e+00> : vector<64x128xf32>
    %4 = tpu.matmul %0, %3, %cst {dimension_numbers = #tpu.dot_dimension_numbers<[1], [0], [0], [1], [0, 0, 1, 1], [], []>} : vector<64x64xbf16>, vector<64x128xbf16>, vector<64x128xf32> -> vector<64x128xf32>
    %c0_7 = arith.constant 0 : index
    %c0_8 = arith.constant 0 : index
    %5 = vector.load %arg5[%c0_7, %c0_8] : memref<64x288xf32, #tpu.memory_space<vmem>>, vector<1x128xf32>
    %6 = vector.broadcast %5 : vector<1x128xf32> to vector<64x128xf32>
    %7 = arith.addf %4, %6 : vector<64x128xf32>
    %cst_9 = arith.constant 0.000000e+00 : f32
    %8 = vector.broadcast %cst_9 : f32 to vector<64x128xf32>
    %9 = arith.maximumf %7, %8 : vector<64x128xf32>
    %10 = arith.truncf %9 : vector<64x128xf32> to vector<64x128xbf16>
    %c64 = arith.constant 64 : index
    %c0_10 = arith.constant 0 : index
    %11 = vector.load %arg3[%c64, %c0_10] : memref<1296x128xbf16, #tpu.memory_space<vmem>>, vector<128x128xbf16>
    %cst_11 = arith.constant dense<0.000000e+00> : vector<64x128xf32>
    %12 = tpu.matmul %10, %11, %cst_11 {dimension_numbers = #tpu.dot_dimension_numbers<[1], [0], [0], [1], [0, 0, 1, 1], [], []>} : vector<64x128xbf16>, vector<128x128xbf16>, vector<64x128xf32> -> vector<64x128xf32>
    %c8 = arith.constant 8 : index
    %c0_12 = arith.constant 0 : index
    %13 = vector.load %arg5[%c8, %c0_12] : memref<64x288xf32, #tpu.memory_space<vmem>>, vector<1x128xf32>
    %14 = vector.broadcast %13 : vector<1x128xf32> to vector<64x128xf32>
    %15 = arith.addf %12, %14 : vector<64x128xf32>
    %cst_13 = arith.constant 0.000000e+00 : f32
    %16 = vector.broadcast %cst_13 : f32 to vector<64x128xf32>
    %17 = arith.maximumf %15, %16 : vector<64x128xf32>
    %18 = arith.truncf %17 : vector<64x128xf32> to vector<64x128xbf16>
    %c192 = arith.constant 192 : index
    %c0_14 = arith.constant 0 : index
    %19 = vector.load %arg3[%c192, %c0_14] : memref<1296x128xbf16, #tpu.memory_space<vmem>>, vector<128x128xbf16>
    %cst_15 = arith.constant dense<0.000000e+00> : vector<64x128xf32>
    %20 = tpu.matmul %18, %19, %cst_15 {dimension_numbers = #tpu.dot_dimension_numbers<[1], [0], [0], [1], [0, 0, 1, 1], [], []>} : vector<64x128xbf16>, vector<128x128xbf16>, vector<64x128xf32> -> vector<64x128xf32>
    %c16 = arith.constant 16 : index
    %c0_16 = arith.constant 0 : index
    %21 = vector.load %arg5[%c16, %c0_16] : memref<64x288xf32, #tpu.memory_space<vmem>>, vector<1x128xf32>
    %22 = vector.broadcast %21 : vector<1x128xf32> to vector<64x128xf32>
    %23 = arith.addf %20, %22 : vector<64x128xf32>
    %cst_17 = arith.constant dense<0.000000e+00> : vector<64x288xf32>
    %24 = tpu.matmul %1, %2, %cst_17 {dimension_numbers = #tpu.dot_dimension_numbers<[1], [0], [0], [1], [0, 0, 1, 1], [], []>} : vector<64x48xbf16>, vector<48x288xbf16>, vector<64x288xf32> -> vector<64x288xf32>
    %c56 = arith.constant 56 : index
    %c0_18 = arith.constant 0 : index
    %25 = vector.load %arg5[%c56, %c0_18] : memref<64x288xf32, #tpu.memory_space<vmem>>, vector<1x288xf32>
    %26 = vector.broadcast %25 : vector<1x288xf32> to vector<64x288xf32>
    %27 = arith.addf %24, %26 : vector<64x288xf32>
    %28 = math.sin %27 : vector<64x288xf32>
    %29 = arith.truncf %23 : vector<64x128xf32> to vector<64x128xbf16>
    %c320 = arith.constant 320 : index
    %c0_19 = arith.constant 0 : index
    %30 = vector.load %arg3[%c320, %c0_19] : memref<1296x128xbf16, #tpu.memory_space<vmem>>, vector<128x128xbf16>
    %cst_20 = arith.constant dense<0.000000e+00> : vector<64x128xf32>
    %31 = tpu.matmul %29, %30, %cst_20 {dimension_numbers = #tpu.dot_dimension_numbers<[1], [0], [0], [1], [0, 0, 1, 1], [], []>} : vector<64x128xbf16>, vector<128x128xbf16>, vector<64x128xf32> -> vector<64x128xf32>
    %c448 = arith.constant 448 : index
    %c0_21 = arith.constant 0 : index
    %32 = vector.load %arg3[%c448, %c0_21] : memref<1296x128xbf16, #tpu.memory_space<vmem>>, vector<48x128xbf16>
    %cst_22 = arith.constant dense<0.000000e+00> : vector<64x128xf32>
    %33 = tpu.matmul %1, %32, %cst_22 {dimension_numbers = #tpu.dot_dimension_numbers<[1], [0], [0], [1], [0, 0, 1, 1], [], []>} : vector<64x48xbf16>, vector<48x128xbf16>, vector<64x128xf32> -> vector<64x128xf32>
    %34 = arith.addf %31, %33 : vector<64x128xf32>
    %35 = arith.truncf %28 : vector<64x288xf32> to vector<64x288xbf16>
    %c496 = arith.constant 496 : index
    %c0_23 = arith.constant 0 : index
    %36 = vector.load %arg3[%c496, %c0_23] : memref<1296x128xbf16, #tpu.memory_space<vmem>>, vector<288x128xbf16>
    %cst_24 = arith.constant dense<0.000000e+00> : vector<64x128xf32>
    %37 = tpu.matmul %35, %36, %cst_24 {dimension_numbers = #tpu.dot_dimension_numbers<[1], [0], [0], [1], [0, 0, 1, 1], [], []>} : vector<64x288xbf16>, vector<288x128xbf16>, vector<64x128xf32> -> vector<64x128xf32>
    %38 = arith.addf %34, %37 : vector<64x128xf32>
    %c24 = arith.constant 24 : index
    %c0_25 = arith.constant 0 : index
    %39 = vector.load %arg5[%c24, %c0_25] : memref<64x288xf32, #tpu.memory_space<vmem>>, vector<1x128xf32>
    %40 = vector.broadcast %39 : vector<1x128xf32> to vector<64x128xf32>
    %41 = arith.addf %38, %40 : vector<64x128xf32>
    %cst_26 = arith.constant 0.000000e+00 : f32
    %42 = vector.broadcast %cst_26 : f32 to vector<64x128xf32>
    %43 = arith.maximumf %41, %42 : vector<64x128xf32>
    %44 = arith.truncf %43 : vector<64x128xf32> to vector<64x128xbf16>
    %c784 = arith.constant 784 : index
    %c0_27 = arith.constant 0 : index
    %45 = vector.load %arg3[%c784, %c0_27] : memref<1296x128xbf16, #tpu.memory_space<vmem>>, vector<128x128xbf16>
    %cst_28 = arith.constant dense<0.000000e+00> : vector<64x128xf32>
    %46 = tpu.matmul %44, %45, %cst_28 {dimension_numbers = #tpu.dot_dimension_numbers<[1], [0], [0], [1], [0, 0, 1, 1], [], []>} : vector<64x128xbf16>, vector<128x128xbf16>, vector<64x128xf32> -> vector<64x128xf32>
    %c32 = arith.constant 32 : index
    %c0_29 = arith.constant 0 : index
    %47 = vector.load %arg5[%c32, %c0_29] : memref<64x288xf32, #tpu.memory_space<vmem>>, vector<1x128xf32>
    %48 = vector.broadcast %47 : vector<1x128xf32> to vector<64x128xf32>
    %49 = arith.addf %46, %48 : vector<64x128xf32>
    %cst_30 = arith.constant 0.000000e+00 : f32
    %50 = vector.broadcast %cst_30 : f32 to vector<64x128xf32>
    %51 = arith.maximumf %49, %50 : vector<64x128xf32>
    %52 = arith.truncf %51 : vector<64x128xf32> to vector<64x128xbf16>
    %c912 = arith.constant 912 : index
    %c0_31 = arith.constant 0 : index
    %53 = vector.load %arg3[%c912, %c0_31] : memref<1296x128xbf16, #tpu.memory_space<vmem>>, vector<128x128xbf16>
    %cst_32 = arith.constant dense<0.000000e+00> : vector<64x128xf32>
    %54 = tpu.matmul %52, %53, %cst_32 {dimension_numbers = #tpu.dot_dimension_numbers<[1], [0], [0], [1], [0, 0, 1, 1], [], []>} : vector<64x128xbf16>, vector<128x128xbf16>, vector<64x128xf32> -> vector<64x128xf32>
    %c40 = arith.constant 40 : index
    %c0_33 = arith.constant 0 : index
    %55 = vector.load %arg5[%c40, %c0_33] : memref<64x288xf32, #tpu.memory_space<vmem>>, vector<1x128xf32>
    %56 = vector.broadcast %55 : vector<1x128xf32> to vector<64x128xf32>
    %57 = arith.addf %54, %56 : vector<64x128xf32>
    %cst_34 = arith.constant 0.000000e+00 : f32
    %58 = vector.broadcast %cst_34 : f32 to vector<64x128xf32>
    %59 = arith.maximumf %57, %58 : vector<64x128xf32>
    %c1040 = arith.constant 1040 : index
    %c0_35 = arith.constant 0 : index
    %60 = vector.load %arg3[%c1040, %c0_35] : memref<1296x128xbf16, #tpu.memory_space<vmem>>, vector<128x32xbf16>
    %cst_36 = arith.constant dense<0.000000e+00> : vector<64x32xf32>
    %61 = tpu.matmul %18, %60, %cst_36 {dimension_numbers = #tpu.dot_dimension_numbers<[1], [0], [0], [1], [0, 0, 1, 1], [], []>} : vector<64x128xbf16>, vector<128x32xbf16>, vector<64x32xf32> -> vector<64x32xf32>
    %62 = arith.truncf %59 : vector<64x128xf32> to vector<64x128xbf16>
    %c1168 = arith.constant 1168 : index
    %c0_37 = arith.constant 0 : index
    %63 = vector.load %arg3[%c1168, %c0_37] : memref<1296x128xbf16, #tpu.memory_space<vmem>>, vector<128x32xbf16>
    %cst_38 = arith.constant dense<0.000000e+00> : vector<64x32xf32>
    %64 = tpu.matmul %62, %63, %cst_38 {dimension_numbers = #tpu.dot_dimension_numbers<[1], [0], [0], [1], [0, 0, 1, 1], [], []>} : vector<64x128xbf16>, vector<128x32xbf16>, vector<64x32xf32> -> vector<64x32xf32>
    %65 = arith.addf %61, %64 : vector<64x32xf32>
    %c48 = arith.constant 48 : index
    %c0_39 = arith.constant 0 : index
    %66 = vector.load %arg5[%c48, %c0_39] : memref<64x288xf32, #tpu.memory_space<vmem>>, vector<1x32xf32>
    %67 = vector.broadcast %66 : vector<1x32xf32> to vector<64x32xf32>
    %68 = arith.addf %65, %67 : vector<64x32xf32>
    %c0_40 = arith.constant 0 : index
    %c0_41 = arith.constant 0 : index
    %69 = vector.load %arg6[%c0_40, %c0_41] : memref<64x32xf32, #tpu.memory_space<vmem>>, vector<64x32xf32>
    tpu.vector_store %arg6[%c0_40, %c0_41], %68 {strides = array<i32>} : memref<64x32xf32, #tpu.memory_space<vmem>>, vector<64x32xf32>,
    return
  }
  func.func @transform_0(%arg0: i32) -> (i32, i32) {
    %c0_i32 = arith.constant 0 : i32
    %c0_i32_0 = arith.constant 0 : i32
    return %arg0, %c0_i32 : i32, i32
  }
  func.func @transform_1(%arg0: i32) -> (i32, i32) {
    %c0_i32 = arith.constant 0 : i32
    %c0_i32_0 = arith.constant 0 : i32
    return %arg0, %c0_i32 : i32, i32
  }
  func.func @transform_2(%arg0: i32) -> (i32, i32) {
    %c0_i32 = arith.constant 0 : i32
    %c0_i32_0 = arith.constant 0 : i32
    %c0_i32_1 = arith.constant 0 : i32
    return %c0_i32, %c0_i32_0 : i32, i32
  }
  func.func @transform_3(%arg0: i32) -> (i32, i32) {
    %c0_i32 = arith.constant 0 : i32
    %c0_i32_0 = arith.constant 0 : i32
    %c0_i32_1 = arith.constant 0 : i32
    return %c0_i32, %c0_i32_0 : i32, i32
  }
  func.func @transform_4(%arg0: i32) -> (i32, i32) {
    %c0_i32 = arith.constant 0 : i32
    %c0_i32_0 = arith.constant 0 : i32
    %c0_i32_1 = arith.constant 0 : i32
    return %c0_i32, %c0_i32_0 : i32, i32
  }
  func.func @transform_5(%arg0: i32) -> (i32, i32) {
    %c0_i32 = arith.constant 0 : i32
    %c0_i32_0 = arith.constant 0 : i32
    return %arg0, %c0_i32 : i32, i32
  }
}

</mosaic_0001>

<bundles_post_ra>
// kernel: tpu_custom_call.1
= control target key start
LH: loop header
LB: loop body
LE: loop exit
PB: predicated region body
PF: predicated region fallthrough
CT: control target
= control target key end

     0   :  { %10 = vsyncpa [#allocation3], 0  ;;  %s8497_s0 = inlined_call_operand.vmem [shape: bf16[128,64], index: 0, kind: input, shape index: {}]   ;;  %s8498_s1 = inlined_call_operand.vmem [shape: bf16[128,48], index: 1, kind: input, shape index: {}]   ;;  %s8499_s2 = inlined_call_operand.hbm [shape: bf16[1296,128], index: 2, kind: input, shape index: {}]   ;;  %s8500_s3 = inlined_call_operand.hbm [shape: bf16[48,288], index: 3, kind: input, shape index: {}]   ;;  %s8501_s4 = inlined_call_operand.vmem [shape: f32[64,288], index: 4, kind: input, shape index: {}]   ;;  %s8502_s5 = inlined_call_operand.vmem [shape: f32[128,32], index: 5, kind: output, shape index: {}]  }
   0x1   :  { %11 = vsyncpa [#allocation5], 0  ;;  %s5748_s18 = smov 0  }
   0x2 LB: > { %s5705_s19 = smov [#allocation2]   ;;  %s4656_s21 = sadd.s32 4294967295, %s5703_s18   ;;  %s5703_s18 = sphi %s5748_s18, %s17_s18  }
   0x3   : > { %s175_s20 = sshll.u32 %s5705_s19, 4  ;;  %p4658_p0 = scmp.ge.s32.totalorder %s5703_s18, 1  ;;  %s176_s20 = int_to_ptr.vmem [resolvable:$true] %s175_s20 }
   0x4   : > { %p163_p1 = scmp.lt.s32.totalorder %s5703_s18, 3  ;;  %p5762_p3 = scmp.eq.s32.totalorder %s4656_s21, 0 }
   0x5   : > { %s5706_s24 = smov [#allocation4]   ;;  %s5633_s29 = scalar_lea.hbm %s8499_s2, 10368 }
   0x6   : > { %p5756_p2 = pnand %p4658_p0, %p163_p1  ;;  %s188_s25 = sshll.u32 %s5706_s24, 4  ;;  %s5774_s25 = int_to_ptr.vmem [resolvable:$true] %s188_s25 }
   0x7   : > { %s8642_s23 = scalar_select %p5762_p3, 1, 0 }
   0x8   : > { %s8641_s22 = scalar_select %p5756_p2, 1, 0 }
   0x9   : > { %p5400_p4 = pneg %p5756_p2  ;;  %p5634_p6 = scmp.ne.s32.totalorder %s8499_s2, %s5633_s29 }
   0xa   : > { %p5640_p10 = scmp.lt.u32.totalorder %s5633_s29, %s8499_s2 }
   0xb   : > { %p5770_p5 = pnand %p5762_p3, %p5400_p4 }
   0xd   : > { %p5635_p7 = pneg %p5770_p5 }
   0xf   : > { %p5636_p8 = pnand %p5635_p7, %p5634_p6 }
  0x11   : > { %p5637_p9 = pneg %p5636_p8 }
  0x13   : > { %p5642_p11 = pnand %p5640_p10, %p5637_p9 }
  0x15   : > { %5645 = shalt.err (!%p5642_p11)
}
  0x16   : > { %s5646_s9 = scalar_lea.vmem %s176_s20, 10368  ;;  %p5654_p1 = scmp.lt.s32.totalorder %s176_s20, %s176_s20 }
  0x17   : > { %p5647_p12 = scmp.ne.s32.totalorder %s176_s20, %s5646_s9  ;;  %p5655_p4 = scmp.lt.s32.totalorder %s5646_s9, %s5646_s9 }
  0x19   : > { %p5649_p13 = pnand %p5647_p12, %p5635_p7  ;;  %p5656_p3 = por %p5655_p4, %p5654_p1 }
  0x1b   : > { %p5650_p0 = pneg %p5649_p13 }
  0x1d   : > { %p5657_p2 = pnand %p5656_p3, %p5650_p0 }
  0x1f   : > { %5660 = shalt.err (!%p5657_p2)
}
  0x20   : > { %s5707_s10 = smov 64   ;;  %s5708_s11 = smov 4  }
  0x21   : > { %5403 = dma.hbm_to_vmem [thread:$0]  (!%p5770_p5), %s8499_s2, 10368, %s176_s20, [#allocation3], %s5707_s10, %s5707_s10, %s5708_s11  }
  0x22   : > { %s5661_s16 = scalar_lea.hbm %s8500_s3, 1152 }
  0x23   : > { %p5662_p6 = scmp.ne.s32.totalorder %s8500_s3, %s5661_s16  ;;  %p5668_p8 = scmp.lt.u32.totalorder %s5661_s16, %s8500_s3 }
  0x25   : > { %p5664_p2 = pnand %p5662_p6, %p5635_p7 }
  0x27   : > { %p5665_p3 = pneg %p5664_p2 }
  0x29   : > { %p5670_p9 = pnand %p5668_p8, %p5665_p3 }
  0x2b   : > { %5673 = shalt.err (!%p5670_p9)
}
  0x2c   : > { %s5674_s20 = scalar_lea.vmem %s5774_s25, 1152  ;;  %p5682_p13 = scmp.lt.s32.totalorder %s5774_s25, %s5774_s25 }
  0x2d   : > { %p5675_p10 = scmp.ne.s32.totalorder %s5774_s25, %s5674_s20  ;;  %p5683_p0 = scmp.lt.s32.totalorder %s5674_s20, %s5674_s20 }
  0x2f   : > { %p5677_p11 = pnand %p5675_p10, %p5635_p7  ;;  %p5684_p1 = por %p5683_p0, %p5682_p13 }
  0x31   : > { %p5678_p12 = pneg %p5677_p11 }
  0x33   : > { %p5685_p4 = pnand %p5684_p1, %p5678_p12 }
  0x35   : > { %5688 = shalt.err (!%p5685_p4)
}
  0x36   : > { %s5709_s28 = smov 192   ;;  %s5710_s29 = smov 12  }
  0x37   : > { %5406 = dma.hbm_to_vmem [thread:$0]  (!%p5770_p5), %s8500_s3, 1152, %s5774_s25, [#allocation5], %s5709_s28, %s5709_s28, %s5710_s29  }
  0x38   : > { %p8644_p6 = scmp.ne.s32.totalorder %s8641_s22, 0 }
  0x3a   : > { %225 = sbr.rel (%p8644_p6) target bundleno = 2080 (0x820), region = 40 }
  0x41   : > { %p8645_p7 = scmp.ne.s32.totalorder %s8642_s23, 0 }
  0x43   : > { %5694 = dma.done.wait (%p8645_p7), [#allocation3], 10368  }
  0x44   : > { %5696 = vsyncadd (%p8645_p7), [#allocation3], 4294956928 }
  0x45   : > { %5698 = dma.done.wait (%p8645_p7), [#allocation5], 1152  }
  0x46   : > { %5700 = vsyncadd (%p8645_p7), [#allocation5], 4294966144  ;;  %s4665_s26 = sshll.u32 %s4656_s21, 3  ;;  %v5432_v0 = vld [vmem:[#allocation2] sm:$0xff]   ;;  %v5433_v1 = vld [vmem:[#allocation2 + $0x8] sm:$0xff]   ;;  %vm362_vm0 = vcmask 523264  }
  0x47   : > { %p263_p2 = scmp.lt.s32.totalorder %s4665_s26, 15  ;;  %5040 = vmatprep.subr.bf16.mxu1 %v5432_v0  ;;  %v5434_v2 = vld [vmem:[#allocation2 + $0x10] sm:$0xff]   ;;  %v5435_v4 = vld [vmem:[#allocation2 + $0x18] sm:$0xff]   ;;  %v5440_v6 = vld [vmem:[#allocation2 + $0x20] sm:$0xff]   ;;  %v5711_v57 = vmov 0   ;;  %vm810_vm1 = vcmask 392192  }
  0x48   : > { %5041 = vmatpush3.bf16.msra.mxu1 %v5432_v0  ;;  %v5441_v8 = vld [vmem:[#allocation2 + $0x28] sm:$0xff]   ;;  %v5442_v9 = vld [vmem:[#allocation2 + $0x30] sm:$0xff]   ;;  %v5443_v11 = vld [vmem:[#allocation2 + $0x38] sm:$0xff]  }
  0x49   : > { %s8930_s26 = smov (!%p263_p2, %s4665_s26), 15  ;;  %5042 = vmatprep.subr.bf16.mxu1 %v5433_v1  ;;  %v5444_v12 = vld [vmem:[#allocation2 + $0x40] sm:$0xff]   ;;  %v5445_v13 = vld [vmem:[#allocation2 + $0x48] sm:$0xff]   ;;  %v5446_v14 = vld [vmem:[#allocation2 + $0x50] sm:$0xff]  }
  0x4a   : > { %s4666_s22 = sshll.u32 %s8930_s26, 2  ;;  %v5447_v15 = vld [vmem:[#allocation2 + $0x58] sm:$0xff]   ;;  %v5461_v17 = vld [vmem:[#allocation2 + $0x60] sm:$0xff]   ;;  %v5462_v18 = vld [vmem:[#allocation2 + $0x68] sm:$0xff]  }
  0x4b   : > { %s266_s8 = scalar_lea.vmem %s8497_s0, %s4666_s22  ;;  %s5845_s9 = scalar_lea.vmem %s8498_s1, %s4666_s22  ;;  %v5450_v16 = vld [vmem:[#allocation4 + $0x4] ss:$12 sps:$4 sm:$0xff]   ;;  %5080 = vmatprep.subr.bf16.mxu0 %v5461_v17  ;;  %v5463_v19 = vld [vmem:[#allocation2 + $0x70] sm:$0xff]   ;;  %v5465_v21 = vld [vmem:[#allocation2 + $0x80] sm:$0xff]  }
  0x4c   : > { %v5436_v3 = vld [vmem:[%s266_s8] sm:$0xff]   ;;  %5043 = vmatpush3.bf16.msra.mxu1 %v5433_v1  ;;  %v5437_v5 = vld [vmem:[%s266_s8 + $0x8] sm:$0xff]   ;;  %v5438_v7 = vld [vmem:[%s266_s8 + $0x10] sm:$0xff]   ;;  %5081 = vmatpush3.bf16.msra.mxu0 %v5461_v17  ;;  %s4670_s22 = sshll.u32 %s8930_s26, 3 }
  0x4d   : > { %5048 = vmatprep.mubr.msk.bf16.mxu1 %vm362_vm0, %v5436_v3  ;;  %5044 = vmatprep.subr.bf16.mxu1 %v5434_v2  ;;  %v5439_v10 = vld [vmem:[%s266_s8 + $0x18] sm:$0xff]   ;;  %v5466_v22 = vld [vmem:[#allocation2 + $0x88] sm:$0xff]   ;;  %v317_v23 = vld [vmem:[%s8501_s4] ss:$0 sm:$0xff]  ;;  %s278_s23 = scalar_lea.vmem %s8502_s5, %s4670_s22 }
  0x4e   : > { %5082 = vmatprep.subr.bf16.mxu0 %v5462_v18  ;;  %v5464_v20 = vld [vmem:[#allocation2 + $0x78] sm:$0xff]   ;;  %v5448_v39 = vld [vmem:[#allocation4] ss:$12 sps:$4 sm:$0xff]   ;;  %v5453_v42 = vld [vmem:[#allocation4 + $0x1c] ss:$12 sps:$4 sm:$0xff]  }
  0x4f   : > { %v5451_v48 = vld [vmem:[#allocation4 + $0x18] ss:$12 sps:$4 sm:$0xff]   ;;  %v5456_v51 = vld [vmem:[#allocation4 + $0x34] ss:$12 sps:$4 sm:$0xff]   ;;  %v5454_v56 = vld [vmem:[#allocation4 + $0x30] ss:$12 sps:$4 sm:$0xff]  }
  0x50   : > { %5045 = vmatpush3.bf16.msra.mxu1 %v5434_v2  ;;  %5083 = vmatpush3.bf16.msra.mxu0 %v5462_v18  ;;  %v5854_v58 = vld [vmem:[%s5845_s9] sm:$0xff]   ;;  %v5859_v59 = vld [vmem:[%s5845_s9 + $0x8] sm:$0xff]   ;;  %v5864_v60 = vld [vmem:[%s5845_s9 + $0x10] sm:$0xff]  }
  0x51   : > { %5046 = vmatprep.subr.bf16.mxu1 %v5435_v4  ;;  %5084 = vmatprep.subr.bf16.mxu0 %v5463_v19  ;;  %v5869_v61 = vld [vmem:[%s5845_s9 + $0x18] sm:$0xff]   ;;  %v5467_v62 = vld [vmem:[#allocation2 + $0x90] sm:$0xff]  }
  0x52   : > { %v5468_v63 = vld [vmem:[#allocation2 + $0x98] sm:$0xff]  }
  0x53   : > { %v5469_v0 = vld [vmem:[#allocation4 + $0x8] ss:$12 sps:$4 sm:$0xff]   ;;  %v468_v1 = vld [vmem:[%s8501_s4 + $0x18] ss:$0 sm:$0xff] }
  0x54   : > { %5047 = vmatpush3.bf16.msra.mxu1 %v5435_v4  ;;  %5085 = vmatpush3.bf16.msra.mxu0 %v5463_v19 }
  0x55   : > { %5056 = vmatprep.subr.bf16.mxu1 %v5440_v6  ;;  %5086 = vmatprep.subr.bf16.mxu0 %v5464_v20 }
  0x57   : > { %5049 = vmatmul.mubr.msk.bf16.vlgmr.msra.gmra.mrb[0].mxu1 %vm362_vm0, %v5437_v5  ;;  %v727_v5 = vlaneseq }
  0x58   : > { %5052 = vmatprep.mubr.msk.bf16.mxu1 %vm362_vm0, %v5438_v7  ;;  %5057 = vmatpush3.bf16.msra.mxu1 %v5440_v6 }
  0x59   : > { %5058 = vmatprep.subr.bf16.mxu1 %v5441_v8  ;;  %5087 = vmatpush3.bf16.msra.mxu0 %v5464_v20 }
  0x5a   : > { %5088 = vmatprep.subr.bf16.mxu0 %v5465_v21 }
  0x5c   : > { %5059 = vmatpush3.bf16.msra.mxu1 %v5441_v8 }
  0x5d   : > { %5060 = vmatprep.subr.bf16.mxu1 %v5442_v9  ;;  %5089 = vmatpush3.bf16.msra.mxu0 %v5465_v21  ;;  %v5470_v21 = vld [vmem:[#allocation4 + $0x20] ss:$12 sps:$4 sm:$0xff]  }
  0x5e   : > { %5090 = vmatprep.subr.bf16.mxu0 %v5466_v22 }
  0x5f   : > { %5053 = vmatmul.mubr.msk.bf16.gmra.mrb[4].mxu1 %vm362_vm0, %v5439_v10 }
  0x60   : > { %5061 = vmatpush3.bf16.msra.mxu1 %v5442_v9 }
  0x61   : > { %5062 = vmatprep.subr.bf16.mxu1 %v5443_v11  ;;  %5091 = vmatpush3.bf16.msra.mxu0 %v5466_v22 }
  0x62   : > { %5092 = vmatprep.subr.bf16.mxu0 %v5467_v62 }
  0x64   : > { %5063 = vmatpush3.bf16.msra.mxu1 %v5443_v11 }
  0x65   : > { %5064 = vmatprep.subr.bf16.mxu1 %v5444_v12  ;;  %5093 = vmatpush3.bf16.msra.mxu0 %v5467_v62 }
  0x66   : > { %5094 = vmatprep.subr.bf16.mxu0 %v5468_v63 }
  0x68   : > { %5065 = vmatpush3.bf16.msra.mxu1 %v5444_v12 }
  0x69   : > { %5066 = vmatprep.subr.bf16.mxu1 %v5445_v13  ;;  %5095 = vmatpush3.bf16.msra.mxu0 %v5468_v63 }
  0x6a   : > { %5104 = vmatprep.subr.bf16.mxu0 %v5469_v0 }
  0x6c   : > { %5067 = vmatpush3.bf16.msra.mxu1 %v5445_v13  ;;  %v5876_v13 = vshrl.u32 %v727_v5, 7 }
  0x6d   : > { %5068 = vmatprep.subr.bf16.mxu1 %v5446_v14 }
  0x6e   : > { %8646 = vst [vmem:[#allocation8_spill] sm:$0xff] %v5876_v13  ;;  %v729_v22 = vsub.s32 0, %v5876_v13 }
  0x70   : > { %5069 = vmatpush3.bf16.msra.mxu1 %v5446_v14 }
  0x71   : > { %5070 = vmatprep.subr.bf16.mxu1 %v5447_v15 }
  0x74   : > { %5071 = vmatpush3.bf16.msra.mxu1 %v5447_v15 }
  0x75   : > { %823 = vmatprep.subr.bf16.mxu1 %v5450_v16 }
 0x12a   : > { %v5050_v24 = vpop.f32.mrb[0].mxu1 }
 0x12b   : > { %v418_v25 = vadd.f32 %v5050_v24, %v317_v23  ;;  %v409_v26 = vpop.f32.mrb[1].mxu1 }
 0x12c   : > { %v410_v27 = vadd.f32 %v409_v26, %v317_v23  ;;  %v5051_v28 = vpop.f32.mrb[2].mxu1  ;;  %v733_v26 = vsub.s32 1, %v5876_v13 }
 0x12d   : > { %v421_v29 = vadd.f32 %v5051_v28, %v317_v23  ;;  %v412_v30 = vpop.f32.mrb[3].mxu1  ;;  %v442_v32 = vmax.f32 %v418_v25, 0.0  ;;  %v4699_v25 = vld [vmem:[%s8501_s4 + $0xa8] ss:$8 sm:$0x7] }
 0x12e   : > { %v413_v31 = vadd.f32 %v412_v30, %v317_v23  ;;  %v440_v34 = vmax.f32 %v410_v27, 0.0 }
 0x12f   : > { %v443_v33 = vmax.f32 %v421_v29, 0.0 }
 0x130   : > { %v441_v35 = vmax.f32 %v413_v31, 0.0 }
 0x131   : > { %v449_v36 = vpack.c.bf16 %v443_v33, %v442_v32  ;;  %v5471_v32 = vld [vmem:[#allocation4 + $0x38] ss:$12 sps:$4 sm:$0xff]   ;;  %v5889_v33 = vrot.slane %v4699_v25, %v729_v22 }
 0x132   : > { %v448_v37 = vpack.c.bf16 %v441_v35, %v440_v34  ;;  %v5054_v38 = vpop.f32.mrb[4].mxu1 }
 0x133   : > { %v434_v40 = vadd.f32 %v5054_v38, %v317_v23  ;;  %v425_v41 = vpop.f32.mrb[5].mxu1 }
 0x134   : > { %v426_v43 = vadd.f32 %v425_v41, %v317_v23  ;;  %v5055_v44 = vpop.f32.mrb[6].mxu1  ;;  %5072 = vmatprep.mubr.bf16.mxu1 %v448_v37 }
 0x135   : > { %v437_v45 = vadd.f32 %v5055_v44, %v317_v23  ;;  %v428_v46 = vpop.f32.mrb[7].mxu1  ;;  %5073 = vmatmul.mubr.bf16.vlgmr.msra.gmra.mrb[8].mxu1 %v449_v36  ;;  %v446_v49 = vmax.f32 %v434_v40, 0.0  ;;  %v5891_v36 = vrot.slane %v4699_v25, %v733_v26  ;;  %v8512_v25 = vmov 2131351028  }
 0x136   : > { %v429_v47 = vadd.f32 %v428_v46, %v317_v23  ;;  %824 = vmatpush1.bf16.msra.mxu1 %v5448_v39  ;;  %v444_v52 = vmax.f32 %v426_v43, 0.0 }
 0x137   : > { %v447_v50 = vmax.f32 %v437_v45, 0.0  ;;  %825 = vmatprep.subr.bf16.mxu1 %v5453_v42 }
 0x138   : > { %v445_v53 = vmax.f32 %v429_v47, 0.0 }
 0x139   : > { %v451_v54 = vpack.c.bf16 %v447_v50, %v446_v49 }
 0x13a   : > { %v450_v55 = vpack.c.bf16 %v445_v53, %v444_v52  ;;  %826 = vmatpush1.bf16.msra.mxu1 %v5451_v48 }
 0x13b   : > { %827 = vmatprep.subr.bf16.mxu1 %v5456_v51 }
 0x13c   : > { %5076 = vmatprep.mubr.bf16.mxu1 %v450_v55 }
 0x13d   : > { %5077 = vmatmul.mubr.bf16.gmra.mrb[12].mxu1 %v451_v54 }
 0x13e   : > { %828 = vmatpush1.bf16.msra.mxu1 %v5454_v56  ;;  %855 = vmatprep.mubr.bf16.mxu1 %v5711_v57 }
 0x145   : > { %4713 = vmatmul.mubr.msk.bf16.vlgmr.msra.gmra.mrb[16].mxu1 %vm810_vm1, %v5854_v58 }
 0x146   : > { %865 = vmatprep.mubr.bf16.mxu1 %v5711_v57 }
 0x14d   : > { %4714 = vmatmul.mubr.msk.bf16.gmra.mrb[20].mxu1 %vm810_vm1, %v5859_v59 }
 0x14e   : > { %875 = vmatprep.mubr.bf16.mxu1 %v5711_v57 }
 0x155   : > { %4715 = vmatmul.mubr.msk.bf16.gmra.mrb[24].mxu1 %vm810_vm1, %v5864_v60 }
 0x156   : > { %885 = vmatprep.mubr.bf16.mxu1 %v5711_v57 }
 0x15d   : > { %4716 = vmatmul.mubr.msk.bf16.gmra.mrb[28].mxu1 %vm810_vm1, %v5869_v61 }
 0x208   : > { %v5074_v2 = vpop.f32.mrb[8].mxu1 }
 0x209   : > { %v560_v3 = vadd.f32 %v5074_v2, %v468_v1  ;;  %v551_v4 = vpop.f32.mrb[9].mxu1 }
 0x20a   : > { %v552_v6 = vadd.f32 %v551_v4, %v468_v1  ;;  %v5075_v7 = vpop.f32.mrb[10].mxu1 }
 0x20b   : > { %v563_v8 = vadd.f32 %v5075_v7, %v468_v1  ;;  %v554_v9 = vpop.f32.mrb[11].mxu1  ;;  %v584_v11 = vmax.f32 %v560_v3, 0.0 }
 0x20c   : > { %v555_v10 = vadd.f32 %v554_v9, %v468_v1  ;;  %v582_v14 = vmax.f32 %v552_v6, 0.0 }
 0x20d   : > { %v585_v12 = vmax.f32 %v563_v8, 0.0 }
 0x20e   : > { %v583_v15 = vmax.f32 %v555_v10, 0.0 }
 0x20f   : > { %v5878_v16 = vpack.c.bf16 %v585_v12, %v584_v11 }
 0x210   : > { %v5078_v17 = vpop.f32.mrb[12].mxu1  ;;  %v5880_v18 = vpack.c.bf16 %v583_v15, %v582_v14 }
 0x211   : > { %8647 = vst [vmem:[#allocation9_spill] sm:$0xff] %v5878_v16  ;;  %v576_v19 = vadd.f32 %v5078_v17, %v468_v1  ;;  %v567_v20 = vpop.f32.mrb[13].mxu1 }
 0x212   : > { %8648 = vst [vmem:[#allocation10_spill] sm:$0xff] %v5880_v18  ;;  %v568_v23 = vadd.f32 %v567_v20, %v468_v1  ;;  %v5079_v24 = vpop.f32.mrb[14].mxu1  ;;  %5096 = vmatprep.mubr.bf16.mxu0 %v5880_v18 }
 0x213   : > { %v579_v27 = vadd.f32 %v5079_v24, %v468_v1  ;;  %v570_v28 = vpop.f32.mrb[15].mxu1  ;;  %5097 = vmatmul.mubr.bf16.vlgmr.msra.gmra.mrb[0].mxu0 %v5878_v16  ;;  %v588_v30 = vmax.f32 %v576_v19, 0.0 }
 0x214   : > { %v571_v29 = vadd.f32 %v570_v28, %v468_v1  ;;  %5105 = vmatpush3.bf16.msra.mxu0 %v5469_v0  ;;  %v586_v34 = vmax.f32 %v568_v23, 0.0  ;;  %v8510_v23 = vmov 2475754826  }
 0x215   : > { %v589_v31 = vmax.f32 %v579_v27, 0.0  ;;  %5106 = vmatprep.subr.bf16.mxu0 %v5470_v21  ;;  %v8517_v27 = vmov 2102212464  }
 0x216   : > { %v587_v35 = vmax.f32 %v571_v29, 0.0  ;;  %v8514_v29 = vmov 920167782  }
 0x217   : > { %v5893_v37 = vpack.c.bf16 %v589_v31, %v588_v30 }
 0x218   : > { %v5895_v38 = vpack.c.bf16 %v587_v35, %v586_v34  ;;  %5107 = vmatpush3.bf16.msra.mxu0 %v5470_v21  ;;  %v857_v39 = vpop.f32.mrb[16].mxu1  ;;  %v8521_v21 = vmov 683565275  }
 0x219   : > { %8649 = vst [vmem:[#allocation11_spill] sm:$0xff] %v5893_v37  ;;  %5108 = vmatprep.subr.bf16.mxu0 %v5471_v32  ;;  %v5898_v40 = vadd.f32 %v857_v39, %v5889_v33  ;;  %v859_v41 = vpop.f32.mrb[17].mxu1 }
 0x21a   : > { %8650 = vst [vmem:[#allocation12_spill] sm:$0xff] %v5895_v38  ;;  %5100 = vmatprep.mubr.bf16.mxu0 %v5895_v38  ;;  %v5902_v42 = vadd.f32 %v859_v41, %v5891_v36  ;;  %v861_v43 = vpop.f32.mrb[18].mxu1 }
 0x21b   : > { %8651 = vst [vmem:[#allocation13_spill] sm:$0xff] %v5898_v40  ;;  %5101 = vmatmul.mubr.bf16.gmra.mrb[4].mxu0 %v5893_v37  ;;  %v961_v44 = vand.u32 2147483647, %v5898_v40  ;;  %v964_v45 = vand.u32 2139095040, %v5898_v40  ;;  %v863_v46 = vpop.f32.mrb[19].mxu1  ;;  %v5912_v49 = vadd.f32 %v861_v43, %v5889_v33 }
 0x21c   : > { %5109 = vmatpush3.bf16.msra.mxu0 %v5471_v32  ;;  %5110 = vmatprep.mubr.msk.bf16.mxu0 %vm810_vm1, %v5854_v58  ;;  %v8509_v47 = vand.u32 2147483647, %v5902_v42  ;;  %v1068_v48 = vand.u32 2139095040, %v5902_v42  ;;  %v5925_v5 = vadd.f32 %v863_v46, %v5891_v36  ;;  %v8519_v43 = vmov 1326507024  }
 0x21d   : > { %8652 = vst [vmem:[#allocation14_spill] sm:$0xff] %v5912_v49  ;;  %v965_v50 = vshrl.u32 %v964_v45, 23  ;;  %v968_v51 = vand.u32 8388607, %v961_v44  ;;  %v1276_v55 = vand.u32 2139095040, %v5912_v49 }
 0x21e   : > { %v1069_v52 = vshrl.u32 %v1068_v48, 23  ;;  %v1072_v53 = vand.u32 8388607, %v8509_v47  ;;  %v8508_v4 = vand.u32 2147483647, %v5912_v49  ;;  %8653 = vst [vmem:[#allocation15_spill] sm:$0xff] %v5925_v5 }
 0x21f   : > { %v4721_v54 = vadd.s32 4294967169, %v965_v50  ;;  %v969_v56 = vor.u32 8388608, %v968_v51  ;;  %v1277_v1 = vshrl.u32 %v1276_v55, 23 }
 0x220   : > { %v4725_v57 = vadd.s32 4294967169, %v1069_v52  ;;  %v5919_v62 = vpop.f32.mrb[20].mxu1  ;;  %v1073_v0 = vor.u32 8388608, %v1072_v53 }
 0x221   : > { %v971_v63 = vadd.s32 1, %v4721_v54  ;;  %v5921_v2 = vpop.f32.mrb[21].mxu1  ;;  %v4733_v6 = vadd.s32 4294967169, %v1277_v1  ;;  %v5933_v9 = vshll.u32 %v969_v56, 8 }
 0x222   : > { %v1075_v3 = vadd.s32 1, %v4725_v57  ;;  %v5929_v7 = vpop.f32.mrb[22].mxu1  ;;  %v5937_v15 = vshll.u32 %v1073_v0, 8 }
 0x223   : > { %5111 = vmatmul.mubr.msk.bf16.vlgmr.msra.gmra.mrb[8].mxu0 %vm810_vm1, %v5859_v59  ;;  %vm972_vm2 = vcmp.gt.s32.totalorder %v971_v63, 0  ;;  %v5935_v10 = vpop.f32.mrb[23].mxu1  ;;  %v5941_v59 = vand.u32 8388607, %v8508_v4  ;;  %v5943_v19 = vadd.s32 1, %v4733_v6 }
 0x224   : > { %5114 = vmatprep.mubr.msk.bf16.mxu0 %vm810_vm1, %v5864_v60  ;;  %v973_v8 = vsel %vm972_vm2, %v971_v63, 0  ;;  %vm1076_vm3 = vcmp.gt.s32.totalorder %v1075_v3, 0  ;;  %v1380_v60 = vand.u32 2139095040, %v5925_v5 }
 0x225   : > { %v974_v11 = vshrl.u32 %v973_v8, 5  ;;  %v975_v12 = vand.u32 31, %v973_v8  ;;  %v1077_v14 = vsel %vm1076_vm3, %v1075_v3, 0  ;;  %vm1284_vm13 = vcmp.gt.s32.totalorder %v5943_v19, 0 }
 0x226   : > { %v1079_v17 = vand.u32 31, %v1077_v14  ;;  %v5951_v31 = vshrl.u32 %v1077_v14, 5 }
 0x227   : > { %v976_v20 = vsub.s32 32, %v975_v12  ;;  %v978_v22 = vshll.u32 %v8521_v21, %v975_v12  ;;  %v981_v24 = vshll.u32 %v8510_v23, %v975_v12  ;;  %v984_v26 = vshll.u32 %v8512_v25, %v975_v12 }
 0x228   : > { %v987_v28 = vshll.u32 %v8517_v27, %v975_v12  ;;  %v990_v30 = vshll.u32 %v8514_v29, %v975_v12  ;;  %vm993_vm4 = vcmp.lt.s32.totalorder %v974_v11, 1  ;;  %vm994_vm5 = vcmp.lt.s32.totalorder %v974_v11, 2 }
 0x229   : > { %v977_v32 = vshrl.u32 %v8521_v21, %v976_v20  ;;  %v979_v34 = vshrl.u32 %v8510_v23, %v976_v20  ;;  %v982_v35 = vshrl.u32 %v8512_v25, %v976_v20  ;;  %v985_v39 = vshrl.u32 %v8517_v27, %v976_v20 }
 0x22a   : > { %v988_v41 = vshrl.u32 %v8514_v29, %v976_v20  ;;  %v991_v45 = vshrl.u32 %v8519_v43, %v976_v20  ;;  %vm996_vm6 = vcmp.lt.s32.totalorder %v974_v11, 4  ;;  %v1080_v51 = vsub.s32 32, %v1079_v17 }
 0x22b   : > { %5115 = vmatmul.mubr.msk.bf16.gmra.mrb[12].mxu0 %vm810_vm1, %v5869_v61  ;;  %v980_v46 = vor.u32 %v979_v34, %v978_v22  ;;  %v983_v48 = vor.u32 %v982_v35, %v981_v24  ;;  %v986_v50 = vor.u32 %v985_v39, %v984_v26  ;;  %vm995_vm7 = vcmp.lt.s32.totalorder %v974_v11, 3 }
 0x22c   : > { %v989_v52 = vor.u32 %v988_v41, %v987_v28  ;;  %v992_v53 = vor.u32 %v991_v45, %v990_v30  ;;  %v1082_v54 = vshll.u32 %v8521_v21, %v1079_v17  ;;  %5124 = vmatprep.mubr.msk.bf16.mxu0 %vm810_vm1, %v5854_v58  ;;  %v1085_v3 = vshll.u32 %v8510_v23, %v1079_v17 }
 0x22d   : > { %v997_v55 = vsel %vm993_vm4, %v977_v32, %v980_v46  ;;  %v998_v56 = vsel %vm996_vm6, %v986_v50, 2102212464  ;;  %v1001_v57 = vsel %vm993_vm4, %v980_v46, %v983_v48  ;;  %v1005_v61 = vsel %vm993_vm4, %v983_v48, %v986_v50 }
 0x22e   : > { %v999_v63 = vsel %vm995_vm7, %v983_v48, %v998_v56  ;;  %v1002_v0 = vsel %vm996_vm6, %v989_v52, 920167782  ;;  %v1006_v1 = vsel %vm996_vm6, %v992_v53, 1326507024  ;;  %v1081_v12 = vshrl.u32 %v8521_v21, %v1080_v51 }
 0x22f   : > { %v1003_v6 = vsel %vm995_vm7, %v986_v50, %v1002_v0  ;;  %v1007_v8 = vsel %vm995_vm7, %v989_v52, %v1006_v1  ;;  %v1083_v58 = vshrl.u32 %v8510_v23, %v1080_v51  ;;  %v1000_v14 = vsel %vm994_vm5, %v997_v55, %v999_v63  ;;  %v5992_v50 = vpop.f32.mrb[24].mxu1 }
 0x230   : > { %v1004_v20 = vsel %vm994_vm5, %v1001_v57, %v1003_v6  ;;  %v1008_v22 = vsel %vm994_vm5, %v1005_v61, %v1007_v8  ;;  %v1086_v24 = vshrl.u32 %v8512_v25, %v1080_v51  ;;  %v1088_v39 = vshll.u32 %v8512_v25, %v1079_v17 }
 0x231   : > { %v5978_v26 = vmul.u32.u64.low %v5933_v9, %v1008_v22  ;;  %v5979_v28 = vmul.u32.u64.high %v5933_v9, %v1008_v22, %v5978_v26  ;;  %v5982_v30 = vmul.u32.u64.low %v5933_v9, %v1004_v20  ;;  %v5983_v32 = vmul.u32.u64.high %v5933_v9, %v1004_v20, %v5982_v30 }
 0x232   : > { %v1084_v34 = vor.u32 %v1083_v58, %v1082_v54  ;;  %v1087_v35 = vor.u32 %v1086_v24, %v1085_v3  ;;  %v1089_v41 = vshrl.u32 %v8517_v27, %v1080_v51  ;;  %v1091_v11 = vshll.u32 %v8517_v27, %v1079_v17 }
 0x233   : > { %v1092_v45 = vshrl.u32 %v8514_v29, %v1080_v51  ;;  %v1094_v46 = vshll.u32 %v8514_v29, %v1079_v17  ;;  %v1095_v48 = vshrl.u32 %v8519_v43, %v1080_v51  ;;  %v1016_v52 = vmul.u32 %v5933_v9, %v1000_v14  ;;  %v6001_v17 = vpop.f32.mrb[25].mxu1 }
 0x234   : > { %v1090_v53 = vor.u32 %v1089_v41, %v1088_v39  ;;  %vm1097_vm8 = vcmp.lt.s32.totalorder %v5951_v31, 1  ;;  %vm1098_vm9 = vcmp.lt.s32.totalorder %v5951_v31, 2  ;;  %vm1018_vm10 = vc.u32 %v5979_v28, %v5982_v30 }
 0x235   : > { %v1019_v54 = vadd.s32 1, %v5983_v32  ;;  %v1093_v55 = vor.u32 %v1092_v45, %v1091_v11  ;;  %vm1099_vm11 = vcmp.lt.s32.totalorder %v5951_v31, 3  ;;  %v1096_v51 = vor.u32 %v1095_v48, %v1094_v46 }
 0x236   : > { %vm1100_vm12 = vcmp.lt.s32.totalorder %v5951_v31, 4  ;;  %v1101_v56 = vsel %vm1097_vm8, %v1081_v12, %v1084_v34  ;;  %v1105_v9 = vsel %vm1097_vm8, %v1084_v34, %v1087_v35  ;;  %v1109_v0 = vsel %vm1097_vm8, %v1087_v35, %v1090_v53 }
 0x237   : > { %v1020_v57 = vsel %vm1018_vm10, %v1019_v54, %v5983_v32  ;;  %v1102_v61 = vsel %vm1100_vm12, %v1090_v53, 2102212464  ;;  %v1106_v63 = vsel %vm1100_vm12, %v1093_v55, 920167782  ;;  %v1110_v8 = vsel %vm1100_vm12, %v1096_v51, 1326507024 }
 0x238   : > { %v1021_v1 = vadd.s32 %v1020_v57, %v1016_v52  ;;  %v1103_v3 = vsel %vm1099_vm11, %v1087_v35, %v1102_v61  ;;  %v1107_v6 = vsel %vm1099_vm11, %v1090_v53, %v1106_v63  ;;  %v1111_v14 = vsel %vm1099_vm11, %v1093_v55, %v1110_v8 }
 0x239   : > { %v1104_v58 = vsel %vm1098_vm9, %v1101_v56, %v1103_v3  ;;  %v1108_v12 = vsel %vm1098_vm9, %v1105_v9, %v1107_v6  ;;  %v1112_v22 = vsel %vm1098_vm9, %v1109_v0, %v1111_v14  ;;  %v1285_v35 = vsel %vm1284_vm13, %v5943_v19, 0 }
 0x23a   : > { %v1022_v20 = vadd.s32 536870912, %v1021_v1  ;;  %v6019_v24 = vmul.u32.u64.low %v5937_v15, %v1108_v12  ;;  %v6020_v26 = vmul.u32.u64.high %v5937_v15, %v1108_v12, %v6019_v24  ;;  %v1281_v41 = vor.u32 8388608, %v5941_v59 }
 0x23b   : > { %v6024_v32 = vmul.u32.u64.low %v5937_v15, %v1112_v22  ;;  %v6025_v34 = vmul.u32.u64.high %v5937_v15, %v1112_v22, %v6024_v32  ;;  %v1287_v11 = vand.u32 31, %v1285_v35  ;;  %v1120_v45 = vmul.u32 %v5937_v15, %v1104_v58 }
 0x23c   : > { %v6028_v39 = vshrl.u32 %v1022_v20, 30  ;;  %v1123_v46 = vadd.s32 1, %v6020_v26  ;;  %v1381_v52 = vshrl.u32 %v1380_v60, 23  ;;  %v6041_v55 = vshll.u32 %v1281_v41, 8 }
 0x23d   : > { %v1288_v48 = vsub.s32 32, %v1287_v11  ;;  %vm1122_vm14 = vc.u32 %v6025_v34, %v6019_v24  ;;  %v1290_v19 = vshll.u32 %v8521_v21, %v1287_v11  ;;  %v1293_v59 = vshll.u32 %v8510_v23, %v1287_v11 }
 0x23e   : > { %v1024_v31 = vshll.u32 %v6028_v39, 30  ;;  %v1124_v54 = vsel %vm1122_vm14, %v1123_v46, %v6020_v26  ;;  %v1286_v51 = vshrl.u32 %v1285_v35, 5  ;;  %v1296_v60 = vshll.u32 %v8512_v25, %v1287_v11 }
 0x23f   : > { %v1125_v15 = vadd.s32 %v1124_v54, %v1120_v45  ;;  %v1291_v56 = vshrl.u32 %v8510_v23, %v1288_v48  ;;  %v1294_v9 = vshrl.u32 %v8512_v25, %v1288_v48  ;;  %v1297_v61 = vshrl.u32 %v8517_v27, %v1288_v48 }
 0x240   : > { %v1025_v53 = vsub.s32 %v1021_v1, %v1024_v31  ;;  %v4737_v63 = vadd.s32 4294967169, %v1381_v52  ;;  %v1289_v1 = vshrl.u32 %v8521_v21, %v1288_v48  ;;  %v1299_v6 = vshll.u32 %v8517_v27, %v1287_v11 }
 0x241   : > { %v1126_v0 = vadd.s32 536870912, %v1125_v15  ;;  %v1292_v3 = vor.u32 %v1291_v56, %v1290_v19  ;;  %v1295_v58 = vor.u32 %v1294_v9, %v1293_v59  ;;  %v1298_v12 = vor.u32 %v1297_v61, %v1296_v60 }
 0x242   : > { %v1027_v57 = vsub.s32 0, %v1025_v53  ;;  %v1300_v14 = vshrl.u32 %v8514_v29, %v1288_v48  ;;  %v1302_v22 = vshll.u32 %v8514_v29, %v1287_v11  ;;  %v1303_v26 = vshrl.u32 %v8519_v43, %v1288_v48 }
 0x243   : > { %v6050_v20 = vshrl.u32 %v1126_v0, 30  ;;  %vm1305_vm15 = vcmp.lt.s32.totalorder %v1286_v51, 1  ;;  %vm1306_vm0 = vcmp.lt.s32.totalorder %v1286_v51, 2  ;;  %vm1307_vm2 = vcmp.lt.s32.totalorder %v1286_v51, 3 }
 0x244   : > { %v4722_v8 = vmin.u32 %v1027_v57, %v1025_v53  ;;  %v1301_v35 = vor.u32 %v1300_v14, %v1299_v6  ;;  %v1304_v45 = vor.u32 %v1303_v26, %v1302_v22  ;;  %vm1308_vm3 = vcmp.lt.s32.totalorder %v1286_v51, 4 }
 0x245   : > { %v1128_v41 = vshll.u32 %v6050_v20, 30  ;;  %v1309_v31 = vsel %vm1305_vm15, %v1289_v1, %v1292_v3  ;;  %v1310_v52 = vsel %vm1308_vm3, %v1298_v12, 2102212464  ;;  %v1313_v19 = vsel %vm1305_vm15, %v1292_v3, %v1295_v58 }
 0x246   : > { %v1029_v32 = vclz %v4722_v8  ;;  %v1314_v54 = vsel %vm1308_vm3, %v1301_v35, 920167782  ;;  %v1311_v11 = vsel %vm1307_vm2, %v1295_v58, %v1310_v52  ;;  %v1317_v56 = vsel %vm1305_vm15, %v1295_v58, %v1298_v12  ;;  %v6069_v58 = vpop.f32.mrb[26].mxu1 }
 0x247   : > { %v6057_v59 = vsub.s32 %v1125_v15, %v1128_v41  ;;  %v1315_v48 = vsel %vm1307_vm2, %v1298_v12, %v1314_v54  ;;  %v1017_v9 = vadd.s32 %v5982_v30, %v5979_v28  ;;  %v1312_v57 = vsel %vm1306_vm0, %v1309_v31, %v1311_v11 }
 0x248   : > { %v4723_v46 = vadd.s32 4294967294, %v1029_v32  ;;  %v1318_v60 = vsel %vm1308_vm3, %v1304_v45, 1326507024  ;;  %v1316_v1 = vsel %vm1306_vm0, %v1313_v19, %v1315_v48  ;;  %v1387_v22 = vadd.s32 1, %v4737_v63 }
 0x249   : > { %v1131_v0 = vsub.s32 0, %v6057_v59  ;;  %v1319_v15 = vsel %vm1307_vm2, %v1301_v35, %v1318_v60  ;;  %v6077_v41 = vmul.u32.u64.low %v6041_v55, %v1316_v1  ;;  %v6078_v45 = vmul.u32.u64.high %v6041_v55, %v1316_v1, %v6077_v41 }
 0x24a   : > { %vm4724_vm4 = vcmp.lt.s32.totalorder %v4723_v46, 0  ;;  %v1320_v14 = vsel %vm1306_vm0, %v1317_v56, %v1319_v15  ;;  %vm1388_vm5 = vcmp.gt.s32.totalorder %v1387_v22, 0  ;;  %v8507_v11 = vand.u32 2147483647, %v5925_v5 }
 0x24b   : > { %v1032_v61 = vsel %vm4724_vm4, 0, %v4723_v46  ;;  %v4726_v28 = vmin.u32 %v1131_v0, %v6057_v59  ;;  %v6073_v30 = vmul.u32.u64.low %v6041_v55, %v1320_v14  ;;  %v6074_v12 = vmul.u32.u64.high %v6041_v55, %v1320_v14, %v6073_v30 }
 0x24c   : > { %v1033_v3 = vsub.s32 32, %v1032_v61  ;;  %v1034_v6 = vshll.u32 %v1025_v53, %v1032_v61  ;;  %v1037_v8 = vsub.s32 4294967266, %v1032_v61  ;;  %v1389_v35 = vsel %vm1388_vm5, %v1387_v22, 0 }
 0x24d   : > { %v1133_v31 = vclz %v4726_v28  ;;  %v1328_v46 = vmul.u32 %v6041_v55, %v1312_v57  ;;  %vm1330_vm6 = vc.u32 %v6074_v12, %v6077_v41  ;;  %v1331_v63 = vadd.s32 1, %v6078_v45 }
 0x24e   : > { %v1035_v26 = vshrl.u32 %v1017_v9, %v1033_v3  ;;  %v1038_v32 = vadd.s32 127, %v1037_v8  ;;  %v1391_v54 = vand.u32 31, %v1389_v35  ;;  %vm6089_vm7 = vcmp.le.f32.partialorder %v961_v44, 0.7853982 }
 0x24f   : > { %v1332_v56 = vsel %vm1330_vm6, %v1331_v63, %v6078_v45  ;;  %v4727_v60 = vadd.s32 4294967294, %v1133_v31  ;;  %vm963_vm8 = vcmp.lt.s32.totalorder %v5898_v40, 0  ;;  %v1384_v1 = vand.u32 8388607, %v8507_v11 }
 0x250   : > { %v1036_v53 = vor.u32 %v1035_v26, %v1034_v6  ;;  %v1039_v51 = vshll.u32 %v1038_v32, 23  ;;  %v1392_v9 = vsub.s32 32, %v1391_v54  ;;  %v1333_v61 = vadd.s32 %v1332_v56, %v1328_v46 }
 0x251   : > { %v1390_v15 = vshrl.u32 %v1389_v35, 5  ;;  %v1394_v3 = vshll.u32 %v8521_v21, %v1391_v54  ;;  %v1397_v14 = vshll.u32 %v8510_v23, %v1391_v54  ;;  %vm4728_vm9 = vcmp.lt.s32.totalorder %v4727_v60, 0 }
 0x252   : > { %v1040_v52 = vor.u32 4788187, %v1039_v51  ;;  %v1043_v19 = vcvt.s32.f32 %v1036_v53  ;;  %v1334_v0 = vadd.s32 536870912, %v1333_v61  ;;  %v1395_v8 = vshrl.u32 %v8510_v23, %v1392_v9 }
 0x253   : > { %v1398_v44 = vshrl.u32 %v8512_v25, %v1392_v9  ;;  %v1400_v30 = vshll.u32 %v8512_v25, %v1391_v54  ;;  %v1401_v22 = vshrl.u32 %v8517_v27, %v1392_v9  ;;  %v1403_v32 = vshll.u32 %v8517_v27, %v1391_v54 }
 0x254   : > { %v1041_v48 = vand.u32 2147483647, %v1040_v52  ;;  %v6100_v28 = vshrl.u32 %v1334_v0, 30  ;;  %v1404_v45 = vshrl.u32 %v8514_v29, %v1392_v9  ;;  %v1385_v35 = vor.u32 8388608, %v1384_v1 }
 0x255   : > { %vm1409_vm10 = vcmp.lt.s32.totalorder %v1390_v15, 1  ;;  %v1136_v31 = vsel %vm4728_vm9, 0, %v4727_v60  ;;  %v1393_v46 = vshrl.u32 %v8521_v21, %v1392_v9  ;;  %v1396_v52 = vor.u32 %v1395_v8, %v1394_v3 }
 0x256   : > { %v1044_v57 = vmul.f32 %v1043_v19, %v1041_v48  ;;  %v1336_v51 = vshll.u32 %v6100_v28, 30  ;;  %v1399_v19 = vor.u32 %v1398_v44, %v1397_v14  ;;  %v1402_v48 = vor.u32 %v1401_v22, %v1400_v30 }
 0x257   : > { %v1405_v56 = vor.u32 %v1404_v45, %v1403_v32  ;;  %v1121_v0 = vadd.s32 %v6019_v24, %v6025_v34  ;;  %vm1412_vm11 = vcmp.lt.s32.totalorder %v1390_v15, 4  ;;  %v6123_v1 = vadd.f32 %v5919_v62, %v5889_v33 }
 0x258   : > { %v1045_v6 = vxor.u32 2147483648, %v1044_v57  ;;  %v6115_v63 = vsub.s32 %v1333_v61, %v1336_v51  ;;  %v1141_v60 = vsub.s32 4294967266, %v1136_v31  ;;  %vm1411_vm12 = vcmp.lt.s32.totalorder %v1390_v15, 3 }
 0x259   : > { %8656 = vst [vmem:[#allocation16_spill] sm:$0xff] %v6123_v1  ;;  %v1414_v61 = vsel %vm1412_vm11, %v1402_v48, 2102212464  ;;  %vm1410_vm13 = vcmp.lt.s32.totalorder %v1390_v15, 2  ;;  %v1425_v14 = vshll.u32 %v1385_v35, 8  ;;  %v1137_v44 = vsub.s32 32, %v1136_v31 }
 0x25a   : > { %v1046_v26 = vsel %vm963_vm8, %v1045_v6, %v1044_v57  ;;  %v1406_v57 = vshll.u32 %v8514_v29, %v1391_v54  ;;  %v1407_v6 = vshrl.u32 %v8519_v43, %v1392_v9  ;;  %v1339_v3 = vsub.s32 0, %v6115_v63 }
 0x25b   : > { %v6111_v53 = vsel %vm6089_vm7, %v5898_v40, %v1046_v26  ;;  %v1417_v54 = vsel %vm1409_vm10, %v1396_v52, %v1399_v19  ;;  %v1413_v34 = vsel %vm1409_vm10, %v1393_v46, %v1396_v52  ;;  %v1418_v9 = vsel %vm1412_vm11, %v1405_v56, 920167782 }
 0x25c   : > { %v1408_v8 = vor.u32 %v1407_v6, %v1406_v57  ;;  %v4734_v24 = vmin.u32 %v1339_v3, %v6115_v63  ;;  %v1415_v62 = vsel %vm1411_vm12, %v1399_v19, %v1414_v61  ;;  %v1419_v30 = vsel %vm1411_vm12, %v1402_v48, %v1418_v9  ;;  %v6137_v57 = vpop.f32.mrb[27].mxu1 }
 0x25d   : > { %v1421_v22 = vsel %vm1409_vm10, %v1399_v19, %v1402_v48  ;;  %v1142_v32 = vadd.s32 127, %v1141_v60  ;;  %v1420_v51 = vsel %vm1410_vm13, %v1417_v54, %v1419_v30  ;;  %v6146_v3 = vadd.f32 %v5921_v2, %v5891_v36 }
 0x25e   : > { %v1422_v26 = vsel %vm1412_vm11, %v1408_v8, 1326507024  ;;  %v1341_v45 = vclz %v4734_v24  ;;  %v6140_v52 = vmul.u32.u64.low %v1425_v14, %v1420_v51  ;;  %v6141_v6 = vmul.u32.u64.high %v1425_v14, %v1420_v51, %v6140_v52 }
 0x25f   : > { %v1423_v35 = vsel %vm1411_vm12, %v1405_v56, %v1422_v26  ;;  %8657 = vst [vmem:[#allocation17_spill] sm:$0xff] %v6146_v3  ;;  %v1416_v19 = vsel %vm1410_vm13, %v1413_v34, %v1415_v62  ;;  %v1588_v61 = vand.u32 2139095040, %v6123_v1  ;;  %v1138_v56 = vshll.u32 %v6057_v59, %v1136_v31 }
 0x260   : > { %v1424_v46 = vsel %vm1410_vm13, %v1421_v22, %v1423_v35  ;;  %v1139_v8 = vshrl.u32 %v1121_v0, %v1137_v44  ;;  %v1143_v54 = vshll.u32 %v1142_v32, 23  ;;  %v4735_v24 = vadd.s32 4294967294, %v1341_v45 }
 0x261   : > { %v6149_v48 = vmul.u32.u64.low %v1425_v14, %v1424_v46  ;;  %v6150_v60 = vmul.u32.u64.high %v1425_v14, %v1424_v46, %v6149_v48  ;;  %v1432_v9 = vmul.u32 %v1425_v14, %v1416_v19  ;;  %v1435_v30 = vadd.s32 1, %v6141_v6 }
 0x262   : > { %v1589_v22 = vshrl.u32 %v1588_v61, 23  ;;  %v1692_v26 = vand.u32 2139095040, %v6146_v3  ;;  %v8506_v2 = vand.u32 2147483647, %v6123_v1  ;;  %v6159_v34 = vor.u32 %v1139_v8, %v1138_v56 }
 0x263   : > { %vm1434_vm14 = vc.u32 %v6150_v60, %v6140_v52  ;;  %v6161_v62 = vor.u32 4788187, %v1143_v54  ;;  %vm4736_vm15 = vcmp.lt.s32.totalorder %v4735_v24, 0  ;;  %v1329_v44 = vadd.s32 %v6077_v41, %v6074_v12 }
 0x264   : > { %v4745_v15 = vadd.s32 4294967169, %v1589_v22  ;;  %v1436_v59 = vsel %vm1434_vm14, %v1435_v30, %v6141_v6  ;;  %v1693_v14 = vshrl.u32 %v1692_v26, 23  ;;  %v6166_v32 = vsel %vm4736_vm15, 0, %v4735_v24 }
 0x265   : > { %v1437_v31 = vadd.s32 %v1436_v59, %v1432_v9  ;;  %v1592_v46 = vand.u32 8388607, %v8506_v2  ;;  %v8516_v61 = vand.u32 2147483647, %v6146_v3  ;;  %v1345_v12 = vsub.s32 32, %v6166_v32 }
 0x266   : > { %v1595_v0 = vadd.s32 1, %v4745_v15  ;;  %v4749_v56 = vadd.s32 4294967169, %v1693_v14  ;;  %v1346_v41 = vshll.u32 %v6115_v63, %v6166_v32  ;;  %v1349_v8 = vsub.s32 4294967266, %v6166_v32 }
 0x267   : > { %v1438_v45 = vadd.s32 536870912, %v1437_v31  ;;  %v1593_v26 = vor.u32 8388608, %v1592_v46  ;;  %vm1067_vm12 = vcmp.lt.s32.totalorder %v5902_v42, 0  ;;  %5533 = vcosq.f32 %v6111_v53 }
 0x268   : > { %vm1596_vm0 = vcmp.gt.s32.totalorder %v1595_v0, 0  ;;  %v1350_v51 = vadd.s32 127, %v1349_v8  ;;  %v1359_v55 = vsub.s32 4, %v6100_v28  ;;  %5535 = vsinq.f32 %v6111_v53 }
 0x269   : > { %v1597_v19 = vsel %vm1596_vm0, %v1595_v0, 0  ;;  %v6172_v48 = vshrl.u32 %v1438_v45, 30  ;;  %v1699_v45 = vadd.s32 1, %v4749_v56 }
 0x26a   : > { %v1599_v6 = vand.u32 31, %v1597_v19  ;;  %v1598_v54 = vshrl.u32 %v1597_v19, 5 }
 0x26b   : > { %8658 = vst [vmem:[#allocation18_spill] sm:$0xff] %v6172_v48  ;;  %v1440_v24 = vshll.u32 %v6172_v48, 30  ;;  %vm1700_vm6 = vcmp.gt.s32.totalorder %v1699_v45, 0 }
 0x26c   : > { %v1600_v9 = vsub.s32 32, %v1599_v6  ;;  %v1602_v30 = vshll.u32 %v8521_v21, %v1599_v6  ;;  %v1605_v22 = vshll.u32 %v8510_v23, %v1599_v6  ;;  %v1608_v15 = vshll.u32 %v8512_v25, %v1599_v6 }
 0x26d   : > { %v1611_v59 = vshll.u32 %v8517_v27, %v1599_v6  ;;  %v1614_v0 = vshll.u32 %v8514_v29, %v1599_v6  ;;  %v6185_v14 = vsub.s32 %v1437_v31, %v1440_v24  ;;  %vm1617_vm2 = vcmp.lt.s32.totalorder %v1598_v54, 1 }
 0x26e   : > { %v1603_v63 = vshrl.u32 %v8510_v23, %v1600_v9  ;;  %v1606_v32 = vshrl.u32 %v8512_v25, %v1600_v9  ;;  %v1601_v19 = vshrl.u32 %v8521_v21, %v1600_v9  ;;  %v1609_v2 = vshrl.u32 %v8517_v27, %v1600_v9 }
 0x26f   : > { %v1612_v11 = vshrl.u32 %v8514_v29, %v1600_v9  ;;  %v1615_v46 = vshrl.u32 %v8519_v43, %v1600_v9  ;;  %v1443_v4 = vsub.s32 0, %v6185_v14  ;;  %v1347_v31 = vshrl.u32 %v1329_v44, %v1345_v12 }
 0x270   : > { %v1604_v47 = vor.u32 %v1603_v63, %v1602_v30  ;;  %v1607_v35 = vor.u32 %v1606_v32, %v1605_v22  ;;  %v1610_v6 = vor.u32 %v1609_v2, %v1608_v15  ;;  %vm1619_vm3 = vcmp.lt.s32.totalorder %v1598_v54, 3 }
 0x271   : > { %v1613_v24 = vor.u32 %v1612_v11, %v1611_v59  ;;  %v1616_v23 = vor.u32 %v1615_v46, %v1614_v0  ;;  %v4738_v56 = vmin.u32 %v1443_v4, %v6185_v14  ;;  %v1633_v25 = vshll.u32 %v1593_v26, 8 }
 0x272   : > { %vm1618_vm4 = vcmp.lt.s32.totalorder %v1598_v54, 2  ;;  %vm1620_vm5 = vcmp.lt.s32.totalorder %v1598_v54, 4  ;;  %v1625_v29 = vsel %vm1617_vm2, %v1604_v47, %v1607_v35  ;;  %v1696_v9 = vand.u32 8388607, %v8516_v61 }
 0x273   : > { %v1621_v30 = vsel %vm1617_vm2, %v1601_v19, %v1604_v47  ;;  %v1622_v22 = vsel %vm1620_vm5, %v1610_v6, 2102212464  ;;  %v1626_v63 = vsel %vm1620_vm5, %v1613_v24, 920167782  ;;  %v1629_v4 = vsel %vm1617_vm2, %v1607_v35, %v1610_v6  ;;  %v6210_v19 = vpop.f32.mrb[28].mxu1 }
 0x274   : > { %v1623_v11 = vsel %vm1619_vm3, %v1607_v35, %v1622_v22  ;;  %v1627_v2 = vsel %vm1619_vm3, %v1610_v6, %v1626_v63  ;;  %v1630_v44 = vsel %vm1620_vm5, %v1616_v23, 1326507024  ;;  %v1351_v12 = vshll.u32 %v1350_v51, 23 }
 0x275   : > { %v1445_v8 = vclz %v4738_v56  ;;  %v1628_v26 = vsel %vm1618_vm4, %v1625_v29, %v1627_v2  ;;  %v1631_v15 = vsel %vm1619_vm3, %v1613_v24, %v1630_v44  ;;  %v1624_v59 = vsel %vm1618_vm4, %v1621_v30, %v1623_v11 }
 0x276   : > { %v1632_v47 = vsel %vm1618_vm4, %v1629_v4, %v1631_v15  ;;  %v6206_v0 = vmul.u32.u64.low %v1633_v25, %v1628_v26  ;;  %v6207_v32 = vmul.u32.u64.high %v1633_v25, %v1628_v26, %v6206_v0  ;;  %v6212_v46 = vor.u32 %v1347_v31, %v1346_v41 }
 0x277   : > { %v6214_v35 = vmul.u32.u64.low %v1633_v25, %v1632_v47  ;;  %v6215_v23 = vmul.u32.u64.high %v1633_v25, %v1632_v47, %v6214_v35  ;;  %v1701_v51 = vsel %vm1700_vm6, %v1699_v45, 0  ;;  %v6220_v24 = vadd.f32 %v5929_v7, %v5889_v33 }
 0x278   : > { %v1703_v6 = vand.u32 31, %v1701_v51  ;;  %v8660_v54 = vand.u32 2147483647, %v6161_v62  ;;  %v8661_v56 = vcvt.s32.f32 %v6159_v34  ;;  %v6228_v22 = vor.u32 4788187, %v1351_v12 }
 0x279   : > { %8659 = vst [vmem:[#allocation19_spill] sm:$0xff] %v6220_v24  ;;  %v1640_v41 = vmul.u32 %v1633_v25, %v1624_v59  ;;  %v1697_v31 = vor.u32 8388608, %v1696_v9  ;;  %v6232_v45 = vadd.s32 %v6140_v52, %v6150_v60  ;;  %v4739_v63 = vadd.s32 4294967294, %v1445_v8 }
 0x27a   : > { %v6226_v30 = vmul.f32 %v8661_v56, %v8660_v54  ;;  %v1643_v11 = vadd.s32 1, %v6207_v32  ;;  %v1704_v2 = vsub.s32 32, %v1703_v6  ;;  %v1355_v7 = vcvt.s32.f32 %v6212_v46 }
 0x27b   : > { %vm1642_vm9 = vc.u32 %v6215_v23, %v6206_v0  ;;  %v1706_v34 = vshll.u32 %v8521_v21, %v1703_v6  ;;  %v8662_v62 = vmov 2475754826   ;;  %v1702_v9 = vshrl.u32 %v1701_v51, 5 }
 0x27c   : > { %v1709_v4 = vshll.u32 %v8662_v62, %v1703_v6  ;;  %v1644_v25 = vsel %vm1642_vm9, %v1643_v11, %v6207_v32  ;;  %v1707_v44 = vshrl.u32 %v8662_v62, %v1704_v2  ;;  %v8663_v52 = vmov 2131351028  }
 0x27d   : > { %v1710_v60 = vshrl.u32 %v8663_v52, %v1704_v2  ;;  %v1353_v12 = vand.u32 2147483647, %v6228_v22  ;;  %v1645_v8 = vadd.s32 %v1644_v25, %v1640_v41  ;;  %v1712_v26 = vshll.u32 %v8663_v52, %v1703_v6 }
 0x27e   : > { %v6245_v15 = vshll.u32 %v1697_v31, 8  ;;  %vm4740_vm10 = vcmp.lt.s32.totalorder %v4739_v63, 0  ;;  %v1713_v59 = vshrl.u32 %v8517_v27, %v1704_v2  ;;  %v1715_v47 = vshll.u32 %v8517_v27, %v1703_v6 }
 0x27f   : > { %v1900_v46 = vand.u32 2139095040, %v6220_v24  ;;  %v1646_v32 = vadd.s32 536870912, %v1645_v8  ;;  %v1708_v35 = vor.u32 %v1707_v44, %v1706_v34  ;;  %v1711_v51 = vor.u32 %v1710_v60, %v1709_v4  ;;  %v6257_v4 = vpop.f32.mrb[29].mxu1 }
 0x280   : > { %v8664_v54 = vmov 920167782   ;;  %v1714_v11 = vor.u32 %v1713_v59, %v1712_v26  ;;  %v1719_v41 = vshrl.u32 %v8519_v43, %v1704_v2  ;;  %vm1721_vm11 = vcmp.lt.s32.totalorder %v1702_v9, 1 }
 0x281   : > { %v1716_v56 = vshrl.u32 %v8664_v54, %v1704_v2  ;;  %v1718_v22 = vshll.u32 %v8664_v54, %v1703_v6  ;;  %v1448_v31 = vsel %vm4740_vm10, 0, %v4739_v63  ;;  %v6253_v25 = vshrl.u32 %v1646_v32, 30 }
 0x282   : > { %v1705_v61 = vshrl.u32 %v8521_v21, %v1704_v2  ;;  %vm1723_vm13 = vcmp.lt.s32.totalorder %v1702_v9, 3  ;;  %vm1724_vm14 = vcmp.lt.s32.totalorder %v1702_v9, 4  ;;  %v1901_v34 = vshrl.u32 %v1900_v46, 23 }
 0x283   : > { %8665 = vst [vmem:[#allocation20_spill] sm:$0xff] %v6253_v25  ;;  %v1717_v29 = vor.u32 %v1716_v56, %v1715_v47  ;;  %v1720_v27 = vor.u32 %v1719_v41, %v1718_v22  ;;  %v1648_v44 = vshll.u32 %v6253_v25, 30  ;;  %vm1722_vm15 = vcmp.lt.s32.totalorder %v1702_v9, 2 }
 0x284   : > { %v1726_v6 = vsel %vm1724_vm14, %v1714_v11, 2102212464  ;;  %v1729_v60 = vsel %vm1721_vm11, %v1708_v35, %v1711_v51  ;;  %v1453_v63 = vsub.s32 4294967266, %v1448_v31  ;;  %v1733_v59 = vsel %vm1721_vm11, %v1711_v51, %v1714_v11 }
 0x285   : > { %v1730_v26 = vsel %vm1724_vm14, %v1717_v29, 920167782  ;;  %v1734_v2 = vsel %vm1724_vm14, %v1720_v27, 1326507024  ;;  %v1449_v47 = vsub.s32 32, %v1448_v31  ;;  %v6262_v32 = vsub.s32 %v1645_v8, %v1648_v44 }
 0x286   : > { %v1725_v56 = vsel %vm1721_vm11, %v1705_v61, %v1708_v35  ;;  %v1731_v46 = vsel %vm1723_vm13, %v1714_v11, %v1730_v26  ;;  %v1727_v22 = vsel %vm1723_vm13, %v1711_v51, %v1726_v6  ;;  %v1735_v43 = vsel %vm1723_vm13, %v1717_v29, %v1734_v2 }
 0x287   : > { %v1732_v41 = vsel %vm1722_vm15, %v1729_v60, %v1731_v46  ;;  %v4757_v21 = vadd.s32 4294967169, %v1901_v34  ;;  %v1149_v37 = vxor.u32 2147483648, %v6226_v30  ;;  %v1651_v38 = vsub.s32 0, %v6262_v32 }
 0x288   : > { %v1736_v27 = vsel %vm1722_vm15, %v1733_v59, %v1735_v43  ;;  %v8525_v8 = vand.u32 2147483647, %v6220_v24  ;;  %v1454_v44 = vadd.s32 127, %v1453_v63  ;;  %v1728_v6 = vsel %vm1722_vm15, %v1725_v56, %v1727_v22 }
 0x289   : > { %v6274_v61 = vmul.u32.u64.low %v6245_v15, %v1736_v27  ;;  %v6275_v35 = vmul.u32.u64.high %v6245_v15, %v1736_v27, %v6274_v61  ;;  %v1907_v11 = vadd.s32 1, %v4757_v21  ;;  %v4746_v51 = vmin.u32 %v1651_v38, %v6262_v32 }
 0x28a   : > { %v6280_v29 = vmul.u32.u64.low %v6245_v15, %v1732_v41  ;;  %v6281_v34 = vmul.u32.u64.high %v6245_v15, %v1732_v41, %v6280_v29  ;;  %v6284_v60 = vmul.f32 %v1355_v7, %v1353_v12  ;;  %v1450_v43 = vshll.u32 %v6185_v14, %v1448_v31 }
 0x28b   : > { %v1451_v63 = vshrl.u32 %v6232_v45, %v1449_v47  ;;  %vm1908_vm0 = vcmp.gt.s32.totalorder %v1907_v11, 0  ;;  %v1653_v26 = vclz %v4746_v51  ;;  %v8666_v21 = vsub.s32 4, %v6028_v39 }
 0x28c   : > { %v1909_v59 = vsel %vm1908_vm0, %v1907_v11, 0  ;;  %v1744_v9 = vmul.u32 %v6245_v15, %v1728_v6  ;;  %vm1746_vm2 = vc.u32 %v6275_v35, %v6280_v29  ;;  %v6301_v14 = vsel %vm1067_vm12, %v1149_v37, %v6226_v30 }
 0x28d   : > { %v6293_v38 = vsel %vm963_vm8, %v8666_v21, %v6028_v39  ;;  %v1911_v7 = vand.u32 31, %v1909_v59  ;;  %v1455_v45 = vshll.u32 %v1454_v44, 23  ;;  %v1747_v12 = vadd.s32 1, %v6281_v34 }
 0x28e   : > { %v1904_v31 = vand.u32 8388607, %v8525_v8  ;;  %v1452_v2 = vor.u32 %v1451_v63, %v1450_v43  ;;  %v4747_v47 = vadd.s32 4294967294, %v1653_v26  ;;  %v1910_v46 = vshrl.u32 %v1909_v59, 5 }
 0x28f   : > { %v1912_v15 = vsub.s32 32, %v1911_v7  ;;  %v1748_v56 = vsel %vm1746_vm2, %v1747_v12, %v6281_v34  ;;  %v8667_v22 = vmov 683565275   ;;  %v1917_v27 = vshll.u32 %v8662_v62, %v1911_v7 }
 0x290   : > { %v1914_v41 = vshll.u32 %v8667_v22, %v1911_v7  ;;  %v1749_v37 = vadd.s32 %v1748_v56, %v1744_v9  ;;  %v1920_v44 = vshll.u32 %v8663_v52, %v1911_v7  ;;  %v8668_v61 = vmov 2102212464  }
 0x291   : > { %v1915_v30 = vshrl.u32 %v8662_v62, %v1912_v15  ;;  %v1923_v11 = vshll.u32 %v8668_v61, %v1911_v7  ;;  %v1456_v51 = vor.u32 4788187, %v1455_v45  ;;  %v1905_v6 = vor.u32 8388608, %v1904_v31 }
 0x292   : > { %v1918_v43 = vshrl.u32 %v8663_v52, %v1912_v15  ;;  %v1926_v63 = vshll.u32 %v8664_v54, %v1911_v7  ;;  %vm4748_vm8 = vcmp.lt.s32.totalorder %v4747_v47, 0  ;;  %v1750_v34 = vadd.s32 536870912, %v1749_v37 }
 0x293   : > { %v1921_v26 = vshrl.u32 %v8668_v61, %v1912_v15  ;;  %v1924_v59 = vshrl.u32 %v8664_v54, %v1912_v15  ;;  %v8669_v21 = vand.u32 2147483647, %v5902_v42  ;;  %v8670_v9 = vmov 0 }
 0x294   : > { %vm1275_vm4 = vcmp.lt.s32.totalorder %v5912_v49, 0  ;;  %v1913_v45 = vshrl.u32 %v8667_v22, %v1912_v15  ;;  %v1916_v12 = vor.u32 %v1915_v30, %v1914_v41  ;;  %v1919_v31 = vor.u32 %v1918_v43, %v1917_v27 }
 0x295   : > { %vm6319_vm3 = vcmp.le.f32.partialorder %v8669_v21, 0.7853982  ;;  %v8673_v56 = vmov 1326507024   ;;  %v6326_v8 = vshrl.u32 %v1750_v34, 30  ;;  %v1922_v39 = vor.u32 %v1921_v26, %v1920_v44 }
 0x296   : > { %v8671_v9 = vsel %vm6319_vm3, 4294967295, %v8670_v9  ;;  %v1927_v7 = vshrl.u32 %v8673_v56, %v1912_v15  ;;  %v1925_v16 = vor.u32 %v1924_v59, %v1923_v11  ;;  %vm1929_vm5 = vcmp.lt.s32.totalorder %v1910_v46, 1 }
 0x297   : > { %8672 = vst [vmem:[#allocation21_spill] sm:$0xff] %v8671_v9  ;;  %8674 = vst [vmem:[#allocation22_spill] sm:$0xff] %v6326_v8  ;;  %v1457_v18 = vand.u32 2147483647, %v1456_v51  ;;  %v1459_v25 = vcvt.s32.f32 %v1452_v2  ;;  %v1945_v21 = vshll.u32 %v1905_v6, 8  ;;  %v1656_v40 = vsel %vm4748_vm8, 0, %v4747_v47 }
 0x298   : > { %v1928_v13 = vor.u32 %v1927_v7, %v1926_v63  ;;  %v1752_v48 = vshll.u32 %v6326_v8, 30  ;;  %vm1931_vm6 = vcmp.lt.s32.totalorder %v1910_v46, 3  ;;  %vm1932_vm9 = vcmp.lt.s32.totalorder %v1910_v46, 4  ;;  %v6343_v6 = vpop.f32.mrb[30].mxu1 }
 0x299   : > { %v8675_v41 = vand.u32 2147483647, %v5912_v49  ;;  %vm1930_vm11 = vcmp.lt.s32.totalorder %v1910_v46, 2  ;;  %v1933_v15 = vsel %vm1929_vm5, %v1913_v45, %v1916_v12  ;;  %v1934_v30 = vsel %vm1932_vm9, %v1922_v39, 2102212464 }
 0x29a   : > { %v1937_v2 = vsel %vm1929_vm5, %v1916_v12, %v1919_v31  ;;  %vm8591_vm13 = vcmp.lt.s32.totalorder %v5925_v5, 0  ;;  %v6339_v44 = vsub.s32 %v1749_v37, %v1752_v48  ;;  %v1935_v47 = vsel %vm1931_vm6, %v1919_v31, %v1934_v30 }
 0x29b   : > { %vm6332_vm10 = vcmp.le.f32.partialorder %v8675_v41, 0.7853982  ;;  %v1938_v11 = vsel %vm1932_vm9, %v1925_v16, 920167782  ;;  %v1941_v51 = vsel %vm1929_vm5, %v1919_v31, %v1922_v39  ;;  %v1460_v43 = vmul.f32 %v1459_v25, %v1457_v18 }
 0x29c   : > { %v1939_v63 = vsel %vm1931_vm6, %v1922_v39, %v1938_v11  ;;  %v1942_v34 = vsel %vm1932_vm9, %v1928_v13, 1326507024  ;;  %v6348_v26 = vadd.f32 %v5935_v10, %v5891_v36  ;;  %v1661_v59 = vsub.s32 4294967266, %v1656_v40 }
 0x29d   : > { %v1755_v45 = vsub.s32 0, %v6339_v44  ;;  %v1940_v48 = vsel %vm1930_vm11, %v1937_v2, %v1939_v63  ;;  %v1943_v37 = vsel %vm1931_vm6, %v1925_v16, %v1942_v34  ;;  %v8678_v12 = vand.u32 2147483647, %v5925_v5 }
 0x29e   : > { %v8679_v31 = vmov 0  ;;  %v1936_v18 = vsel %vm1930_vm11, %v1933_v15, %v1935_v47  ;;  %v1944_v13 = vsel %vm1930_vm11, %v1941_v51, %v1943_v37  ;;  %v1641_v39 = vadd.s32 %v6206_v0, %v6215_v23 }
 0x29f   : > { %vm6355_vm14 = vcmp.le.f32.partialorder %v8678_v12, 0.7853982  ;;  %v6361_v25 = vmul.u32.u64.low %v1945_v21, %v1940_v48  ;;  %v6362_v10 = vmul.u32.u64.high %v1945_v21, %v1940_v48, %v6361_v25  ;;  %v1657_v7 = vsub.s32 32, %v1656_v40 }
 0x2a0   : > { %v8680_v31 = vsel %vm6355_vm14, 4294967295, %v8679_v31  ;;  %v6367_v41 = vmul.u32.u64.low %v1945_v21, %v1944_v13  ;;  %v6368_v16 = vmul.u32.u64.high %v1945_v21, %v1944_v13, %v6367_v41  ;;  %v1050_v30 = vsel %vm6089_vm7, 0, %v6293_v38 }
 0x2a1   : > { %8681 = vst [vmem:[#allocation23_spill] sm:$0xff] %v8680_v31  ;;  %v4750_v46 = vmin.u32 %v1755_v45, %v6339_v44  ;;  %v2004_v15 = vand.u32 2139095040, %v6348_v26  ;;  %v1153_v2 = vsel %vm6319_vm3, %v5902_v42, %v6301_v14  ;;  %v8682_v0 = vxor.u32 2147483648, %v6284_v60 }
 0x2a2   : > { %v1952_v38 = vmul.u32 %v1945_v21, %v1936_v18  ;;  %v1461_v47 = vxor.u32 2147483648, %v1460_v43  ;;  %v1662_v11 = vadd.s32 127, %v1661_v59  ;;  %v1955_v51 = vadd.s32 1, %v6362_v10 }
 0x2a3   : > { %v1358_v23 = vsel %vm1275_vm4, %v8682_v0, %v6284_v60  ;;  %v2005_v63 = vshrl.u32 %v2004_v15, 23  ;;  %v1658_v34 = vshll.u32 %v6262_v32, %v1656_v40  ;;  %v1659_v45 = vshrl.u32 %v1641_v39, %v1657_v7 }
 0x2a4   : > { %vm1954_vm7 = vc.u32 %v6368_v16, %v6361_v25  ;;  %v6392_v14 = vadd.f32 %v5992_v50, %v5889_v33  ;;  %v1757_v60 = vclz %v4750_v46  ;;  %v6396_v59 = vadd.s32 3, %v1050_v30  ;;  %v6419_v46 = vpop.eup %5533 }
 0x2a5   : > { %v1956_v21 = vsel %vm1954_vm7, %v1955_v51, %v6362_v10  ;;  %v4761_v48 = vadd.s32 4294967169, %v2005_v63  ;;  %5537 = vcosq.f32 %v1153_v2  ;;  %v1361_v40 = vsel %vm6332_vm10, %v5912_v49, %v1358_v23  ;;  %8685 = vst [vmem:[#allocation26_spill] sm:$0xff] %v6419_v46 }
 0x2a6   : > { %8683 = vst [vmem:[#allocation24_spill] sm:$0xff] %v6392_v14  ;;  %v1957_v32 = vadd.s32 %v1956_v21, %v1952_v38  ;;  %v1462_v37 = vsel %vm8591_vm13, %v1461_v47, %v1460_v43  ;;  %v1663_v12 = vshll.u32 %v1662_v11, 23  ;;  %v8535_v50 = vand.u32 2147483647, %v6348_v26  ;;  %v6438_v21 = vpop.eup %5535 }
 0x2a7   : > { %v2011_v18 = vadd.s32 1, %v4761_v48  ;;  %5539 = vsinq.f32 %v1153_v2  ;;  %v6404_v53 = vor.u32 %v1659_v45, %v1658_v34  ;;  %v2212_v10 = vand.u32 2139095040, %v6392_v14  ;;  %8686 = vst [vmem:[#allocation27_spill] sm:$0xff] %v6438_v21 }
 0x2a8   : > { %v1958_v13 = vadd.s32 536870912, %v1957_v32  ;;  %v6410_v39 = vsel %vm1275_vm4, %v1359_v55, %v6100_v28  ;;  %5541 = vcosq.f32 %v1361_v40  ;;  %v4751_v7 = vadd.s32 4294967294, %v1757_v60 }
 0x2a9   : > { %vm2012_vm15 = vcmp.gt.s32.totalorder %v2011_v18, 0  ;;  %5543 = vsinq.f32 %v1361_v40  ;;  %v6415_v43 = vsel %vm6355_vm14, %v5925_v5, %v1462_v37  ;;  %v6421_v15 = vor.u32 4788187, %v1663_v12 }
 0x2aa   : > { %v6417_v41 = vshrl.u32 %v1958_v13, 30  ;;  %v2013_v30 = vsel %vm2012_vm15, %v2011_v18, 0  ;;  %v2008_v28 = vand.u32 8388607, %v8535_v50  ;;  %v6427_v0 = vadd.f32 %v6001_v17, %v5891_v36 }
 0x2ab   : > { %v2015_v2 = vand.u32 31, %v2013_v30  ;;  %v1667_v23 = vcvt.s32.f32 %v6404_v53  ;;  %v2213_v47 = vshrl.u32 %v2212_v10, 23  ;;  %vm4752_vm0 = vcmp.lt.s32.totalorder %v4751_v7, 0 }
 0x2ac   : > { %8684 = vst [vmem:[#allocation25_spill] sm:$0xff] %v6417_v41  ;;  %v1960_v55 = vshll.u32 %v6417_v41, 30  ;;  %v2014_v45 = vshrl.u32 %v2013_v30, 5  ;;  %v2009_v48 = vor.u32 8388608, %v2008_v28  ;;  %v6448_v30 = vpop.f32.mrb[31].mxu1  ;;  %vm8588_vm15 = vcmp.lt.s32.totalorder %v6123_v1, 0 }
 0x2ad   : > { %v2016_v11 = vsub.s32 32, %v2015_v2  ;;  %v2018_v51 = vshll.u32 %v8667_v22, %v2015_v2  ;;  %v2021_v63 = vshll.u32 %v8662_v62, %v2015_v2  ;;  %v2024_v60 = vshll.u32 %v8663_v52, %v2015_v2 }
 0x2ae   : > { %v6434_v34 = vsub.s32 %v1957_v32, %v1960_v55  ;;  %v2027_v17 = vshll.u32 %v8668_v61, %v2015_v2  ;;  %v2030_v13 = vshll.u32 %v8664_v54, %v2015_v2  ;;  %v4769_v10 = vadd.s32 4294967169, %v2213_v47 }
 0x2af   : > { %v2019_v40 = vshrl.u32 %v8662_v62, %v2016_v11  ;;  %v2022_v37 = vshrl.u32 %v8663_v52, %v2016_v11  ;;  %v2025_v12 = vshrl.u32 %v8668_v61, %v2016_v11  ;;  %v6443_v18 = vpop.eup %5537  ;;  %v2028_v32 = vshrl.u32 %v8664_v54, %v2016_v11 }
 0x2b0   : > { %8687 = vst [vmem:[#allocation28_spill] sm:$0xff] %v6443_v18  ;;  %v1963_v53 = vsub.s32 0, %v6434_v34  ;;  %v6451_v55 = vsel %vm4752_vm0, 0, %v4751_v7  ;;  %v2031_v38 = vshrl.u32 %v8673_v56, %v2016_v11  ;;  %vm2033_vm2 = vcmp.lt.s32.totalorder %v2014_v45, 1  ;;  %v5473_v18 = vld [vmem:[#allocation2 + $0xe8] sm:$0xff]  }
 0x2b1   : > { %v2020_v28 = vor.u32 %v2019_v40, %v2018_v51  ;;  %v2023_v50 = vor.u32 %v2022_v37, %v2021_v63  ;;  %v6454_v41 = vpop.eup %5539  ;;  %v2026_v46 = vor.u32 %v2025_v12, %v2024_v60  ;;  %v2029_v21 = vor.u32 %v2028_v32, %v2027_v17 }
 0x2b2   : > { %8688 = vst [vmem:[#allocation29_spill] sm:$0xff] %v6454_v41  ;;  %v4758_v8 = vmin.u32 %v1963_v53, %v6434_v34  ;;  %v6457_v49 = vpop.eup %5541  ;;  %v2017_v2 = vshrl.u32 %v8667_v22, %v2016_v11  ;;  %v2032_v47 = vor.u32 %v2031_v38, %v2030_v13  ;;  %vm2035_vm8 = vcmp.lt.s32.totalorder %v2014_v45, 3 }
 0x2b3   : > { %8689 = vst [vmem:[#allocation30_spill] sm:$0xff] %v6457_v49  ;;  %vm2036_vm4 = vcmp.lt.s32.totalorder %v2014_v45, 4  ;;  %v6460_v7 = vpop.eup %5543  ;;  %v1665_v51 = vand.u32 2147483647, %v6421_v15  ;;  %v2219_v37 = vadd.s32 1, %v4769_v10  ;;  %vm2034_vm5 = vcmp.lt.s32.totalorder %v2014_v45, 2 }
 0x2b4   : > { %8690 = vst [vmem:[#allocation31_spill] sm:$0xff] %v6460_v7  ;;  %v1965_v63 = vclz %v4758_v8  ;;  %v2038_v40 = vsel %vm2036_vm4, %v2026_v46, 2102212464  ;;  %v2041_v60 = vsel %vm2033_vm2, %v2020_v28, %v2023_v50  ;;  %v2042_v17 = vsel %vm2036_vm4, %v2029_v21, 920167782 }
 0x2b5   : > { %v8691_v12 = vand.u32 2147483647, %v6392_v14  ;;  %v1765_v38 = vsub.s32 4294967266, %v6451_v55  ;;  %v2043_v32 = vsel %vm2035_vm8, %v2026_v46, %v2042_v17  ;;  %v2045_v13 = vsel %vm2033_vm2, %v2023_v50, %v2026_v46 }
 0x2b6   : > { %v4759_v11 = vadd.s32 4294967294, %v1965_v63  ;;  %v2037_v8 = vsel %vm2033_vm2, %v2017_v2, %v2020_v28  ;;  %v2039_v15 = vsel %vm2035_vm8, %v2023_v50, %v2038_v40  ;;  %v2046_v10 = vsel %vm2036_vm4, %v2032_v47, 1326507024 }
 0x2b7   : > { %v2216_v53 = vand.u32 8388607, %v8691_v12  ;;  %v2049_v49 = vshll.u32 %v2009_v48, 8  ;;  %v1745_v7 = vadd.s32 %v6280_v29, %v6275_v35  ;;  %v2044_v31 = vsel %vm2034_vm5, %v2041_v60, %v2043_v32 }
 0x2b8   : > { %v2047_v12 = vsel %vm2035_vm8, %v2029_v21, %v2046_v10  ;;  %vm2220_vm6 = vcmp.gt.s32.totalorder %v2219_v37, 0  ;;  %v1761_v63 = vsub.s32 32, %v6451_v55  ;;  %v6480_v28 = vmul.f32 %v1667_v23, %v1665_v51 }
 0x2b9   : > { %v2048_v17 = vsel %vm2034_vm5, %v2045_v13, %v2047_v12  ;;  %v2217_v46 = vor.u32 8388608, %v2216_v53  ;;  %v2221_v5 = vsel %vm2220_vm6, %v2219_v37, 0  ;;  %v6482_v50 = vadd.s32 127, %v1765_v38 }
 0x2ba   : > { %vm4760_vm9 = vcmp.lt.s32.totalorder %v4759_v11, 0  ;;  %v2040_v48 = vsel %vm2034_vm5, %v2037_v8, %v2039_v15  ;;  %v6485_v2 = vmul.u32.u64.low %v2049_v49, %v2048_v17  ;;  %v6486_v35 = vmul.u32.u64.high %v2049_v49, %v2048_v17, %v6485_v2 }
 0x2bb   : > { %v6488_v29 = vmul.u32.u64.low %v2049_v49, %v2044_v31  ;;  %v6489_v47 = vmul.u32.u64.high %v2049_v49, %v2044_v31, %v6488_v29  ;;  %v1953_v21 = vadd.s32 %v6361_v25, %v6368_v16  ;;  %v6494_v40 = vshrl.u32 %v2221_v5, 5 }
 0x2bc   : > { %v2223_v37 = vand.u32 31, %v2221_v5  ;;  %v1762_v51 = vshll.u32 %v6339_v44, %v6451_v55  ;;  %v1763_v45 = vshrl.u32 %v1745_v7, %v1761_v63  ;;  %v6499_v60 = vsel %vm4760_vm9, 0, %v4759_v11 }
 0x2bd   : > { %v6501_v53 = vshll.u32 %v2217_v46, 8  ;;  %v1767_v31 = vshll.u32 %v6482_v50, 23  ;;  %v2056_v38 = vmul.u32 %v2049_v49, %v2040_v48  ;;  %v1969_v25 = vsub.s32 32, %v6499_v60 }
 0x2be   : > { %v2224_v32 = vsub.s32 32, %v2223_v37  ;;  %v2226_v13 = vshll.u32 %v8667_v22, %v2223_v37  ;;  %vm2058_vm11 = vc.u32 %v6486_v35, %v6488_v29  ;;  %v2059_v5 = vadd.s32 1, %v6489_v47 }
 0x2bf   : > { %v2229_v44 = vshll.u32 %v8662_v62, %v2223_v37  ;;  %v1973_v16 = vsub.s32 4294967266, %v6499_v60  ;;  %vm2241_vm7 = vcmp.lt.s32.totalorder %v6494_v40, 1  ;;  %v2316_v49 = vand.u32 2139095040, %v6427_v0 }
 0x2c0   : > { %v2227_v55 = vshrl.u32 %v8662_v62, %v2224_v32  ;;  %v2060_v7 = vsel %vm2058_vm11, %v2059_v5, %v6489_v47  ;;  %v2230_v11 = vshrl.u32 %v8663_v52, %v2224_v32  ;;  %v2232_v8 = vshll.u32 %v8663_v52, %v2223_v37 }
 0x2c1   : > { %v2233_v15 = vshrl.u32 %v8668_v61, %v2224_v32  ;;  %v2061_v10 = vadd.s32 %v2060_v7, %v2056_v38  ;;  %v2225_v12 = vshrl.u32 %v8667_v22, %v2224_v32  ;;  %v2235_v17 = vshll.u32 %v8668_v61, %v2223_v37 }
 0x2c2   : > { %v2228_v63 = vor.u32 %v2227_v55, %v2226_v13  ;;  %v2231_v46 = vor.u32 %v2230_v11, %v2229_v44  ;;  %v2236_v48 = vshrl.u32 %v8664_v54, %v2224_v32  ;;  %v2238_v2 = vshll.u32 %v8664_v54, %v2223_v37 }
 0x2c3   : > { %v2234_v50 = vor.u32 %v2233_v15, %v2232_v8  ;;  %v1970_v47 = vshll.u32 %v6434_v34, %v6499_v60  ;;  %v2062_v5 = vadd.s32 536870912, %v2061_v10  ;;  %v2239_v23 = vshrl.u32 %v8673_v56, %v2224_v32 }
 0x2c4   : > { %vm2244_vm0 = vcmp.lt.s32.totalorder %v6494_v40, 4  ;;  %v1974_v38 = vadd.s32 127, %v1973_v16  ;;  %v2237_v13 = vor.u32 %v2236_v48, %v2235_v17  ;;  %vm2243_vm2 = vcmp.lt.s32.totalorder %v6494_v40, 3 }
 0x2c5   : > { %v2246_v44 = vsel %vm2244_vm0, %v2234_v50, 2102212464  ;;  %v6530_v55 = vshrl.u32 %v2062_v5, 30  ;;  %v2240_v37 = vor.u32 %v2239_v23, %v2238_v2  ;;  %vm2242_vm8 = vcmp.lt.s32.totalorder %v6494_v40, 2 }
 0x2c6   : > { %v2249_v34 = vsel %vm2241_vm7, %v2228_v63, %v2231_v46  ;;  %v2245_v60 = vsel %vm2241_vm7, %v2225_v12, %v2228_v63  ;;  %v2250_v32 = vsel %vm2244_vm0, %v2237_v13, 920167782  ;;  %v2253_v16 = vsel %vm2241_vm7, %v2231_v46, %v2234_v50 }
 0x2c7   : > { %8692 = vst [vmem:[#allocation32_spill] sm:$0xff] %v6530_v55  ;;  %v2317_v7 = vshrl.u32 %v2316_v49, 23  ;;  %v2064_v11 = vshll.u32 %v6530_v55, 30  ;;  %v2247_v23 = vsel %vm2243_vm2, %v2231_v46, %v2246_v44  ;;  %v2251_v8 = vsel %vm2243_vm2, %v2234_v50, %v2250_v32 }
 0x2c8   : > { %v2254_v15 = vsel %vm2244_vm0, %v2240_v37, 1326507024  ;;  %v1971_v17 = vshrl.u32 %v1953_v21, %v1969_v25  ;;  %v1975_v12 = vshll.u32 %v1974_v38, 23  ;;  %v2252_v63 = vsel %vm2242_vm8, %v2249_v34, %v2251_v8 }
 0x2c9   : > { %v2255_v48 = vsel %vm2243_vm2, %v2237_v13, %v2254_v15  ;;  %v1669_v49 = vxor.u32 2147483648, %v6480_v28  ;;  %v6553_v2 = vsub.s32 %v2061_v10, %v2064_v11  ;;  %v4773_v5 = vadd.s32 4294967169, %v2317_v7 }
 0x2ca   : > { %v2256_v46 = vsel %vm2242_vm8, %v2253_v16, %v2255_v48  ;;  %v1764_v50 = vor.u32 %v1763_v45, %v1762_v51  ;;  %v2248_v44 = vsel %vm2242_vm8, %v2245_v60, %v2247_v23  ;;  %v1768_v34 = vor.u32 4788187, %v1767_v31 }
 0x2cb   : > { %v6560_v21 = vmul.u32.u64.low %v6501_v53, %v2256_v46  ;;  %v6561_v25 = vmul.u32.u64.high %v6501_v53, %v2256_v46, %v6560_v21  ;;  %v2067_v38 = vsub.s32 0, %v6553_v2  ;;  %v2323_v10 = vadd.s32 1, %v4773_v5 }
 0x2cc   : > { %v6565_v13 = vmul.u32.u64.low %v6501_v53, %v2252_v63  ;;  %v6566_v37 = vmul.u32.u64.high %v6501_v53, %v2252_v63, %v6565_v13  ;;  %v1972_v32 = vor.u32 %v1971_v17, %v1970_v47  ;;  %v1976_v16 = vor.u32 4788187, %v1975_v12 }
 0x2cd   : > { %v8693_v51 = vand.u32 2147483647, %v6427_v0  ;;  %5545 = vcosq.f32 %v6415_v43  ;;  %v8694_v40 = vand.u32 2147483647, %v6123_v1  ;;  %v8695_v60 = vmov 0 }
 0x2ce   : > { %v4762_v7 = vmin.u32 %v2067_v38, %v6553_v2  ;;  %vm2324_vm5 = vcmp.gt.s32.totalorder %v2323_v10, 0  ;;  %v1670_v31 = vsel %vm8588_vm15, %v1669_v49, %v6480_v28  ;;  %v2264_v47 = vmul.u32 %v6501_v53, %v2248_v44 }
 0x2cf   : > { %v2320_v45 = vand.u32 8388607, %v8693_v51  ;;  %vm6574_vm4 = vcmp.le.f32.partialorder %v8694_v40, 0.7853982  ;;  %vm2266_vm6 = vc.u32 %v6561_v25, %v6565_v13  ;;  %v2325_v11 = vsel %vm2324_vm5, %v2323_v10, 0  ;;  %v5472_v10 = vld [vmem:[#allocation2 + $0xe0] sm:$0xff]  }
 0x2d0   : > { %v8696_v60 = vsel %vm6574_vm4, 4294967295, %v8695_v60  ;;  %v1771_v23 = vcvt.s32.f32 %v1764_v50  ;;  %v2069_v8 = vclz %v4762_v7  ;;  %v2267_v15 = vadd.s32 1, %v6566_v37  ;;  %5118 = vmatprep.subr.bf16.mxu0 %v5472_v10 }
 0x2d1   : > { %8697 = vst [vmem:[#allocation33_spill] sm:$0xff] %v8696_v60  ;;  %v2327_v17 = vand.u32 31, %v2325_v11  ;;  %v1769_v12 = vand.u32 2147483647, %v1768_v34  ;;  %v1977_v63 = vand.u32 2147483647, %v1976_v16  ;;  %v1979_v48 = vcvt.s32.f32 %v1972_v32  ;;  %5119 = vmatpush3.bf16.msra.mxu0 %v5472_v10 }
 0x2d2   : > { %v2321_v46 = vor.u32 8388608, %v2320_v45  ;;  %v4763_v5 = vadd.s32 4294967294, %v2069_v8  ;;  %v2268_v21 = vsel %vm2266_vm6, %v2267_v15, %v6566_v37  ;;  %v6587_v38 = vshrl.u32 %v2325_v11, 5  ;;  %5120 = vmatprep.subr.bf16.mxu0 %v5473_v18 }
 0x2d3   : > { %v2328_v28 = vsub.s32 32, %v2327_v17  ;;  %v2269_v53 = vadd.s32 %v2268_v21, %v2264_v47  ;;  %v2330_v49 = vshll.u32 %v8667_v22, %v2327_v17  ;;  %v2333_v44 = vshll.u32 %v8662_v62, %v2327_v17 }
 0x2d4   : > { %v2336_v50 = vshll.u32 %v8663_v52, %v2327_v17  ;;  %vm4764_vm9 = vcmp.lt.s32.totalorder %v4763_v5, 0  ;;  %v2339_v16 = vshll.u32 %v8668_v61, %v2327_v17  ;;  %v6602_v7 = vsel %vm6574_vm4, %v6123_v1, %v1670_v31  ;;  %v5487_v1 = vld [vmem:[#allocation2 + $0xc0] sm:$0xff]  }
 0x2d5   : > { %v2331_v34 = vshrl.u32 %v8662_v62, %v2328_v28  ;;  %v2334_v32 = vshrl.u32 %v8663_v52, %v2328_v28  ;;  %v6595_v51 = vsel %vm4764_vm9, 0, %v4763_v5  ;;  %v2270_v37 = vadd.s32 536870912, %v2269_v53  ;;  %5121 = vmatpush3.bf16.msra.mxu0 %v5473_v18 }
 0x2d6   : > { %v2337_v45 = vshrl.u32 %v8668_v61, %v2328_v28  ;;  %v2340_v40 = vshrl.u32 %v8664_v54, %v2328_v28  ;;  %v6604_v47 = vmul.f32 %v1771_v23, %v1769_v12  ;;  %v6606_v11 = vmul.f32 %v1979_v48, %v1977_v63 }
 0x2d7   : > { %v2057_v8 = vadd.s32 %v6488_v29, %v6486_v35  ;;  %v6610_v15 = vshrl.u32 %v2270_v37, 30  ;;  %v2332_v5 = vor.u32 %v2331_v34, %v2330_v49  ;;  %v2335_v21 = vor.u32 %v2334_v32, %v2333_v44  ;;  %v6616_v60 = vpop.eup %5545 }
 0x2d8   : > { %v6614_v55 = vadd.f32 %v6069_v58, %v5889_v33  ;;  %8700 = vst [vmem:[#allocation36_spill] sm:$0xff] %v6616_v60  ;;  %v2077_v31 = vsub.s32 4294967266, %v6595_v51  ;;  %v2341_v23 = vor.u32 %v2340_v40, %v2339_v16  ;;  %v2342_v12 = vshll.u32 %v8664_v54, %v2327_v17 }
 0x2d9   : > { %8698 = vst [vmem:[#allocation34_spill] sm:$0xff] %v6610_v15  ;;  %v2343_v63 = vshrl.u32 %v8673_v56, %v2328_v28  ;;  %vm8590_vm11 = vcmp.lt.s32.totalorder %v6146_v3, 0  ;;  %v2272_v35 = vshll.u32 %v6610_v15, 30  ;;  %v2338_v29 = vor.u32 %v2337_v45, %v2336_v50  ;;  %v5474_v50 = vld [vmem:[#allocation2 + $0xf0] sm:$0xff]  }
 0x2da   : > { %8699 = vst [vmem:[#allocation35_spill] sm:$0xff] %v6614_v55  ;;  %vm2345_vm7 = vcmp.lt.s32.totalorder %v6587_v38, 1  ;;  %v6624_v48 = vshll.u32 %v2321_v46, 8  ;;  %v2329_v58 = vshrl.u32 %v8667_v22, %v2328_v28  ;;  %vm2347_vm0 = vcmp.lt.s32.totalorder %v6587_v38, 3  ;;  %5122 = vmatprep.subr.bf16.mxu0 %v5474_v50 }
 0x2db   : > { %v2344_v49 = vor.u32 %v2343_v63, %v2342_v12  ;;  %vm2348_vm2 = vcmp.lt.s32.totalorder %v6587_v38, 4  ;;  %v6629_v17 = vsub.s32 %v2269_v53, %v2272_v35  ;;  %vm2346_vm8 = vcmp.lt.s32.totalorder %v6587_v38, 2  ;;  %5123 = vmatpush3.bf16.msra.mxu0 %v5474_v50  ;;  %v5477_v38 = vld [vmem:[#allocation2 + $0xf8] sm:$0xff]  }
 0x2dc   : > { %v2350_v44 = vsel %vm2348_vm2, %v2338_v29, 2102212464  ;;  %v2353_v46 = vsel %vm2345_vm7, %v2332_v5, %v2335_v21  ;;  %v8701_v10 = vand.u32 2147483647, %v6146_v3  ;;  %v8702_v28 = vmov 0 }
 0x2dd   : > { %vm8580_vm6 = vcmp.lt.s32.totalorder %v6220_v24, 0  ;;  %v2078_v18 = vadd.s32 127, %v2077_v31  ;;  %v2354_v53 = vsel %vm2348_vm2, %v2341_v23, 920167782  ;;  %v2524_v32 = vand.u32 2139095040, %v6614_v55 }
 0x2de   : > { %vm6638_vm5 = vcmp.le.f32.partialorder %v8701_v10, 0.7853982  ;;  %v2073_v16 = vsub.s32 32, %v6595_v51  ;;  %v2275_v37 = vsub.s32 0, %v6629_v17  ;;  %v2355_v45 = vsel %vm2347_vm0, %v2338_v29, %v2354_v53 }
 0x2df   : > { %v8703_v28 = vsel %vm6638_vm5, 4294967295, %v8702_v28  ;;  %v2357_v40 = vsel %vm2345_vm7, %v2335_v21, %v2338_v29  ;;  %v2349_v31 = vsel %vm2345_vm7, %v2329_v58, %v2332_v5  ;;  %v2351_v12 = vsel %vm2347_vm0, %v2335_v21, %v2350_v44  ;;  %v5475_v5 = vld [vmem:[#allocation2 + $0xa0] sm:$0xff]  }
 0x2e0   : > { %8704 = vst [vmem:[#allocation37_spill] sm:$0xff] %v8703_v28  ;;  %v2356_v63 = vsel %vm2346_vm8, %v2353_v46, %v2355_v45  ;;  %v2358_v35 = vsel %vm2348_vm2, %v2344_v49, 1326507024  ;;  %v4770_v10 = vmin.u32 %v2275_v37, %v6629_v17  ;;  %v1773_v21 = vxor.u32 2147483648, %v6604_v47  ;;  %5132 = vmatprep.subr.bf16.mxu0 %v5475_v5  ;;  %v5629_v45 = vld [vmem:[%s5845_s9 + $0x8] sm:$0xff]  }
 0x2e1   : > { %v2359_v29 = vsel %vm2347_vm0, %v2341_v23, %v2358_v35  ;;  %v6665_v53 = vmul.u32.u64.low %v6624_v48, %v2356_v63  ;;  %v6666_v34 = vmul.u32.u64.high %v6624_v48, %v2356_v63, %v6665_v53  ;;  %v2079_v58 = vshll.u32 %v2078_v18, 23  ;;  %5125 = vmatmul.mubr.msk.bf16.vlgmr.msra.gmra.mrb[16].mxu0 %vm810_vm1, %v5629_v45  ;;  %v5476_v63 = vld [vmem:[#allocation2 + $0x138] sm:$0xff]  }
 0x2e2   : > { %v2360_v44 = vsel %vm2346_vm8, %v2357_v40, %v2359_v29  ;;  %v2525_v49 = vshrl.u32 %v2524_v32, 23  ;;  %v2277_v46 = vclz %v4770_v10  ;;  %v2352_v50 = vsel %vm2346_vm8, %v2349_v31, %v2351_v12  ;;  %5133 = vmatpush3.bf16.msra.mxu0 %v5475_v5  ;;  %v5630_v31 = vld [vmem:[%s5845_s9 + $0x10] sm:$0xff]   ;;  %4946 = vmatprep.subr.bf16.mxu1 %v5476_v63  ;;  %v5479_v5 = vld [vmem:[#allocation2 + $0x140] sm:$0xff]  }
 0x2e3   : > { %v6675_v23 = vmul.u32.u64.low %v6624_v48, %v2360_v44  ;;  %v6676_v37 = vmul.u32.u64.high %v6624_v48, %v2360_v44, %v6675_v23  ;;  %v2074_v18 = vshll.u32 %v6553_v2, %v6595_v51  ;;  %v2075_v35 = vshrl.u32 %v2057_v8, %v2073_v16  ;;  %5128 = vmatprep.mubr.msk.bf16.mxu0 %vm810_vm1, %v5630_v31  ;;  %v5478_v44 = vld [vmem:[#allocation2 + $0xa8] sm:$0xff]   ;;  %4947 = vmatpush3.bf16.msra.mxu1 %v5477_v38 }
 0x2e4   : > { %v4781_v15 = vadd.s32 4294967169, %v2525_v49  ;;  %v8705_v32 = vand.u32 2147483647, %v6614_v55  ;;  %5547 = vsinq.f32 %v6415_v43  ;;  %v1981_v12 = vxor.u32 2147483648, %v6606_v11  ;;  %5134 = vmatprep.subr.bf16.mxu0 %v5478_v44  ;;  %4948 = vmatprep.subr.bf16.mxu1 %v5479_v5 }
 0x2e5   : > { %v4771_v10 = vadd.s32 4294967294, %v2277_v46  ;;  %v2371_v29 = vadd.s32 1, %v6666_v34  ;;  %5549 = vcosq.f32 %v6602_v7  ;;  %v1774_v2 = vsel %vm8590_vm11, %v1773_v21, %v6604_v47 }
 0x2e6   : > { %v2528_v40 = vand.u32 8388607, %v8705_v32  ;;  %v2368_v51 = vmul.u32 %v6624_v48, %v2352_v50  ;;  %v2531_v8 = vadd.s32 1, %v4781_v15  ;;  %v6694_v16 = vor.u32 4788187, %v2079_v58  ;;  %5135 = vmatpush3.bf16.msra.mxu0 %v5478_v44  ;;  %v5480_v15 = vld [vmem:[#allocation2 + $0x100] sm:$0xff]  }
 0x2e7   : > { %vm4772_vm9 = vcmp.lt.s32.totalorder %v4771_v10, 0  ;;  %vm2370_vm7 = vc.u32 %v6676_v37, %v6665_v53  ;;  %v6700_v43 = vadd.f32 %v6137_v57, %v5891_v36  ;;  %v6702_v49 = vor.u32 %v2075_v35, %v2074_v18  ;;  %v5481_v58 = vld [vmem:[#allocation2 + $0xb0] sm:$0xff]   ;;  %4949 = vmatpush3.bf16.msra.mxu1 %v5480_v15  ;;  %v5482_v35 = vld [vmem:[#allocation2 + $0x148] sm:$0xff]   ;;  %v5631_v32 = vld [vmem:[%s5845_s9 + $0x18] sm:$0xff]  }
 0x2e8   : > { %v2372_v47 = vsel %vm2370_vm7, %v2371_v29, %v6666_v34  ;;  %v2529_v21 = vor.u32 8388608, %v2528_v40  ;;  %vm2532_vm0 = vcmp.gt.s32.totalorder %v2531_v8, 0  ;;  %5551 = vsinq.f32 %v6602_v7  ;;  %5136 = vmatprep.subr.bf16.mxu0 %v5481_v58  ;;  %4950 = vmatprep.subr.bf16.mxu1 %v5482_v35  ;;  %v5484_v44 = vld [vmem:[#allocation2 + $0xb8] sm:$0xff]  }
 0x2e9   : > { %v6712_v57 = vsel %vm6638_vm5, %v6146_v3, %v1774_v2  ;;  %v6717_v34 = vsel %vm8580_vm6, %v1981_v12, %v6606_v11  ;;  %v6720_v46 = vsel %vm4772_vm9, 0, %v4771_v10  ;;  %v2373_v50 = vadd.s32 %v2372_v47, %v2368_v51  ;;  %5129 = vmatmul.mubr.msk.bf16.gmra.mrb[20].mxu0 %vm810_vm1, %v5631_v32  ;;  %v5483_v12 = vld [vmem:[#allocation2 + $0x108] sm:$0xff]   ;;  %v5485_v32 = vld [vmem:[#allocation2 + $0x150] sm:$0xff]  }
 0x2ea   : > { %v2533_v23 = vsel %vm2532_vm0, %v2531_v8, 0  ;;  %v6724_v7 = vadd.f32 %v6210_v19, %v5889_v33  ;;  %v2265_v63 = vadd.s32 %v6565_v13, %v6561_v25  ;;  %v2628_v11 = vand.u32 2139095040, %v6700_v43  ;;  %5137 = vmatpush3.bf16.msra.mxu0 %v5481_v58  ;;  %v5486_v19 = vld [vmem:[#allocation2 + $0x110] sm:$0xff]  }
 0x2eb   : > { %v2535_v18 = vand.u32 31, %v2533_v23  ;;  %v2374_v38 = vadd.s32 536870912, %v2373_v50  ;;  %v6733_v31 = vshll.u32 %v2529_v21, 8  ;;  %v2281_v10 = vsub.s32 32, %v6720_v46  ;;  %4951 = vmatpush3.bf16.msra.mxu1 %v5483_v12  ;;  %5138 = vmatprep.subr.bf16.mxu0 %v5484_v44 }
 0x2ec   : > { %8706 = vst [vmem:[#allocation38_spill] sm:$0xff] %v6724_v7  ;;  %v2285_v25 = vsub.s32 4294967266, %v6720_v46  ;;  %v2282_v21 = vshll.u32 %v6629_v17, %v6720_v46  ;;  %v6748_v15 = vshrl.u32 %v2533_v23, 5  ;;  %v2629_v35 = vshrl.u32 %v2628_v11, 23  ;;  %4952 = vmatprep.subr.bf16.mxu1 %v5485_v32 }
 0x2ed   : > { %v2536_v13 = vsub.s32 32, %v2535_v18  ;;  %v2538_v29 = vshll.u32 %v8667_v22, %v2535_v18  ;;  %v6739_v2 = vshrl.u32 %v2374_v38, 30  ;;  %v2541_v51 = vshll.u32 %v8662_v62, %v2535_v18 }
 0x2ee   : > { %v2544_v8 = vshll.u32 %v8663_v52, %v2535_v18  ;;  %v2547_v5 = vshll.u32 %v8668_v61, %v2535_v18  ;;  %v6744_v47 = vpop.eup %5547  ;;  %5139 = vmatpush3.bf16.msra.mxu0 %v5484_v44  ;;  %v8710_v17 = vand.u32 2147483647, %v6220_v24  ;;  %v8711_v46 = vmov 0 }
 0x2ef   : > { %8707 = vst [vmem:[#allocation39_spill] sm:$0xff] %v6739_v2  ;;  %8708 = vst [vmem:[#allocation40_spill] sm:$0xff] %v6744_v47  ;;  %v2539_v58 = vshrl.u32 %v8662_v62, %v2536_v13  ;;  %v6751_v38 = vpop.eup %5549  ;;  %v2376_v40 = vshll.u32 %v6739_v2, 30  ;;  %v2542_v45 = vshrl.u32 %v8663_v52, %v2536_v13  ;;  %v2545_v12 = vshrl.u32 %v8668_v61, %v2536_v13 }
 0x2f0   : > { %8709 = vst [vmem:[#allocation41_spill] sm:$0xff] %v6751_v38  ;;  %v2548_v48 = vshrl.u32 %v8664_v54, %v2536_v13  ;;  %vm6759_vm1 = vcmp.le.f32.partialorder %v8710_v17, 0.7853982  ;;  %v2286_v23 = vadd.s32 127, %v2285_v25  ;;  %v2550_v38 = vshll.u32 %v8664_v54, %v2535_v18  ;;  %4953 = vmatpush3.bf16.msra.mxu1 %v5486_v19  ;;  %5140 = vmatprep.subr.bf16.mxu0 %v5487_v1  ;;  %v5488_v18 = vld [vmem:[#allocation2 + $0x158] sm:$0xff]   ;;  %v5490_v19 = vld [vmem:[#allocation2 + $0xc8] sm:$0xff]  }
 0x2f1   : > { %v8712_v46 = vsel %vm6759_vm1, 4294967295, %v8711_v46  ;;  %v2540_v11 = vor.u32 %v2539_v58, %v2538_v29  ;;  %v2551_v2 = vshrl.u32 %v8673_v56, %v2536_v13  ;;  %v6765_v28 = vsub.s32 %v2373_v50, %v2376_v40  ;;  %4954 = vmatprep.subr.bf16.mxu1 %v5488_v18  ;;  %v5491_v58 = vld [vmem:[#allocation2 + $0x160] sm:$0xff]  }
 0x2f2   : > { %8713 = vst [vmem:[#allocation42_spill] sm:$0xff] %v8712_v46  ;;  %v2543_v3 = vor.u32 %v2542_v45, %v2541_v51  ;;  %v2546_v60 = vor.u32 %v2545_v12, %v2544_v8  ;;  %v2549_v44 = vor.u32 %v2548_v48, %v2547_v5  ;;  %v6767_v47 = vpop.eup %5551  ;;  %v2283_v17 = vshrl.u32 %v2265_v63, %v2281_v10  ;;  %v5489_v48 = vld [vmem:[#allocation2 + $0x118] sm:$0xff]  }
 0x2f3   : > { %8714 = vst [vmem:[#allocation43_spill] sm:$0xff] %v6767_v47  ;;  %v2537_v41 = vshrl.u32 %v8667_v22, %v2536_v13  ;;  %v2552_v9 = vor.u32 %v2551_v2, %v2550_v38  ;;  %vm2553_vm2 = vcmp.lt.s32.totalorder %v6748_v15, 1  ;;  %v2379_v25 = vsub.s32 0, %v6765_v28  ;;  %5141 = vmatpush3.bf16.msra.mxu0 %v5487_v1 }
 0x2f4   : > { %vm2554_vm8 = vcmp.lt.s32.totalorder %v6748_v15, 2  ;;  %vm2555_vm9 = vcmp.lt.s32.totalorder %v6748_v15, 3  ;;  %vm2556_vm7 = vcmp.lt.s32.totalorder %v6748_v15, 4  ;;  %v2287_v50 = vshll.u32 %v2286_v23, 23  ;;  %4955 = vmatpush3.bf16.msra.mxu1 %v5489_v48  ;;  %5142 = vmatprep.subr.bf16.mxu0 %v5490_v19  ;;  %v6811_v48 = vpop.f32.mrb[0].mxu0 }
 0x2f5   : > { %v2558_v45 = vsel %vm2556_vm7, %v2546_v60, 2102212464  ;;  %v2561_v63 = vsel %vm2553_vm2, %v2540_v11, %v2543_v3  ;;  %v2562_v40 = vsel %vm2556_vm7, %v2549_v44, 920167782  ;;  %v4774_v10 = vmin.u32 %v2379_v25, %v6765_v28  ;;  %4956 = vmatprep.subr.bf16.mxu1 %v5491_v58  ;;  %v5497_v58 = vld [vmem:[#allocation2 + $0x170] sm:$0xff]  }
 0x2f6   : > { %v2563_v13 = vsel %vm2555_vm9, %v2546_v60, %v2562_v40  ;;  %v2565_v1 = vsel %vm2553_vm2, %v2543_v3, %v2546_v60  ;;  %v4785_v29 = vadd.s32 4294967169, %v2629_v35  ;;  %v2557_v2 = vsel %vm2553_vm2, %v2537_v41, %v2540_v11  ;;  %v5492_v41 = vld [vmem:[#allocation2 + $0x120] sm:$0xff]   ;;  %v6818_v40 = vpop.f32.mrb[1].mxu0 }
 0x2f7   : > { %v2559_v51 = vsel %vm2555_vm9, %v2543_v3, %v2558_v45  ;;  %v2564_v8 = vsel %vm2554_vm8, %v2561_v63, %v2563_v13  ;;  %v2566_v5 = vsel %vm2556_vm7, %v2552_v9, 1326507024  ;;  %v2284_v32 = vor.u32 %v2283_v17, %v2282_v21  ;;  %5143 = vmatpush3.bf16.msra.mxu0 %v5490_v19  ;;  %v5493_v9 = vld [vmem:[#allocation2 + $0xd0] sm:$0xff]   ;;  %v6836_v13 = vpop.f32.mrb[2].mxu0 }
 0x2f8   : > { %v2381_v38 = vclz %v4774_v10  ;;  %v2567_v60 = vsel %vm2555_vm9, %v2549_v44, %v2566_v5  ;;  %v8715_v35 = vand.u32 2147483647, %v6700_v43  ;;  %v2288_v23 = vor.u32 4788187, %v2287_v50  ;;  %4957 = vmatpush3.bf16.msra.mxu1 %v5492_v41  ;;  %5144 = vmatprep.subr.bf16.mxu0 %v5493_v9 }
 0x2f9   : > { %v2568_v3 = vsel %vm2554_vm8, %v2565_v1, %v2567_v60  ;;  %v6801_v11 = vmul.u32.u64.low %v6733_v31, %v2564_v8  ;;  %v6802_v18 = vmul.u32.u64.high %v6733_v31, %v2564_v8, %v6801_v11  ;;  %v2560_v44 = vsel %vm2554_vm8, %v2557_v2, %v2559_v51  ;;  %v5494_v2 = vld [vmem:[#allocation2 + $0x168] sm:$0xff]   ;;  %v5496_v8 = vld [vmem:[#allocation2 + $0xd8] sm:$0xff]  }
 0x2fa   : > { %v2632_v12 = vand.u32 8388607, %v8715_v35  ;;  %v4775_v21 = vadd.s32 4294967294, %v2381_v38  ;;  %v6808_v17 = vmul.u32.u64.low %v6733_v31, %v2568_v3  ;;  %v6809_v25 = vmul.u32.u64.high %v6733_v31, %v2568_v3, %v6808_v17  ;;  %4958 = vmatprep.subr.bf16.mxu1 %v5494_v2 }
 0x2fb   : > { %v8716_v50 = vsel %vm6332_vm10, 0, %v6410_v39  ;;  %5553 = vcosq.f32 %v6712_v57  ;;  %v2635_v63 = vadd.s32 1, %v4785_v29  ;;  %v6821_v15 = vand.u32 3, %v6396_v59  ;;  %5145 = vmatpush3.bf16.msra.mxu0 %v5493_v9  ;;  %v6840_v29 = vpop.f32.mrb[3].mxu0 }
 0x2fc   : > { %v1366_v45 = vadd.s32 3, %v8716_v50  ;;  %5555 = vsinq.f32 %v6712_v57  ;;  %v6828_v19 = vsel %vm6759_vm1, %v6220_v24, %v6717_v34  ;;  %v8718_v27 = vand.u32 2147483647, %v6694_v16  ;;  %5146 = vmatprep.subr.bf16.mxu0 %v5496_v8  ;;  %v6866_v50 = vpop.f32.mrb[4].mxu0 }
 0x2fd   : > { %8717 = vst [vmem:[#allocation44_spill] sm:$0xff] %v6821_v15  ;;  %v8719_v39 = vcvt.s32.f32 %v6702_v49  ;;  %v2576_v59 = vmul.u32 %v6733_v31, %v2560_v44  ;;  %v2579_v1 = vadd.s32 1, %v6802_v18  ;;  %v2633_v57 = vor.u32 8388608, %v2632_v12  ;;  %v5495_v49 = vld [vmem:[#allocation2 + $0x128] sm:$0xff]   ;;  %v5498_v12 = vld [vmem:[#allocation2 + $0x130] sm:$0xff]  }
 0x2fe   : > { %vm2636_vm10 = vcmp.gt.s32.totalorder %v2635_v63, 0  ;;  %v2289_v34 = vand.u32 2147483647, %v2288_v23  ;;  %v2291_v51 = vcvt.s32.f32 %v2284_v32  ;;  %vm4776_vm0 = vcmp.lt.s32.totalorder %v4775_v21, 0  ;;  %4959 = vmatpush3.bf16.msra.mxu1 %v5495_v49 }
 0x2ff   : > { %v6834_v10 = vmul.f32 %v8719_v39, %v8718_v27  ;;  %v2836_v16 = vand.u32 2139095040, %v6724_v7  ;;  %v6843_v5 = vand.u32 3, %v1366_v45  ;;  %5557 = vcosq.f32 %v6828_v19  ;;  %5147 = vmatpush3.bf16.msra.mxu0 %v5496_v8  ;;  %4960 = vmatprep.subr.bf16.mxu1 %v5497_v58  ;;  %v6870_v39 = vpop.f32.mrb[5].mxu0 }
 0x300   : > { %vm2578_vm2 = vc.u32 %v6809_v25, %v6801_v11  ;;  %v2637_v31 = vsel %vm2636_vm10, %v2635_v63, 0  ;;  %v6853_v35 = vadd.f32 %v6257_v4, %v5891_v36  ;;  %v6856_v41 = vsel %vm4776_vm0, 0, %v4775_v21 }
 0x301   : > { %8720 = vst [vmem:[#allocation45_spill] sm:$0xff] %v6843_v5  ;;  %v2580_v60 = vsel %vm2578_vm2, %v2579_v1, %v6802_v18  ;;  %v6858_v3 = vshrl.u32 %v2637_v31, 5  ;;  %v2639_v9 = vand.u32 31, %v2637_v31  ;;  %v6860_v44 = vmul.f32 %v2291_v51, %v2289_v34 }
 0x302   : > { %8721 = vst [vmem:[#allocation46_spill] sm:$0xff] %v6853_v35  ;;  %v2581_v23 = vadd.s32 %v2580_v60, %v2576_v59  ;;  %v2369_v18 = vadd.s32 %v6665_v53, %v6676_v37  ;;  %v6864_v17 = vshll.u32 %v2633_v57, 8  ;;  %v2837_v4 = vshrl.u32 %v2836_v16, 23  ;;  %4961 = vmatpush3.bf16.msra.mxu1 %v5498_v12  ;;  %v6876_v37 = vpop.f32.mrb[6].mxu0 }
 0x303   : > { %v2640_v63 = vsub.s32 32, %v2639_v9  ;;  %v2642_v21 = vshll.u32 %v8667_v22, %v2639_v9  ;;  %v2645_v27 = vshll.u32 %v8662_v62, %v2639_v9  ;;  %v2385_v59 = vsub.s32 32, %v6856_v41  ;;  %v6885_v49 = vpop.f32.mrb[7].mxu0 }
 0x304   : > { %v2582_v45 = vadd.s32 536870912, %v2581_v23  ;;  %v2389_v1 = vsub.s32 4294967266, %v6856_v41  ;;  %v2648_v2 = vshll.u32 %v8663_v52, %v2639_v9  ;;  %v2651_v53 = vshll.u32 %v8668_v61, %v2639_v9  ;;  %8724 = vst [vmem:[#allocation49_spill] sm:$0xff] %v6885_v49 }
 0x305   : > { %v6878_v57 = vpop.eup %5553  ;;  %v2643_v51 = vshrl.u32 %v8662_v62, %v2640_v63  ;;  %v2646_v16 = vshrl.u32 %v8663_v52, %v2640_v63  ;;  %vm2657_vm8 = vcmp.lt.s32.totalorder %v6858_v3, 1  ;;  %v2641_v31 = vshrl.u32 %v8667_v22, %v2640_v63 }
 0x306   : > { %8722 = vst [vmem:[#allocation47_spill] sm:$0xff] %v6878_v57  ;;  %v6880_v34 = vshrl.u32 %v2582_v45, 30  ;;  %v6887_v8 = vpop.eup %5555  ;;  %v2649_v58 = vshrl.u32 %v8668_v61, %v2640_v63  ;;  %v2652_v60 = vshrl.u32 %v8664_v54, %v2640_v63  ;;  %v2654_v12 = vshll.u32 %v8664_v54, %v2639_v9 }
 0x307   : > { %8725 = vst [vmem:[#allocation50_spill] sm:$0xff] %v6887_v8  ;;  %vm8589_vm9 = vcmp.lt.s32.totalorder %v6348_v26, 0  ;;  %v2644_v38 = vor.u32 %v2643_v51, %v2642_v21  ;;  %v2647_v32 = vor.u32 %v2646_v16, %v2645_v27  ;;  %v2655_v46 = vshrl.u32 %v8673_v56, %v2640_v63 }
 0x308   : > { %8723 = vst [vmem:[#allocation48_spill] sm:$0xff] %v6880_v34  ;;  %v2584_v45 = vshll.u32 %v6880_v34, 30  ;;  %v2650_v24 = vor.u32 %v2649_v58, %v2648_v2  ;;  %v2653_v47 = vor.u32 %v2652_v60, %v2651_v53  ;;  %vm2659_vm7 = vcmp.lt.s32.totalorder %v6858_v3, 3  ;;  %v6907_v2 = vpop.f32.mrb[8].mxu0 }
 0x309   : > { %v4793_v57 = vadd.s32 4294967169, %v2837_v4  ;;  %v6897_v8 = vpop.eup %5557  ;;  %v2656_v15 = vor.u32 %v2655_v46, %v2654_v12  ;;  %vm2658_vm10 = vcmp.lt.s32.totalorder %v6858_v3, 2  ;;  %vm2660_vm0 = vcmp.lt.s32.totalorder %v6858_v3, 4  ;;  %8727 = vst [vmem:[#allocation52_spill] sm:$0xff] %v6907_v2  ;;  %v6916_v51 = vpop.f32.mrb[9].mxu0 }
 0x30a   : > { %8726 = vst [vmem:[#allocation51_spill] sm:$0xff] %v6897_v8  ;;  %v6899_v5 = vsub.s32 %v2581_v23, %v2584_v45  ;;  %v2661_v9 = vsel %vm2657_vm8, %v2641_v31, %v2644_v38  ;;  %v2662_v21 = vsel %vm2660_vm0, %v2650_v24, 2102212464  ;;  %v2665_v63 = vsel %vm2657_vm8, %v2644_v38, %v2647_v32  ;;  %8728 = vst [vmem:[#allocation53_spill] sm:$0xff] %v6916_v51  ;;  %v6920_v60 = vpop.f32.mrb[10].mxu0 }
 0x30b   : > { %v2666_v27 = vsel %vm2660_vm0, %v2653_v47, 920167782  ;;  %v2663_v23 = vsel %vm2659_vm7, %v2647_v32, %v2662_v21  ;;  %v2669_v53 = vsel %vm2657_vm8, %v2647_v32, %v2650_v24  ;;  %v2390_v16 = vadd.s32 127, %v2389_v1  ;;  %8729 = vst [vmem:[#allocation54_spill] sm:$0xff] %v6920_v60 }
 0x30c   : > { %v2587_v4 = vsub.s32 0, %v6899_v5  ;;  %v2667_v46 = vsel %vm2659_vm7, %v2650_v24, %v2666_v27  ;;  %v2670_v31 = vsel %vm2660_vm0, %v2656_v15, 1326507024  ;;  %v2843_v58 = vadd.s32 1, %v4793_v57 }
 0x30d   : > { %v2668_v38 = vsel %vm2658_vm10, %v2665_v63, %v2667_v46  ;;  %v2386_v12 = vshll.u32 %v6765_v28, %v6856_v41  ;;  %v2671_v21 = vsel %vm2659_vm7, %v2653_v47, %v2670_v31  ;;  %v8730_v24 = vand.u32 2147483647, %v6724_v7 }
 0x30e   : > { %v4782_v45 = vmin.u32 %v2587_v4, %v6899_v5  ;;  %v2664_v1 = vsel %vm2658_vm10, %v2661_v9, %v2663_v23  ;;  %v2672_v15 = vsel %vm2658_vm10, %v2669_v53, %v2671_v21  ;;  %v2387_v28 = vshrl.u32 %v2369_v18, %v2385_v59 }
 0x30f   : > { %v2840_v32 = vand.u32 8388607, %v8730_v24  ;;  %v6934_v57 = vmul.u32.u64.low %v6864_v17, %v2668_v38  ;;  %v6935_v63 = vmul.u32.u64.high %v6864_v17, %v2668_v38, %v6934_v57  ;;  %5559 = vsinq.f32 %v6828_v19 }
 0x310   : > { %v2589_v41 = vclz %v4782_v45  ;;  %v6939_v27 = vmul.u32.u64.low %v6864_v17, %v2672_v15  ;;  %v6940_v4 = vmul.u32.u64.high %v6864_v17, %v2672_v15, %v6939_v27  ;;  %v2391_v47 = vshll.u32 %v2390_v16, 23 }
 0x311   : > { %vm2844_vm2 = vcmp.gt.s32.totalorder %v2843_v58, 0  ;;  %v2940_v9 = vand.u32 2139095040, %v6853_v35  ;;  %v2680_v3 = vmul.u32 %v6864_v17, %v2664_v1  ;;  %v2841_v46 = vor.u32 8388608, %v2840_v32 }
 0x312   : > { %v4783_v23 = vadd.s32 4294967294, %v2589_v41  ;;  %v2845_v53 = vsel %vm2844_vm2, %v2843_v58, 0  ;;  %v8731_v38 = vxor.u32 2147483648, %v6834_v10  ;;  %v2683_v19 = vadd.s32 1, %v6935_v63 }
 0x313   : > { %v2847_v16 = vand.u32 31, %v2845_v53  ;;  %v6954_v31 = vor.u32 %v2387_v28, %v2386_v12  ;;  %vm2682_vm7 = vc.u32 %v6940_v4, %v6934_v57  ;;  %v6959_v58 = vor.u32 4788187, %v2391_v47 }
 0x314   : > { %v6950_v18 = vsel %vm8589_vm9, %v8731_v38, %v6834_v10  ;;  %vm4784_vm8 = vcmp.lt.s32.totalorder %v4783_v23, 0  ;;  %v2684_v45 = vsel %vm2682_vm7, %v2683_v19, %v6935_v63  ;;  %v2941_v10 = vshrl.u32 %v2940_v9, 23 }
 0x315   : > { %v2848_v21 = vsub.s32 32, %v2847_v16  ;;  %v2577_v24 = vadd.s32 %v6801_v11, %v6809_v25  ;;  %v2592_v32 = vsel %vm4784_vm8, 0, %v4783_v23  ;;  %v2685_v1 = vadd.s32 %v2684_v45, %v2680_v3 }
 0x316   : > { %v6964_v15 = vshll.u32 %v2841_v46, 8  ;;  %v2850_v12 = vshll.u32 %v8667_v22, %v2847_v16  ;;  %v2853_v41 = vshll.u32 %v8662_v62, %v2847_v16  ;;  %v2846_v38 = vshrl.u32 %v2845_v53, 5 }
 0x317   : > { %v2851_v28 = vshrl.u32 %v8662_v62, %v2848_v21  ;;  %v2854_v27 = vshrl.u32 %v8663_v52, %v2848_v21  ;;  %v2686_v63 = vadd.s32 536870912, %v2685_v1  ;;  %v2856_v9 = vshll.u32 %v8663_v52, %v2847_v16 }
 0x318   : > { %v2393_v11 = vand.u32 2147483647, %v6959_v58  ;;  %v2857_v25 = vshrl.u32 %v8668_v61, %v2848_v21  ;;  %v2859_v23 = vshll.u32 %v8668_v61, %v2847_v16  ;;  %v4797_v3 = vadd.s32 4294967169, %v2941_v10 }
 0x319   : > { %v8732_v46 = vand.u32 2147483647, %v6348_v26  ;;  %v2597_v45 = vsub.s32 4294967266, %v2592_v32  ;;  %v6981_v59 = vshrl.u32 %v2686_v63, 30  ;;  %v2849_v53 = vshrl.u32 %v8667_v22, %v2848_v21  ;;  %v6985_v17 = vpop.eup %5559 }
 0x31a   : > { %v2860_v47 = vshrl.u32 %v8664_v54, %v2848_v21  ;;  %8736 = vst [vmem:[#allocation56_spill] sm:$0xff] %v6985_v17  ;;  %v2852_v58 = vor.u32 %v2851_v28, %v2850_v12  ;;  %v2855_v34 = vor.u32 %v2854_v27, %v2853_v41  ;;  %v2862_v8 = vshll.u32 %v8664_v54, %v2847_v16 }
 0x31b   : > { %vm6977_vm10 = vcmp.le.f32.partialorder %v8732_v46, 0.7853982  ;;  %8735 = vst [vmem:[#allocation55_spill] sm:$0xff] %v6981_v59  ;;  %v2863_v10 = vshrl.u32 %v8673_v56, %v2848_v21  ;;  %vm8583_vm0 = vcmp.lt.s32.totalorder %v6392_v14, 0  ;;  %v2688_v46 = vshll.u32 %v6981_v59, 30 }
 0x31c   : > { %v2858_v60 = vor.u32 %v2857_v25, %v2856_v9  ;;  %v2861_v51 = vor.u32 %v2860_v47, %v2859_v23  ;;  %vm2865_vm2 = vcmp.lt.s32.totalorder %v2846_v38, 1  ;;  %v2593_v63 = vsub.s32 32, %v2592_v32 }
 0x31d   : > { %v2864_v2 = vor.u32 %v2863_v10, %v2862_v8  ;;  %vm2867_vm8 = vcmp.lt.s32.totalorder %v2846_v38, 3  ;;  %vm2868_vm7 = vcmp.lt.s32.totalorder %v2846_v38, 4  ;;  %v2598_v7 = vadd.s32 127, %v2597_v45 }
 0x31e   : > { %v6991_v49 = vsub.s32 %v2685_v1, %v2688_v46  ;;  %vm2866_vm6 = vcmp.lt.s32.totalorder %v2846_v38, 2  ;;  %v2870_v12 = vsel %vm2868_vm7, %v2858_v60, 2102212464  ;;  %v2869_v16 = vsel %vm2865_vm2, %v2849_v53, %v2852_v58 }
 0x31f   : > { %v2871_v21 = vsel %vm2867_vm8, %v2855_v34, %v2870_v12  ;;  %v2873_v28 = vsel %vm2865_vm2, %v2852_v58, %v2855_v34  ;;  %v2874_v41 = vsel %vm2868_vm7, %v2861_v51, 920167782  ;;  %v2594_v27 = vshll.u32 %v6899_v5, %v2592_v32 }
 0x320   : > { %v2691_v47 = vsub.s32 0, %v6991_v49  ;;  %v2875_v8 = vsel %vm2867_vm8, %v2858_v60, %v2874_v41  ;;  %v2877_v9 = vsel %vm2865_vm2, %v2855_v34, %v2858_v60  ;;  %v2595_v25 = vshrl.u32 %v2577_v24, %v2593_v63 }
 0x321   : > { %v2876_v1 = vsel %vm2866_vm6, %v2873_v28, %v2875_v8  ;;  %v2878_v23 = vsel %vm2868_vm7, %v2864_v2, 1326507024  ;;  %v2947_v45 = vadd.s32 1, %v4797_v3  ;;  %v2599_v10 = vshll.u32 %v2598_v7, 23 }
 0x322   : > { %v4786_v53 = vmin.u32 %v2691_v47, %v6991_v49  ;;  %v2872_v46 = vsel %vm2866_vm6, %v2869_v16, %v2871_v21  ;;  %v2879_v58 = vsel %vm2867_vm8, %v2861_v51, %v2878_v23  ;;  %v7016_v7 = vadd.f32 %v6343_v6, %v5889_v33 }
 0x323   : > { %v2880_v5 = vsel %vm2866_vm6, %v2877_v9, %v2879_v58  ;;  %v7006_v32 = vmul.u32.u64.low %v6964_v15, %v2876_v1  ;;  %v7007_v12 = vmul.u32.u64.high %v6964_v15, %v2876_v1, %v7006_v32  ;;  %vm2948_vm2 = vcmp.gt.s32.totalorder %v2947_v45, 0 }
 0x324   : > { %v2693_v34 = vclz %v4786_v53  ;;  %v7011_v60 = vmul.u32.u64.low %v6964_v15, %v2880_v5  ;;  %v7012_v2 = vmul.u32.u64.high %v6964_v15, %v2880_v5, %v7011_v60  ;;  %8737 = vst [vmem:[#allocation57_spill] sm:$0xff] %v7016_v7  ;;  %v7022_v51 = vsel %vm6977_vm10, %v6348_v26, %v6950_v18 }
 0x325   : > { %v7024_v24 = vor.u32 %v2595_v25, %v2594_v27  ;;  %v8738_v38 = vand.u32 2147483647, %v6853_v35  ;;  %v2949_v63 = vsel %vm2948_vm2, %v2947_v45, 0  ;;  %v7028_v16 = vor.u32 4788187, %v2599_v10 }
 0x326   : > { %v4787_v21 = vadd.s32 4294967294, %v2693_v34  ;;  %v2888_v28 = vmul.u32 %v6964_v15, %v2872_v46  ;;  %v2951_v41 = vand.u32 31, %v2949_v63  ;;  %v8739_v33 = vxor.u32 2147483648, %v6860_v44 }
 0x327   : > { %v2944_v3 = vand.u32 8388607, %v8738_v38  ;;  %v8740_v18 = vcvt.s32.f32 %v6954_v31  ;;  %v2891_v47 = vadd.s32 1, %v7007_v12  ;;  %v2681_v9 = vadd.s32 %v6934_v57, %v6940_v4 }
 0x328   : > { %v7036_v6 = vsel %vm8583_vm0, %v8739_v33, %v6860_v44  ;;  %vm4788_vm6 = vcmp.lt.s32.totalorder %v4787_v21, 0  ;;  %vm2890_vm8 = vc.u32 %v7012_v2, %v7006_v32  ;;  %v2952_v15 = vsub.s32 32, %v2951_v41 }
 0x329   : > { %v7040_v27 = vmul.f32 %v8740_v18, %v2393_v11  ;;  %v2603_v25 = vcvt.s32.f32 %v7024_v24  ;;  %v7049_v44 = vsel %vm4788_vm6, 0, %v4787_v21  ;;  %v2892_v31 = vsel %vm2890_vm8, %v2891_v47, %v7007_v12 }
 0x32a   : > { %v2945_v11 = vor.u32 8388608, %v2944_v3  ;;  %v2601_v1 = vand.u32 2147483647, %v7028_v16  ;;  %v2893_v23 = vadd.s32 %v2892_v31, %v2888_v28  ;;  %v2954_v45 = vshll.u32 %v8667_v22, %v2951_v41 }
 0x32b   : > { %v2957_v10 = vshll.u32 %v8662_v62, %v2951_v41  ;;  %v2950_v57 = vshrl.u32 %v2949_v63, 5  ;;  %v2955_v4 = vshrl.u32 %v8662_v62, %v2952_v15  ;;  %v2958_v53 = vshrl.u32 %v8663_v52, %v2952_v15 }
 0x32c   : > { %v2960_v46 = vshll.u32 %v8663_v52, %v2951_v41  ;;  %v2701_v58 = vsub.s32 4294967266, %v7049_v44  ;;  %v2894_v5 = vadd.s32 536870912, %v2893_v23  ;;  %v2961_v12 = vshrl.u32 %v8668_v61, %v2952_v15 }
 0x32d   : > { %v3148_v34 = vand.u32 2139095040, %v7016_v7  ;;  %v2953_v60 = vshrl.u32 %v8667_v22, %v2952_v15  ;;  %v2963_v24 = vshll.u32 %v8668_v61, %v2951_v41  ;;  %v2964_v38 = vshrl.u32 %v8664_v54, %v2952_v15 }
 0x32e   : > { %v7064_v3 = vshll.u32 %v2945_v11, 8  ;;  %v7066_v63 = vshrl.u32 %v2894_v5, 30  ;;  %v2956_v16 = vor.u32 %v2955_v4, %v2954_v45  ;;  %v2959_v21 = vor.u32 %v2958_v53, %v2957_v10 }
 0x32f   : > { %v2962_v28 = vor.u32 %v2961_v12, %v2960_v46  ;;  %v2965_v33 = vor.u32 %v2964_v38, %v2963_v24  ;;  %v2966_v18 = vshll.u32 %v8664_v54, %v2951_v41  ;;  %v2967_v47 = vshrl.u32 %v8673_v56, %v2952_v15 }
 0x330   : > { %8741 = vst [vmem:[#allocation58_spill] sm:$0xff] %v7066_v63  ;;  %vm2969_vm7 = vcmp.lt.s32.totalorder %v2950_v57, 1  ;;  %v8742_v31 = vand.u32 2147483647, %v6392_v14  ;;  %v8743_v8 = vmov 0  ;;  %v2697_v11 = vsub.s32 32, %v7049_v44 }
 0x331   : > { %v2702_v59 = vadd.s32 127, %v2701_v58  ;;  %v2896_v5 = vshll.u32 %v7066_v63, 30  ;;  %v3149_v45 = vshrl.u32 %v3148_v34, 23  ;;  %v2968_v10 = vor.u32 %v2967_v47, %v2966_v18 }
 0x332   : > { %vm7072_vm2 = vcmp.le.f32.partialorder %v8742_v31, 0.7853982  ;;  %vm2970_vm6 = vcmp.lt.s32.totalorder %v2950_v57, 2  ;;  %vm2971_vm8 = vcmp.lt.s32.totalorder %v2950_v57, 3  ;;  %vm2972_vm0 = vcmp.lt.s32.totalorder %v2950_v57, 4 }
 0x333   : > { %v8744_v8 = vsel %vm7072_vm2, 4294967295, %v8743_v8  ;;  %v7078_v41 = vsub.s32 %v2893_v23, %v2896_v5  ;;  %v2973_v15 = vsel %vm2969_vm7, %v2953_v60, %v2956_v16  ;;  %v2974_v4 = vsel %vm2972_vm0, %v2962_v28, 2102212464 }
 0x334   : > { %8745 = vst [vmem:[#allocation59_spill] sm:$0xff] %v8744_v8  ;;  %v2977_v53 = vsel %vm2969_vm7, %v2956_v16, %v2959_v21  ;;  %v2975_v46 = vsel %vm2971_vm8, %v2959_v21, %v2974_v4  ;;  %v2978_v12 = vsel %vm2972_vm0, %v2965_v33, 920167782  ;;  %v2981_v24 = vsel %vm2969_vm7, %v2959_v21, %v2962_v28 }
 0x335   : > { %v2982_v58 = vsel %vm2972_vm0, %v2968_v10, 1326507024  ;;  %v2698_v34 = vshll.u32 %v6991_v49, %v7049_v44  ;;  %v2699_v38 = vshrl.u32 %v2681_v9, %v2697_v11  ;;  %v2899_v18 = vsub.s32 0, %v7078_v41 }
 0x336   : > { %v2979_v23 = vsel %vm2971_vm8, %v2962_v28, %v2978_v12  ;;  %v2703_v47 = vshll.u32 %v2702_v59, 23  ;;  %v2983_v31 = vsel %vm2971_vm8, %v2965_v33, %v2982_v58  ;;  %v4805_v16 = vadd.s32 4294967169, %v3149_v45 }
 0x337   : > { %v2980_v60 = vsel %vm2970_vm6, %v2977_v53, %v2979_v23  ;;  %v4794_v5 = vmin.u32 %v2899_v18, %v7078_v41  ;;  %v2976_v4 = vsel %vm2970_vm6, %v2973_v15, %v2975_v46  ;;  %v2984_v21 = vsel %vm2970_vm6, %v2981_v24, %v2983_v31  ;;  %v7137_v23 = vld [vmem:[%s8501_s4 + $0x30] ss:$0 sm:$0xff] }
 0x338   : > { %v8746_v10 = vand.u32 2147483647, %v7016_v7  ;;  %v7096_v9 = vmul.u32.u64.low %v7064_v3, %v2984_v21  ;;  %v7097_v44 = vmul.u32.u64.high %v7064_v3, %v2984_v21, %v7096_v9  ;;  %v2397_v33 = vxor.u32 2147483648, %v7040_v27 }
 0x339   : > { %v7100_v59 = vmul.u32.u64.low %v7064_v3, %v2980_v60  ;;  %v7101_v28 = vmul.u32.u64.high %v7064_v3, %v2980_v60, %v7100_v59  ;;  %v7105_v11 = vmul.f32 %v2603_v25, %v2601_v1  ;;  %v2901_v45 = vclz %v4794_v5 }
 0x33a   : > { %v3152_v49 = vand.u32 8388607, %v8746_v10  ;;  %v3155_v15 = vadd.s32 1, %v4805_v16  ;;  %5561 = vcosq.f32 %v7022_v51  ;;  %vm8587_vm0 = vcmp.lt.s32.totalorder %v6427_v0, 0 }
 0x33b   : > { %v7109_v57 = vor.u32 %v2699_v38, %v2698_v34  ;;  %v7111_v53 = vor.u32 4788187, %v2703_v47  ;;  %v4795_v46 = vadd.s32 4294967294, %v2901_v45  ;;  %v2992_v12 = vmul.u32 %v7064_v3, %v2976_v4  ;;  %v7169_v34 = vpop.f32.mrb[11].mxu0 }
 0x33c   : > { %v3153_v24 = vor.u32 8388608, %v3152_v49  ;;  %vm3156_vm7 = vcmp.gt.s32.totalorder %v3155_v15, 0  ;;  %5563 = vsinq.f32 %v7022_v51  ;;  %v7119_v25 = vsel %vm7072_vm2, %v6392_v14, %v7036_v6 }
 0x33d   : > { %vm2994_vm6 = vc.u32 %v7097_v44, %v7100_v59  ;;  %v2995_v1 = vadd.s32 1, %v7101_v28  ;;  %v7127_v58 = vsel %vm8587_vm0, %v2397_v33, %v7040_v27  ;;  %vm4796_vm8 = vcmp.lt.s32.totalorder %v4795_v46, 0 }
 0x33e   : > { %v3157_v51 = vsel %vm3156_vm7, %v3155_v15, 0  ;;  %v2889_v6 = vadd.s32 %v7006_v32, %v7012_v2  ;;  %v2705_v27 = vand.u32 2147483647, %v7111_v53  ;;  %v7140_v60 = vshll.u32 %v3153_v24, 8 }
 0x33f   : > { %v2996_v38 = vsel %vm2994_vm6, %v2995_v1, %v7101_v28  ;;  %v3159_v18 = vand.u32 31, %v3157_v51  ;;  %v7144_v31 = vadd.f32 %v6448_v30, %v5891_v36  ;;  %v2904_v16 = vsel %vm4796_vm8, 0, %v4795_v46 }
 0x340   : > { %v2997_v47 = vadd.s32 %v2996_v38, %v2992_v12  ;;  %v7152_v49 = vadd.f32 %v6811_v48, %v7137_v23  ;;  %v3158_v9 = vshrl.u32 %v3157_v51, 5  ;;  %v2909_v33 = vsub.s32 4294967266, %v2904_v16 }
 0x341   : > { %v3160_v5 = vsub.s32 32, %v3159_v18  ;;  %v3162_v32 = vshll.u32 %v8667_v22, %v3159_v18  ;;  %v3165_v2 = vshll.u32 %v8662_v62, %v3159_v18  ;;  %v3168_v21 = vshll.u32 %v8663_v52, %v3159_v18 }
 0x342   : > { %v2998_v4 = vadd.s32 536870912, %v2997_v47  ;;  %v3171_v10 = vshll.u32 %v8668_v61, %v3159_v18  ;;  %v7162_v53 = vadd.f32 %v6836_v13, %v7137_v23  ;;  %v2905_v48 = vsub.s32 32, %v2904_v16 }
 0x343   : > { %v3163_v28 = vshrl.u32 %v8662_v62, %v3160_v5  ;;  %v3166_v36 = vshrl.u32 %v8663_v52, %v3160_v5  ;;  %v3169_v30 = vshrl.u32 %v8668_v61, %v3160_v5  ;;  %v3172_v15 = vshrl.u32 %v8664_v54, %v3160_v5 }
 0x344   : > { %v7157_v45 = vshrl.u32 %v2998_v4, 30  ;;  %v7164_v46 = vpop.eup %5561  ;;  %v3174_v1 = vshll.u32 %v8664_v54, %v3159_v18  ;;  %v3161_v38 = vshrl.u32 %v8667_v22, %v3160_v5  ;;  %v2906_v13 = vshll.u32 %v7078_v41, %v2904_v16 }
 0x345   : > { %v3164_v12 = vor.u32 %v3163_v28, %v3162_v32  ;;  %v3167_v24 = vor.u32 %v3166_v36, %v3165_v2  ;;  %v3170_v3 = vor.u32 %v3169_v30, %v3168_v21  ;;  %v3173_v4 = vor.u32 %v3172_v15, %v3171_v10 }
 0x346   : > { %8747 = vst [vmem:[#allocation60_spill] sm:$0xff] %v7157_v45  ;;  %v3000_v51 = vshll.u32 %v7157_v45, 30  ;;  %v7171_v63 = vpop.eup %5563  ;;  %v3175_v8 = vshrl.u32 %v8673_v56, %v3160_v5  ;;  %vm3177_vm7 = vcmp.lt.s32.totalorder %v3158_v9, 1  ;;  %vm3179_vm6 = vcmp.lt.s32.totalorder %v3158_v9, 3 }
 0x347   : > { %v8748_v32 = vand.u32 2147483647, %v6427_v0  ;;  %vm8598_vm0 = vcmp.lt.s32.totalorder %v6614_v55, 0  ;;  %v2910_v2 = vadd.s32 127, %v2909_v33  ;;  %vm3178_vm15 = vcmp.lt.s32.totalorder %v3158_v9, 2 }
 0x348   : > { %v7182_v21 = vsub.s32 %v2997_v47, %v3000_v51  ;;  %vm3180_vm9 = vcmp.lt.s32.totalorder %v3158_v9, 4  ;;  %v3176_v10 = vor.u32 %v3175_v8, %v3174_v1  ;;  %v3185_v41 = vsel %vm3177_vm7, %v3164_v12, %v3167_v24 }
 0x349   : > { %vm7177_vm8 = vcmp.le.f32.partialorder %v8748_v32, 0.7853982  ;;  %v3182_v28 = vsel %vm3180_vm9, %v3170_v3, 2102212464  ;;  %v3186_v16 = vsel %vm3180_vm9, %v3173_v4, 920167782  ;;  %v3181_v36 = vsel %vm3177_vm7, %v3161_v38, %v3164_v12 }
 0x34a   : > { %v3003_v5 = vsub.s32 0, %v7182_v21  ;;  %v3183_v30 = vsel %vm3179_vm6, %v3167_v24, %v3182_v28  ;;  %v3187_v15 = vsel %vm3179_vm6, %v3170_v3, %v3186_v16  ;;  %v8751_v32 = vand.u32 2147483647, %v6614_v55 }
 0x34b   : > { %v8752_v47 = vmov 0  ;;  %vm8599_vm13 = vcmp.lt.s32.totalorder %v6700_v43, 0  ;;  %v2907_v8 = vshrl.u32 %v2889_v6, %v2905_v48  ;;  %v3188_v33 = vsel %vm3178_vm15, %v3185_v41, %v3187_v15 }
 0x34c   : > { %vm7191_vm11 = vcmp.le.f32.partialorder %v8751_v32, 0.7853982  ;;  %v3189_v1 = vsel %vm3177_vm7, %v3167_v24, %v3170_v3  ;;  %v3190_v51 = vsel %vm3180_vm9, %v3176_v10, 1326507024  ;;  %v2911_v45 = vshll.u32 %v2910_v2, 23 }
 0x34d   : > { %v8753_v47 = vsel %vm7191_vm11, 4294967295, %v8752_v47  ;;  %v4798_v12 = vmin.u32 %v3003_v5, %v7182_v21  ;;  %v3191_v38 = vsel %vm3179_vm6, %v3173_v4, %v3190_v51  ;;  %v8597_v28 = vand.u32 2147483647, %v7144_v31 }
 0x34e   : > { %8754 = vst [vmem:[#allocation61_spill] sm:$0xff] %v8753_v47  ;;  %v3184_v16 = vsel %vm3178_vm15, %v3181_v36, %v3183_v30  ;;  %v3192_v32 = vsel %vm3178_vm15, %v3189_v1, %v3191_v38  ;;  %v7204_v14 = vmul.u32.u64.low %v7140_v60, %v3188_v33  ;;  %v7205_v17 = vmul.u32.u64.high %v7140_v60, %v3188_v33, %v7204_v14 }
 0x34f   : > { %v8755_v6 = vcvt.s32.f32 %v7109_v57  ;;  %v3005_v3 = vclz %v4798_v12  ;;  %v7210_v24 = vmul.u32.u64.low %v7140_v60, %v3192_v32  ;;  %v7211_v2 = vmul.u32.u64.high %v7140_v60, %v3192_v32, %v7210_v24 }
 0x350   : > { %v2908_v10 = vor.u32 %v2907_v8, %v2906_v13  ;;  %v3252_v4 = vand.u32 2139095040, %v7144_v31  ;;  %v694_v41 = vadd.f32 %v6818_v40, %v7137_v23  ;;  %v3458_v9 = vpack.c.bf16 %v7162_v53, %v7152_v49 }
 0x351   : > { %v2708_v48 = vmul.f32 %v8755_v6, %v2705_v27  ;;  %v2912_v5 = vor.u32 4788187, %v2911_v45  ;;  %v4799_v36 = vadd.s32 4294967294, %v3005_v3  ;;  %v3200_v30 = vmul.u32 %v7140_v60, %v3184_v16 }
 0x352   : > { %v697_v57 = vadd.f32 %v6840_v29, %v7137_v23  ;;  %5565 = vcosq.f32 %v7119_v25  ;;  %v3203_v27 = vadd.s32 1, %v7205_v17  ;;  %v3253_v13 = vshrl.u32 %v3252_v4, 23 }
 0x353   : > { %v3256_v15 = vand.u32 8388607, %v8597_v28  ;;  %5567 = vsinq.f32 %v7119_v25  ;;  %v2709_v40 = vxor.u32 2147483648, %v2708_v48  ;;  %vm3202_vm15 = vc.u32 %v7211_v2, %v7204_v14 }
 0x354   : > { %v3457_v49 = vpack.c.bf16 %v697_v57, %v694_v41  ;;  %v7231_v60 = vsel %vm7177_vm8, %v6427_v0, %v7127_v58  ;;  %v8756_v29 = vxor.u32 2147483648, %v7105_v11  ;;  %v3204_v53 = vsel %vm3202_vm15, %v3203_v27, %v7205_v17 }
 0x355   : > { %v4809_v8 = vadd.s32 4294967169, %v3253_v13  ;;  %v2913_v25 = vand.u32 2147483647, %v2912_v5  ;;  %v2915_v33 = vcvt.s32.f32 %v2908_v10  ;;  %vm4800_vm9 = vcmp.lt.s32.totalorder %v4799_v36, 0 }
 0x356   : > { %v2606_v45 = vsel %vm8598_vm0, %v8756_v29, %v7105_v11  ;;  %v3205_v1 = vadd.s32 %v3204_v53, %v3200_v30  ;;  %5148 = vmatprep.mubr.bf16.mxu0 %v3457_v49  ;;  %v3257_v51 = vor.u32 8388608, %v3256_v15  ;;  %v7241_v58 = vadd.f32 %v6866_v50, %v7137_v23 }
 0x357   : > { %v3259_v12 = vadd.s32 1, %v4809_v8  ;;  %5149 = vmatmul.mubr.bf16.vlgmr.msra.gmra.mrb[16].mxu0 %v3458_v9  ;;  %v7245_v38 = vadd.f32 %v6876_v37, %v7137_v23  ;;  %5569 = vcosq.f32 %v7231_v60  ;;  %v7251_v17 = vsel %vm7191_vm11, %v6614_v55, %v2606_v45 }
 0x358   : > { %v7255_v11 = vsel %vm8599_vm13, %v2709_v40, %v2708_v48  ;;  %v3206_v16 = vadd.s32 536870912, %v3205_v1  ;;  %v2993_v50 = vadd.s32 %v7100_v59, %v7097_v44  ;;  %v3008_v32 = vsel %vm4800_vm9, 0, %v4799_v36 }
 0x359   : > { %vm3260_vm7 = vcmp.gt.s32.totalorder %v3259_v12, 0  ;;  %v7261_v6 = vmul.f32 %v2915_v33, %v2913_v25  ;;  %v1151_v10 = vsub.s32 4, %v6050_v20  ;;  %v3009_v4 = vsub.s32 32, %v3008_v32 }
 0x35a   : > { %v7263_v3 = vshrl.u32 %v3206_v16, 30  ;;  %v3261_v24 = vsel %vm3260_vm7, %v3259_v12, 0  ;;  %v7267_v48 = vadd.s32 %v7204_v14, %v7211_v2  ;;  %v7269_v9 = vshll.u32 %v3257_v51, 8 }
 0x35b   : > { %v3263_v41 = vand.u32 31, %v3261_v24  ;;  %v3010_v44 = vshll.u32 %v7182_v21, %v3008_v32  ;;  %v3013_v59 = vsub.s32 4294967266, %v3008_v32  ;;  %v7275_v36 = vadd.f32 %v6870_v39, %v7137_v23 }
 0x35c   : > { %8757 = vst [vmem:[#allocation62_spill] sm:$0xff] %v7263_v3  ;;  %v3208_v5 = vshll.u32 %v7263_v3, 30  ;;  %v7277_v30 = vpop.eup %5565  ;;  %v3262_v57 = vshrl.u32 %v3261_v24, 5  ;;  %v1152_v39 = vsel %vm1067_vm12, %v1151_v10, %v6050_v20  ;;  %v3011_v8 = vshrl.u32 %v2993_v50, %v3009_v4 }
 0x35d   : > { %8758 = vst [vmem:[#allocation63_spill] sm:$0xff] %v7277_v30  ;;  %v3264_v27 = vsub.s32 32, %v3263_v41  ;;  %v3266_v13 = vshll.u32 %v8667_v22, %v3263_v41  ;;  %v3269_v14 = vshll.u32 %v8662_v62, %v3263_v41  ;;  %v7281_v2 = vpop.eup %5567  ;;  %v3272_v21 = vshll.u32 %v8663_v52, %v3263_v41  ;;  %v8780_v30 = vld [vmem:[#allocation45_spill] sm:$0xff] }
 0x35e   : > { %8759 = vst [vmem:[#allocation64_spill] sm:$0xff] %v7281_v2  ;;  %v7283_v15 = vsub.s32 %v3205_v1, %v3208_v5  ;;  %v3275_v40 = vshll.u32 %v8668_v61, %v3263_v41  ;;  %v3278_v53 = vshll.u32 %v8664_v54, %v3263_v41  ;;  %v3014_v51 = vadd.s32 127, %v3013_v59  ;;  %v8762_v5 = vld [vmem:[#allocation18_spill] sm:$0xff] }
 0x35f   : > { %v3267_v49 = vshrl.u32 %v8662_v62, %v3264_v27  ;;  %v3270_v29 = vshrl.u32 %v8663_v52, %v3264_v27  ;;  %v3273_v45 = vshrl.u32 %v8668_v61, %v3264_v27  ;;  %v3276_v33 = vshrl.u32 %v8664_v54, %v3264_v27 }
 0x360   : > { %v3211_v25 = vsub.s32 0, %v7283_v15  ;;  %v3279_v1 = vshrl.u32 %v8673_v56, %v3264_v27  ;;  %vm3281_vm6 = vcmp.lt.s32.totalorder %v3262_v57, 1  ;;  %v1154_v41 = vsel %vm6319_vm3, 0, %v1152_v39 }
 0x361   : > { %v3268_v12 = vor.u32 %v3267_v49, %v3266_v13  ;;  %v3271_v16 = vor.u32 %v3270_v29, %v3269_v14  ;;  %v7297_v20 = vpop.eup %5569  ;;  %v3274_v24 = vor.u32 %v3273_v45, %v3272_v21  ;;  %v3277_v10 = vor.u32 %v3276_v33, %v3275_v40  ;;  %v8761_v40 = vld [vmem:[#allocation29_spill] sm:$0xff] }
 0x362   : > { %v4806_v32 = vmin.u32 %v3211_v25, %v7283_v15  ;;  %v3265_v50 = vshrl.u32 %v8667_v22, %v3264_v27  ;;  %v3280_v4 = vor.u32 %v3279_v1, %v3278_v53  ;;  %vm3283_vm12 = vcmp.lt.s32.totalorder %v3262_v57, 3 }
 0x363   : > { %vm3284_vm15 = vcmp.lt.s32.totalorder %v3262_v57, 4  ;;  %vm3282_vm9 = vcmp.lt.s32.totalorder %v3262_v57, 2  ;;  %v3289_v13 = vsel %vm3281_vm6, %v3268_v12, %v3271_v16  ;;  %v7305_v14 = vor.u32 %v3011_v8, %v3010_v44  ;;  %v8764_v57 = vld [vmem:[#allocation15_spill] sm:$0xff] }
 0x364   : > { %v3213_v28 = vclz %v4806_v32  ;;  %v3286_v59 = vsel %vm3284_vm15, %v3274_v24, 2102212464  ;;  %v3290_v49 = vsel %vm3284_vm15, %v3277_v10, 920167782  ;;  %v1158_v21 = vadd.s32 3, %v1154_v41 }
 0x365   : > { %v1162_v29 = vxor.u32 2147483648, %v8761_v40  ;;  %v3015_v45 = vshll.u32 %v3014_v51, 23  ;;  %v3291_v27 = vsel %vm3283_vm12, %v3274_v24, %v3290_v49  ;;  %v3293_v53 = vsel %vm3281_vm6, %v3271_v16, %v3274_v24 }
 0x366   : > { %v4807_v39 = vadd.s32 4294967294, %v3213_v28  ;;  %v3285_v25 = vsel %vm3281_vm6, %v3265_v50, %v3268_v12  ;;  %v3287_v33 = vsel %vm3283_vm12, %v3271_v16, %v3286_v59  ;;  %v3292_v1 = vsel %vm3282_vm9, %v3289_v13, %v3291_v27  ;;  %v8763_v59 = vld [vmem:[#allocation28_spill] sm:$0xff] }
 0x367   : > { %v3294_v44 = vsel %vm3284_vm15, %v3280_v4, 1326507024  ;;  %vm1157_vm3 = vweird.f32 %v5902_v42  ;;  %v7318_v51 = vmul.u32.u64.low %v7269_v9, %v3292_v1  ;;  %v7319_v28 = vmul.u32.u64.high %v7269_v9, %v3292_v1, %v7318_v51 }
 0x368   : > { %vm4808_vm7 = vcmp.lt.s32.totalorder %v4807_v39, 0  ;;  %v3295_v8 = vsel %vm3283_vm12, %v3277_v10, %v3294_v44  ;;  %v1159_v12 = vand.u32 3, %v1158_v21  ;;  %v1463_v16 = vsub.s32 4, %v8762_v5 }
 0x369   : > { %v3216_v32 = vsel %vm4808_vm7, 0, %v4807_v39  ;;  %v3296_v24 = vsel %vm3282_vm9, %v3293_v53, %v3295_v8  ;;  %v7324_v41 = vor.u32 4788187, %v3015_v45  ;;  %v3288_v4 = vsel %vm3282_vm9, %v3285_v25, %v3287_v33  ;;  %v8766_v33 = vld [vmem:[#allocation13_spill] sm:$0xff] }
 0x36a   : > { %v3221_v50 = vsub.s32 4294967266, %v3216_v32  ;;  %v1165_v13 = vxor.u32 2147483648, %v8763_v59  ;;  %v7330_v49 = vmul.u32.u64.low %v7269_v9, %v3296_v24  ;;  %v7331_v27 = vmul.u32.u64.high %v7269_v9, %v3296_v24, %v7330_v49 }
 0x36b   : > { %vm1161_vm6 = vcmp.eq.s32.totalorder %v1159_v12, 0  ;;  %v3217_v39 = vsub.s32 32, %v3216_v32  ;;  %v3307_v53 = vadd.s32 1, %v7319_v28  ;;  %vm1160_vm12 = vcmp.lt.s32.totalorder %v1159_v12, 2 }
 0x36c   : > { %v1163_v21 = vsel %vm1161_vm6, %v8763_v59, %v1162_v29  ;;  %v3222_v45 = vadd.s32 127, %v3221_v50  ;;  %v3304_v1 = vmul.u32 %v7269_v9, %v3288_v4  ;;  %vm1164_vm15 = vcmp.eq.s32.totalorder %v1159_v12, 2  ;;  %v8769_v50 = vld [vmem:[#allocation36_spill] sm:$0xff] }
 0x36d   : > { %vm8765_vm9 = vcmp.lt.s32.totalorder %v8764_v57, 0  ;;  %v3017_v44 = vand.u32 2147483647, %v7324_v41  ;;  %v3218_v8 = vshll.u32 %v7283_v15, %v3216_v32  ;;  %v1166_v24 = vsel %vm1164_vm15, %v1165_v13, %v8761_v40  ;;  %v7352_v32 = vpop.f32.mrb[12].mxu0  ;;  %v8770_v40 = vld [vmem:[#allocation14_spill] sm:$0xff] }
 0x36e   : > { %v1464_v25 = vsel %vm8765_vm9, %v1463_v16, %v8762_v5  ;;  %vm3306_vm6 = vc.u32 %v7331_v27, %v7318_v51  ;;  %v1167_v9 = vsel %vm1160_vm12, %v1163_v21, %v1166_v24  ;;  %vm1469_vm0 = vweird.f32 %v8764_v57  ;;  %v8768_v16 = vld [vmem:[#allocation40_spill] sm:$0xff]  ;;  %v8771_v21 = vld [vmem:[#allocation49_spill] sm:$0xff]  ;;  %v7357_v24 = vpop.f32.mrb[13].mxu0 }
 0x36f   : > { %v1466_v10 = vsel %vm6355_vm14, 0, %v1464_v25  ;;  %v3219_v12 = vshrl.u32 %v7267_v48, %v3217_v39  ;;  %v3308_v5 = vsel %vm3306_vm6, %v3307_v53, %v7319_v28  ;;  %v1474_v41 = vxor.u32 2147483648, %v8768_v16  ;;  %v8775_v39 = vld [vmem:[#allocation44_spill] sm:$0xff]  ;;  %v8776_v53 = vld [vmem:[#allocation27_spill] sm:$0xff] }
 0x370   : > { %v1470_v29 = vadd.s32 3, %v1466_v10  ;;  %v1477_v15 = vxor.u32 2147483648, %v8769_v50  ;;  %v3223_v4 = vshll.u32 %v3222_v45, 23  ;;  %v3309_v59 = vadd.s32 %v3308_v5, %v3304_v1 }
 0x371   : > { %v713_v25 = vadd.f32 %v8771_v21, %v7137_v23  ;;  %v8772_v48 = vand.u32 2147483647, %v6700_v43  ;;  %v1168_v10 = vsel %vm1157_vm3, nan, %v1167_v9  ;;  %vm1056_vm12 = vcmp.lt.s32.totalorder %v8775_v39, 2  ;;  %v8777_v23 = vld [vmem:[#allocation38_spill] sm:$0xff] }
 0x372   : > { %v1471_v13 = vand.u32 3, %v1470_v29  ;;  %vm1057_vm9 = vcmp.eq.s32.totalorder %v8775_v39, 0  ;;  %v1058_v45 = vxor.u32 2147483648, %v8776_v53  ;;  %v3310_v1 = vadd.s32 536870912, %v3309_v59  ;;  %v8779_v21 = vld [vmem:[#allocation26_spill] sm:$0xff] }
 0x373   : > { %vm7361_vm14 = vcmp.le.f32.partialorder %v8772_v48, 0.7853982  ;;  %vm8624_vm7 = vcmp.lt.s32.totalorder %v8777_v23, 0  ;;  %v3459_v5 = vpack.c.bf16 %v713_v25, %v7275_v36  ;;  %vm1060_vm3 = vcmp.eq.s32.totalorder %v8775_v39, 2  ;;  %v8787_v25 = vld [vmem:[#allocation30_spill] sm:$0xff] }
 0x374   : > { %vm1472_vm6 = vcmp.lt.s32.totalorder %v1471_v13, 2  ;;  %vm1473_vm13 = vcmp.eq.s32.totalorder %v1471_v13, 0  ;;  %vm1476_vm15 = vcmp.eq.s32.totalorder %v1471_v13, 2  ;;  %v7375_v42 = vshrl.u32 %v3310_v1, 30  ;;  %v7400_v1 = vpop.f32.mrb[14].mxu0 }
 0x375   : > { %v1475_v49 = vsel %vm1473_vm13, %v8769_v50, %v1474_v41  ;;  %v1478_v29 = vsel %vm1476_vm15, %v1477_v15, %v8768_v16  ;;  %v1059_v48 = vsel %vm1057_vm9, %v8779_v21, %v1058_v45  ;;  %v1061_v37 = vxor.u32 2147483648, %v8779_v21  ;;  %5152 = vmatprep.mubr.bf16.mxu0 %v3459_v5  ;;  %v8790_v5 = vld [vmem:[#allocation8_spill] sm:$0xff] }
 0x376   : > { %8778 = vst [vmem:[#allocation21_spill] sm:$0xff] %v7375_v42  ;;  %v1479_v9 = vsel %vm1472_vm6, %v1475_v49, %v1478_v29  ;;  %v3220_v3 = vor.u32 %v3219_v12, %v3218_v8  ;;  %v3224_v47 = vor.u32 4788187, %v3223_v4  ;;  %vm1369_vm13 = vcmp.eq.s32.totalorder %v8780_v30, 0  ;;  %v8785_v12 = vld [vmem:[#allocation31_spill] sm:$0xff] }
 0x377   : > { %v1480_v13 = vsel %vm1469_vm0, nan, %v1479_v9  ;;  %v8781_v16 = vand.u32 2147483647, %v8777_v23  ;;  %v8782_v36 = vmov 0  ;;  %vm8630_vm6 = vcmp.lt.s32.totalorder %v6853_v35, 0 }
 0x378   : > { %v3312_v41 = vshll.u32 %v7375_v42, 30  ;;  %v3680_v50 = vpack.c.bf16 %v1480_v13, %v1168_v10  ;;  %v1062_v8 = vsel %vm1060_vm3, %v1061_v37, %v8776_v53  ;;  %v1370_v15 = vxor.u32 2147483648, %v8785_v12 }
 0x379   : > { %vm7384_vm15 = vcmp.le.f32.partialorder %v8781_v16, 0.7853982  ;;  %v8786_v57 = vpack.c.bf16 %v7245_v38, %v7241_v58  ;;  %v1063_v4 = vsel %vm1056_vm12, %v1059_v48, %v1062_v8  ;;  %vm1368_vm0 = vcmp.lt.s32.totalorder %v8780_v30, 2  ;;  %v8797_v8 = vld [vmem:[#allocation53_spill] sm:$0xff] }
 0x37a   : > { %v8783_v36 = vsel %vm7384_vm15, 4294967295, %v8782_v36  ;;  %vm1372_vm9 = vcmp.eq.s32.totalorder %v8780_v30, 2  ;;  %v1373_v45 = vxor.u32 2147483648, %v8787_v25  ;;  %v8788_v10 = vcvt.s32.f32 %v7305_v14  ;;  %3880 = vmatprep.mubr.bf16.mxu1 %v3680_v50 }
 0x37b   : > { %8784 = vst [vmem:[#allocation29_spill] sm:$0xff] %v8783_v36  ;;  %5153 = vmatmul.mubr.bf16.gmra.mrb[20].mxu0 %v8786_v57  ;;  %v7404_v53 = vsub.s32 %v3309_v59, %v3312_v41  ;;  %vm8789_vm3 = vweird.f32 %v8766_v33  ;;  %v1371_v38 = vsel %vm1369_vm13, %v8787_v25, %v1370_v15  ;;  %v3225_v39 = vand.u32 2147483647, %v3224_v47  ;;  %v8799_v57 = vld [vmem:[#allocation22_spill] sm:$0xff] }
 0x37c   : > { %v3020_v37 = vmul.f32 %v8788_v10, %v3017_v44  ;;  %v1064_v58 = vsel %vm8789_vm3, nan, %v1063_v4  ;;  %v3227_v49 = vcvt.s32.f32 %v3220_v3  ;;  %v1374_v29 = vsel %vm1372_vm9, %v1373_v45, %v8785_v12 }
 0x37d   : > { %v737_v9 = vsub.s32 2, %v8790_v5  ;;  %5571 = vsinq.f32 %v7231_v60  ;;  %v2917_v14 = vxor.u32 2147483648, %v7261_v6  ;;  %v3315_v44 = vsub.s32 0, %v7404_v53  ;;  %v5632_v60 = vld [vmem:[%s8501_s4 + $0xa8] ss:$8 sm:$0x7] }
 0x37e   : > { %v1375_v33 = vsel %vm1368_vm0, %v1371_v38, %v1374_v29  ;;  %v8791_v59 = vand.u32 2147483647, %v6853_v35  ;;  %v8792_v21 = vmov 0  ;;  %vm8619_vm13 = vcmp.lt.s32.totalorder %v7016_v7, 0 }
 0x37f   : > { %vm8795_vm9 = vweird.f32 %v8770_v40  ;;  %v7430_v3 = vrot.slane %v5632_v60, %v737_v9  ;;  %5573 = vcosq.f32 %v7251_v17  ;;  %v2713_v30 = vsel %vm7361_vm14, %v6700_v43, %v7255_v11  ;;  %v8796_v40 = vld [vmem:[#allocation52_spill] sm:$0xff] }
 0x380   : > { %vm7420_vm12 = vcmp.le.f32.partialorder %v8791_v59, 0.7853982  ;;  %v1376_v47 = vsel %vm8795_vm9, nan, %v1375_v33  ;;  %v4810_v48 = vmin.u32 %v3315_v44, %v7404_v53  ;;  %v3021_v16 = vxor.u32 2147483648, %v3020_v37  ;;  %v8804_v44 = vld [vmem:[#allocation17_spill] sm:$0xff] }
 0x381   : > { %v8793_v21 = vsel %vm7420_vm12, 4294967295, %v8792_v21  ;;  %v3679_v13 = vpack.c.bf16 %v1376_v47, %v1064_v58  ;;  %v3228_v41 = vmul.f32 %v3227_v49, %v3225_v39  ;;  %v7440_v50 = vadd.f32 %v8796_v40, %v7430_v3 }
 0x382   : > { %8794 = vst [vmem:[#allocation18_spill] sm:$0xff] %v8793_v21  ;;  %v7444_v12 = vadd.f32 %v8797_v8, %v7430_v3  ;;  %5575 = vsinq.f32 %v7251_v17  ;;  %v2918_v15 = vsel %vm8624_vm7, %v2917_v14, %v7261_v6  ;;  %v3317_v11 = vclz %v4810_v48 }
 0x383   : > { %3881 = vmatmul.mubr.bf16.vlgmr.msra.gmra.mrb[32].mxu1 %v3679_v13  ;;  %v1775_v4 = vsub.s32 4, %v8799_v57  ;;  %5577 = vcosq.f32 %v2713_v30  ;;  %v8800_v25 = vand.u32 2147483647, %v7016_v7  ;;  %v8801_v45 = vmov 0 }
 0x384   : > { %8798 = vst [vmem:[#allocation28_spill] sm:$0xff] %v7444_v12  ;;  %v8605_v10 = vand.u32 2147483647, %v7440_v50  ;;  %v1796_v58 = vand.u32 2139095040, %v7440_v50  ;;  %5579 = vsinq.f32 %v2713_v30  ;;  %v4811_v17 = vadd.s32 4294967294, %v3317_v11 }
 0x385   : > { %vm7453_vm0 = vcmp.le.f32.partialorder %v8800_v25, 0.7853982  ;;  %v8604_v38 = vand.u32 2147483647, %v7444_v12  ;;  %v1172_v6 = vand.u32 2139095040, %v7444_v12  ;;  %v2921_v39 = vsel %vm7384_vm15, %v8777_v23, %v2918_v15 }
 0x386   : > { %v8802_v45 = vsel %vm7453_vm0, 4294967295, %v8801_v45  ;;  %v3022_v49 = vsel %vm8630_vm6, %v3021_v16, %v3020_v37  ;;  %v3229_v29 = vxor.u32 2147483648, %v3228_v41  ;;  %v1797_v5 = vshrl.u32 %v1796_v58, 23  ;;  %v8808_v58 = vld [vmem:[#allocation54_spill] sm:$0xff] }
 0x387   : > { %8803 = vst [vmem:[#allocation15_spill] sm:$0xff] %v8802_v45  ;;  %vm4812_vm3 = vcmp.lt.s32.totalorder %v4811_v17, 0  ;;  %v1800_v9 = vand.u32 8388607, %v8605_v10  ;;  %v1173_v14 = vshrl.u32 %v1172_v6, 23  ;;  %vm8805_vm9 = vcmp.lt.s32.totalorder %v8804_v44, 0  ;;  %v7475_v37 = vpop.eup %5571 }
 0x388   : > { %v1776_v33 = vsel %vm8805_vm9, %v1775_v4, %v8799_v57  ;;  %v3305_v59 = vadd.s32 %v7318_v51, %v7331_v27  ;;  %v3320_v47 = vsel %vm4812_vm3, 0, %v4811_v17  ;;  %v4753_v60 = vadd.s32 4294967169, %v1797_v5 }
 0x389   : > { %v1176_v30 = vand.u32 8388607, %v8604_v38  ;;  %5581 = vcosq.f32 %v2921_v39  ;;  %v3321_v48 = vsub.s32 32, %v3320_v47  ;;  %v3325_v13 = vsub.s32 4294967266, %v3320_v47  ;;  %v7486_v11 = vpop.eup %5573 }
 0x38a   : > { %v4729_v16 = vadd.s32 4294967169, %v1173_v14  ;;  %v7480_v40 = vsel %vm7420_vm12, %v6853_v35, %v3022_v49  ;;  %v3230_v8 = vsel %vm8619_vm13, %v3229_v29, %v3228_v41  ;;  %v1803_v51 = vadd.s32 1, %v4753_v60  ;;  %8807 = vst [vmem:[#allocation13_spill] sm:$0xff] %v7486_v11 }
 0x38b   : > { %v1778_v15 = vsel %vm6638_vm5, 0, %v1776_v33  ;;  %v3326_v57 = vadd.s32 127, %v3325_v13  ;;  %v1801_v4 = vor.u32 8388608, %v1800_v9  ;;  %v7490_v17 = vadd.f32 %v8808_v58, %v7430_v3 }
 0x38c   : > { %v1179_v25 = vadd.s32 1, %v4729_v16  ;;  %v3322_v6 = vshll.u32 %v7404_v53, %v3320_v47  ;;  %v3323_v49 = vshrl.u32 %v3305_v59, %v3321_v48  ;;  %vm1804_vm3 = vcmp.gt.s32.totalorder %v1803_v51, 0  ;;  %v7493_v14 = vpop.eup %5575 }
 0x38d   : > { %v1177_v5 = vor.u32 8388608, %v1176_v30  ;;  %8809 = vst [vmem:[#allocation23_spill] sm:$0xff] %v7493_v14  ;;  %5583 = vsinq.f32 %v2921_v39  ;;  %v3327_v41 = vshll.u32 %v3326_v57, 23  ;;  %v1805_v29 = vsel %vm1804_vm3, %v1803_v51, 0  ;;  %v7495_v33 = vpop.eup %5577 }
 0x38e   : > { %8810 = vst [vmem:[#allocation40_spill] sm:$0xff] %v7495_v33  ;;  %5585 = vcosq.f32 %v7480_v40  ;;  %v7501_v9 = vsel %vm7453_vm0, %v7016_v7, %v3230_v8  ;;  %v1807_v60 = vand.u32 31, %v1805_v29  ;;  %vm1180_vm5 = vcmp.gt.s32.totalorder %v1179_v25, 0  ;;  %v7503_v53 = vpop.eup %5579 }
 0x38f   : > { %v7505_v59 = vshll.u32 %v1801_v4, 8  ;;  %v2108_v39 = vand.u32 2139095040, %v7490_v17  ;;  %v7509_v30 = vadd.s32 3, %v1778_v15  ;;  %v7511_v48 = vor.u32 %v3323_v49, %v3322_v6  ;;  %v7523_v49 = vpop.f32.mrb[15].mxu0 }
 0x390   : > { %v1806_v13 = vshrl.u32 %v1805_v29, 5  ;;  %v1808_v16 = vsub.s32 32, %v1807_v60  ;;  %v7513_v51 = vshll.u32 %v1177_v5, 8  ;;  %v7515_v8 = vor.u32 4788187, %v3327_v41 }
 0x391   : > { %v1810_v27 = vshll.u32 %v8667_v22, %v1807_v60  ;;  %v1813_v57 = vshll.u32 %v8662_v62, %v1807_v60  ;;  %v1181_v4 = vsel %vm1180_vm5, %v1179_v25, 0  ;;  %v1816_v15 = vshll.u32 %v8663_v52, %v1807_v60 }
 0x392   : > { %v1811_v58 = vshrl.u32 %v8662_v62, %v1808_v16  ;;  %v1814_v38 = vshrl.u32 %v8663_v52, %v1808_v16  ;;  %v1817_v6 = vshrl.u32 %v8668_v61, %v1808_v16  ;;  %v1819_v5 = vshll.u32 %v8668_v61, %v1807_v60 }
 0x393   : > { %v7525_v29 = vpop.eup %5581  ;;  %v1820_v41 = vshrl.u32 %v8664_v54, %v1808_v16  ;;  %v1822_v10 = vshll.u32 %v8664_v54, %v1807_v60  ;;  %v1823_v25 = vshrl.u32 %v8673_v56, %v1808_v16  ;;  %v1183_v36 = vand.u32 31, %v1181_v4 }
 0x394   : > { %8811 = vst [vmem:[#allocation36_spill] sm:$0xff] %v7525_v29  ;;  %v1812_v47 = vor.u32 %v1811_v58, %v1810_v27  ;;  %v1815_v45 = vor.u32 %v1814_v38, %v1813_v57  ;;  %v1818_v7 = vor.u32 %v1817_v6, %v1816_v15  ;;  %vm1825_vm9 = vcmp.lt.s32.totalorder %v1806_v13, 1 }
 0x395   : > { %v1821_v23 = vor.u32 %v1820_v41, %v1819_v5  ;;  %v1824_v42 = vor.u32 %v1823_v25, %v1822_v10  ;;  %vm1828_vm3 = vcmp.lt.s32.totalorder %v1806_v13, 4  ;;  %v1809_v21 = vshrl.u32 %v8667_v22, %v1808_v16 }
 0x396   : > { %v1830_v35 = vsel %vm1828_vm3, %v1818_v7, 2102212464  ;;  %v1833_v29 = vsel %vm1825_vm9, %v1812_v47, %v1815_v45  ;;  %v1837_v11 = vsel %vm1825_vm9, %v1815_v45, %v1818_v7  ;;  %vm1826_vm5 = vcmp.lt.s32.totalorder %v1806_v13, 2 }
 0x397   : > { %v7532_v14 = vpop.eup %5583  ;;  %vm1827_vm13 = vcmp.lt.s32.totalorder %v1806_v13, 3  ;;  %v1834_v60 = vsel %vm1828_vm3, %v1821_v23, 920167782  ;;  %v1838_v55 = vsel %vm1828_vm3, %v1824_v42, 1326507024  ;;  %v1829_v38 = vsel %vm1825_vm9, %v1809_v21, %v1812_v47 }
 0x398   : > { %8812 = vst [vmem:[#allocation14_spill] sm:$0xff] %v7532_v14  ;;  %v7534_v2 = vpop.eup %5585  ;;  %v1831_v27 = vsel %vm1827_vm13, %v1815_v45, %v1830_v35  ;;  %v1835_v57 = vsel %vm1827_vm13, %v1818_v7, %v1834_v60  ;;  %v1839_v58 = vsel %vm1827_vm13, %v1821_v23, %v1838_v55  ;;  %v2109_v6 = vshrl.u32 %v2108_v39, 23 }
 0x399   : > { %8813 = vst [vmem:[#allocation49_spill] sm:$0xff] %v7534_v2  ;;  %v1836_v15 = vsel %vm1826_vm5, %v1833_v29, %v1835_v57  ;;  %v1840_v16 = vsel %vm1826_vm5, %v1837_v11, %v1839_v58  ;;  %v1182_v25 = vshrl.u32 %v1181_v4, 5  ;;  %v1184_v14 = vsub.s32 32, %v1183_v36 }
 0x39a   : > { %v7540_v5 = vmul.u32.u64.low %v7505_v59, %v1840_v16  ;;  %v7541_v41 = vmul.u32.u64.high %v7505_v59, %v1840_v16, %v7540_v5  ;;  %v3329_v42 = vand.u32 2147483647, %v7515_v8  ;;  %v1832_v21 = vsel %vm1826_vm5, %v1829_v38, %v1831_v27 }
 0x39b   : > { %v7546_v35 = vmul.u32.u64.low %v7505_v59, %v1836_v15  ;;  %v7547_v55 = vmul.u32.u64.high %v7505_v59, %v1836_v15, %v7546_v35  ;;  %v1186_v7 = vshll.u32 %v8667_v22, %v1183_v36  ;;  %v1187_v23 = vshrl.u32 %v8662_v62, %v1184_v14 }
 0x39c   : > { %v1189_v45 = vshll.u32 %v8662_v62, %v1183_v36  ;;  %v1190_v11 = vshrl.u32 %v8663_v52, %v1184_v14  ;;  %v1192_v47 = vshll.u32 %v8663_v52, %v1183_v36  ;;  %v1193_v39 = vshrl.u32 %v8668_v61, %v1184_v14 }
 0x39d   : > { %v1195_v13 = vshll.u32 %v8668_v61, %v1183_v36  ;;  %v1196_v8 = vshrl.u32 %v8664_v54, %v1184_v14  ;;  %vm1850_vm13 = vc.u32 %v7541_v41, %v7546_v35  ;;  %v1188_v4 = vor.u32 %v1187_v23, %v1186_v7 }
 0x39e   : > { %v1191_v29 = vor.u32 %v1190_v11, %v1189_v45  ;;  %v1198_v60 = vshll.u32 %v8664_v54, %v1183_v36  ;;  %v1851_v38 = vadd.s32 1, %v7547_v55  ;;  %v1194_v27 = vor.u32 %v1193_v39, %v1192_v47 }
 0x39f   : > { %v1197_v57 = vor.u32 %v1196_v8, %v1195_v13  ;;  %v1199_v58 = vshrl.u32 %v8673_v56, %v1184_v14  ;;  %v1848_v15 = vmul.u32 %v7505_v59, %v1832_v21  ;;  %v1185_v16 = vshrl.u32 %v8667_v22, %v1184_v14 }
 0x3a0   : > { %vm1201_vm9 = vcmp.lt.s32.totalorder %v1182_v25, 1  ;;  %vm1204_vm3 = vcmp.lt.s32.totalorder %v1182_v25, 4  ;;  %v1852_v5 = vsel %vm1850_vm13, %v1851_v38, %v7547_v55  ;;  %vm1202_vm5 = vcmp.lt.s32.totalorder %v1182_v25, 2 }
 0x3a1   : > { %v1200_v10 = vor.u32 %v1199_v58, %v1198_v60  ;;  %v1206_v7 = vsel %vm1204_vm3, %v1194_v27, 2102212464  ;;  %v1853_v23 = vadd.s32 %v1852_v5, %v1848_v15  ;;  %vm1203_vm7 = vcmp.lt.s32.totalorder %v1182_v25, 3 }
 0x3a2   : > { %v1209_v36 = vsel %vm1201_vm9, %v1188_v4, %v1191_v29  ;;  %v1210_v45 = vsel %vm1204_vm3, %v1197_v57, 920167782  ;;  %v1205_v11 = vsel %vm1201_vm9, %v1185_v16, %v1188_v4  ;;  %v1213_v39 = vsel %vm1201_vm9, %v1191_v29, %v1194_v27  ;;  %v8815_v16 = vld [vmem:[#allocation32_spill] sm:$0xff] }
 0x3a3   : > { %v1211_v47 = vsel %vm1203_vm7, %v1194_v27, %v1210_v45  ;;  %v1214_v13 = vsel %vm1204_vm3, %v1200_v10, 1326507024  ;;  %v1854_v8 = vadd.s32 536870912, %v1853_v23  ;;  %v1207_v2 = vsel %vm1203_vm7, %v1191_v29, %v1206_v7 }
 0x3a4   : > { %v1212_v59 = vsel %vm1202_vm5, %v1209_v36, %v1211_v47  ;;  %v1215_v14 = vsel %vm1203_vm7, %v1197_v57, %v1214_v13  ;;  %v4765_v38 = vadd.s32 4294967169, %v2109_v6  ;;  %5587 = vsinq.f32 %v7480_v40 }
 0x3a5   : > { %v1216_v21 = vsel %vm1202_vm5, %v1213_v39, %v1215_v14  ;;  %v7569_v55 = vmul.u32.u64.low %v7513_v51, %v1212_v59  ;;  %v7570_v60 = vmul.u32.u64.high %v7513_v51, %v1212_v59, %v7569_v55  ;;  %v7573_v58 = vshrl.u32 %v1854_v8, 30 }
 0x3a6   : > { %v7576_v4 = vmul.u32.u64.low %v7513_v51, %v1216_v21  ;;  %v7577_v27 = vmul.u32.u64.high %v7513_v51, %v1216_v21, %v7576_v4  ;;  %5589 = vcosq.f32 %v7501_v9  ;;  %v1208_v10 = vsel %vm1202_vm5, %v1205_v11, %v1207_v2 }
 0x3a7   : > { %v8814_v29 = vand.u32 2147483647, %v7490_v17  ;;  %v2115_v15 = vadd.s32 1, %v4765_v38  ;;  %5591 = vsinq.f32 %v7501_v9  ;;  %v1856_v6 = vshll.u32 %v7573_v58, 30  ;;  %v8817_v9 = vld [vmem:[#allocation50_spill] sm:$0xff] }
 0x3a8   : > { %v2087_v40 = vsub.s32 4, %v8815_v16  ;;  %v8816_v5 = vcvt.s32.f32 %v7511_v48  ;;  %v1227_v36 = vadd.s32 1, %v7570_v60  ;;  %v7592_v25 = vand.u32 3, %v7509_v30 }
 0x3a9   : > { %v2112_v57 = vand.u32 8388607, %v8814_v29  ;;  %vm2116_vm7 = vcmp.gt.s32.totalorder %v2115_v15, 0  ;;  %v7594_v2 = vsub.s32 %v1853_v23, %v1856_v6  ;;  %v1224_v45 = vmul.u32 %v7513_v51, %v1208_v10 }
 0x3aa   : > { %v7588_v7 = vmul.f32 %v8816_v5, %v3329_v42  ;;  %vm1226_vm13 = vc.u32 %v7577_v27, %v7569_v55  ;;  %v1786_v11 = vxor.u32 2147483648, %v8817_v9  ;;  %v2117_v48 = vsel %vm2116_vm7, %v2115_v15, 0  ;;  %v8818_v42 = vld [vmem:[#allocation47_spill] sm:$0xff] }
 0x3ab   : > { %v1228_v47 = vsel %vm1226_vm13, %v1227_v36, %v7570_v60  ;;  %v2113_v39 = vor.u32 8388608, %v2112_v57  ;;  %v1859_v8 = vsub.s32 0, %v7594_v2  ;;  %vm8819_vm9 = vcmp.lt.s32.totalorder %v6348_v26, 0 }
 0x3ac   : > { %v1229_v59 = vadd.s32 %v1228_v47, %v1224_v45  ;;  %v2088_v30 = vsel %vm8819_vm9, %v2087_v40, %v8815_v16  ;;  %v1849_v14 = vadd.s32 %v7546_v35, %v7541_v41  ;;  %v2119_v21 = vand.u32 31, %v2117_v48 }
 0x3ad   : > { %vm1785_vm3 = vcmp.eq.s32.totalorder %v7592_v25, 0  ;;  %v4754_v60 = vmin.u32 %v1859_v8, %v7594_v2  ;;  %v7614_v29 = vadd.s32 %v7569_v55, %v7577_v27  ;;  %v7616_v15 = vshll.u32 %v2113_v39, 8 }
 0x3ae   : > { %v1230_v4 = vadd.s32 536870912, %v1229_v59  ;;  %v2120_v57 = vsub.s32 32, %v2119_v21  ;;  %v2090_v6 = vsel %vm6977_vm10, 0, %v2088_v30  ;;  %v7620_v41 = vpop.eup %5587  ;;  %v7622_v16 = vshrl.u32 %v2117_v48, 5 }
 0x3af   : > { %8820 = vst [vmem:[#allocation44_spill] sm:$0xff] %v7620_v41  ;;  %v1861_v35 = vclz %v4754_v60  ;;  %v2122_v40 = vshll.u32 %v8667_v22, %v2119_v21  ;;  %v7626_v5 = vsel %vm1785_vm3, %v8818_v42, %v1786_v11  ;;  %v2125_v45 = vshll.u32 %v8662_v62, %v2119_v21 }
 0x3b0   : > { %v7628_v36 = vpop.eup %5589  ;;  %v7630_v55 = vshrl.u32 %v1230_v4, 30  ;;  %v2123_v27 = vshrl.u32 %v8662_v62, %v2120_v57  ;;  %v2126_v19 = vshrl.u32 %v8663_v52, %v2120_v57  ;;  %v2128_v48 = vshll.u32 %v8663_v52, %v2119_v21 }
 0x3b1   : > { %8821 = vst [vmem:[#allocation27_spill] sm:$0xff] %v7628_v36  ;;  %v7635_v47 = vpop.eup %5591  ;;  %v4755_v39 = vadd.s32 4294967294, %v1861_v35  ;;  %v2129_v8 = vshrl.u32 %v8668_v61, %v2120_v57  ;;  %v2132_v11 = vshrl.u32 %v8664_v54, %v2120_v57  ;;  %v2131_v60 = vshll.u32 %v8668_v61, %v2119_v21 }
 0x3b2   : > { %8822 = vst [vmem:[#allocation26_spill] sm:$0xff] %v7635_v47  ;;  %v1232_v30 = vshll.u32 %v7630_v55, 30  ;;  %v2094_v4 = vadd.s32 3, %v2090_v6  ;;  %v2124_v38 = vor.u32 %v2123_v27, %v2122_v40  ;;  %v2127_v51 = vor.u32 %v2126_v19, %v2125_v45 }
 0x3b3   : > { %vm4756_vm5 = vcmp.lt.s32.totalorder %v4755_v39, 0  ;;  %v2130_v10 = vor.u32 %v2129_v8, %v2128_v48  ;;  %v2134_v35 = vshll.u32 %v8664_v54, %v2119_v21  ;;  %v2135_v36 = vshrl.u32 %v8673_v56, %v2120_v57 }
 0x3b4   : > { %v1864_v23 = vsel %vm4756_vm5, 0, %v4755_v39  ;;  %v7643_v13 = vsub.s32 %v1229_v59, %v1232_v30  ;;  %v2133_v33 = vor.u32 %v2132_v11, %v2131_v60  ;;  %vm2137_vm7 = vcmp.lt.s32.totalorder %v7622_v16, 1 }
 0x3b5   : > { %v1865_v47 = vsub.s32 32, %v1864_v23  ;;  %v1869_v41 = vsub.s32 4294967266, %v1864_v23  ;;  %v1866_v6 = vshll.u32 %v7594_v2, %v1864_v23  ;;  %v2121_v27 = vshrl.u32 %v8667_v22, %v2120_v57 }
 0x3b6   : > { %v1235_v40 = vsub.s32 0, %v7643_v13  ;;  %v2136_v45 = vor.u32 %v2135_v36, %v2134_v35  ;;  %vm2139_vm9 = vcmp.lt.s32.totalorder %v7622_v16, 3  ;;  %vm2140_vm3 = vcmp.lt.s32.totalorder %v7622_v16, 4 }
 0x3b7   : > { %v1867_v59 = vshrl.u32 %v1849_v14, %v1865_v47  ;;  %v1870_v19 = vadd.s32 127, %v1869_v41  ;;  %v2141_v39 = vsel %vm2137_vm7, %v2121_v27, %v2124_v38  ;;  %v2142_v48 = vsel %vm2140_vm3, %v2130_v10, 2102212464 }
 0x3b8   : > { %v4730_v21 = vmin.u32 %v1235_v40, %v7643_v13  ;;  %v2145_v2 = vsel %vm2137_vm7, %v2124_v38, %v2127_v51  ;;  %v2143_v14 = vsel %vm2139_vm9, %v2127_v51, %v2142_v48  ;;  %v2146_v41 = vsel %vm2140_vm3, %v2133_v33, 920167782 }
 0x3b9   : > { %v1868_v23 = vor.u32 %v1867_v59, %v1866_v6  ;;  %v1871_v57 = vshll.u32 %v1870_v19, 23  ;;  %vm1795_vm6 = vcmp.lt.s32.totalorder %v7440_v50, 0  ;;  %vm2138_vm13 = vcmp.lt.s32.totalorder %v7622_v16, 2 }
 0x3ba   : > { %v1237_v36 = vclz %v4730_v21  ;;  %v2147_v47 = vsel %vm2139_vm9, %v2130_v10, %v2146_v41  ;;  %v2149_v38 = vsel %vm2137_vm7, %v2127_v51, %v2130_v10  ;;  %v8823_v8 = vand.u32 2147483647, %v7440_v50 }
 0x3bb   : > { %v1872_v30 = vor.u32 4788187, %v1871_v57  ;;  %v2144_v60 = vsel %vm2138_vm13, %v2141_v39, %v2143_v14  ;;  %v2148_v35 = vsel %vm2138_vm13, %v2145_v2, %v2147_v47  ;;  %v2150_v6 = vsel %vm2140_vm3, %v2136_v45, 1326507024 }
 0x3bc   : > { %vm7675_vm0 = vcmp.le.f32.partialorder %v8823_v8, 0.7853982  ;;  %v4731_v40 = vadd.s32 4294967294, %v1237_v36  ;;  %v2151_v27 = vsel %vm2139_vm9, %v2133_v33, %v2150_v6  ;;  %v1875_v19 = vcvt.s32.f32 %v1868_v23 }
 0x3bd   : > { %v7684_v51 = vmul.u32.u64.low %v7616_v15, %v2148_v35  ;;  %v7685_v10 = vmul.u32.u64.high %v7616_v15, %v2148_v35, %v7684_v51  ;;  %v1873_v59 = vand.u32 2147483647, %v1872_v30  ;;  %v2152_v21 = vsel %vm2138_vm13, %v2149_v38, %v2151_v27 }
 0x3be   : > { %v8826_v39 = vxor.u32 2147483648, %v8818_v42  ;;  %vm8827_vm10 = vcmp.eq.s32.totalorder %v7592_v25, 2  ;;  %v8828_v48 = vand.u32 2147483647, %v7144_v31  ;;  %v8829_v33 = vmov 0 }
 0x3bf   : > { %vm4732_vm9 = vcmp.lt.s32.totalorder %v4731_v40, 0  ;;  %v7701_v16 = vmul.u32.u64.low %v7616_v15, %v2152_v21  ;;  %v7702_v2 = vmul.u32.u64.high %v7616_v15, %v2152_v21, %v7701_v16  ;;  %v7706_v23 = vadd.f32 %v7169_v34, %v7430_v3 }
 0x3c0   : > { %v1790_v45 = vsel %vm8827_vm10, %v8826_v39, %v8817_v9  ;;  %vm7696_vm3 = vcmp.le.f32.partialorder %v8828_v48, 0.7853982  ;;  %v1876_v57 = vmul.f32 %v1875_v19, %v1873_v59  ;;  %v1240_v42 = vsel %vm4732_vm9, 0, %v4731_v40 }
 0x3c1   : > { %v8830_v33 = vsel %vm7696_vm3, 4294967295, %v8829_v33  ;;  %v2160_v14 = vmul.u32 %v7616_v15, %v2144_v60  ;;  %v2095_v9 = vand.u32 3, %v2094_v4  ;;  %v1241_v41 = vsub.s32 32, %v1240_v42 }
 0x3c2   : > { %8831 = vst [vmem:[#allocation45_spill] sm:$0xff] %v8830_v33  ;;  %v1245_v36 = vsub.s32 4294967266, %v1240_v42  ;;  %v2163_v47 = vadd.s32 1, %v7685_v10  ;;  %vm8832_vm10 = vcmp.lt.s32.totalorder %v7592_v25, 2  ;;  %v1877_v8 = vxor.u32 2147483648, %v1876_v57 }
 0x3c3   : > { %v1791_v38 = vsel %vm8832_vm10, %v7626_v5, %v1790_v45  ;;  %v1242_v30 = vshll.u32 %v7643_v13, %v1240_v42  ;;  %vm2097_vm13 = vcmp.eq.s32.totalorder %v2095_v9, 0  ;;  %vm2100_vm7 = vcmp.eq.s32.totalorder %v2095_v9, 2 }
 0x3c4   : > { %v1243_v34 = vshrl.u32 %v7614_v29, %v1241_v41  ;;  %v1246_v35 = vadd.s32 127, %v1245_v36  ;;  %vm2162_vm9 = vc.u32 %v7702_v2, %v7684_v51  ;;  %vm2096_vm5 = vcmp.lt.s32.totalorder %v2095_v9, 2  ;;  %v8840_v41 = vld [vmem:[#allocation20_spill] sm:$0xff] }
 0x3c5   : > { %v1878_v15 = vsel %vm1795_vm6, %v1877_v8, %v1876_v57  ;;  %v2164_v4 = vsel %vm2162_vm9, %v2163_v47, %v7685_v10  ;;  %v8833_v25 = vxor.u32 2147483648, %v7171_v63  ;;  %v8834_v13 = vxor.u32 2147483648, %v7164_v46 }
 0x3c6   : > { %v1881_v29 = vsel %vm7675_vm0, %v7440_v50, %v1878_v15  ;;  %v1244_v6 = vor.u32 %v1243_v34, %v1242_v30  ;;  %v1247_v40 = vshll.u32 %v1246_v35, 23  ;;  %v2165_v27 = vadd.s32 %v2164_v4, %v2160_v14  ;;  %v8841_v34 = vld [vmem:[#allocation16_spill] sm:$0xff] }
 0x3c7   : > { %v2099_v5 = vsel %vm2097_vm13, %v7164_v46, %v8833_v25  ;;  %v2102_v60 = vsel %vm2100_vm7, %v8834_v13, %v7171_v63  ;;  %v8835_v59 = vxor.u32 2147483648, %v7588_v7  ;;  %vm8836_vm10 = vcmp.lt.s32.totalorder %v7144_v31, 0 }
 0x3c8   : > { %v8837_v19 = vsub.s32 4, %v7573_v58  ;;  %vm8838_vm7 = vweird.f32 %v8804_v44  ;;  %v2103_v21 = vsel %vm2096_vm5, %v2099_v5, %v2102_v60  ;;  %5593 = vcosq.f32 %v1881_v29 }
 0x3c9   : > { %v3334_v10 = vsel %vm8836_vm10, %v8835_v59, %v7588_v7  ;;  %v1792_v63 = vsel %vm8838_vm7, nan, %v1791_v38  ;;  %v1248_v39 = vor.u32 4788187, %v1247_v40  ;;  %v1255_v45 = vsub.s32 4, %v7630_v55 }
 0x3ca   : > { %v1880_v46 = vsel %vm1795_vm6, %v8837_v19, %v7573_v58  ;;  %v2166_v48 = vadd.s32 536870912, %v2165_v27  ;;  %v1251_v16 = vcvt.s32.f32 %v1244_v6  ;;  %vm8839_vm13 = vweird.f32 %v6348_v26 }
 0x3cb   : > { %v2104_v57 = vsel %vm8839_vm13, nan, %v2103_v21  ;;  %v8632_v7 = vand.u32 2147483647, %v7706_v23  ;;  %v1484_v42 = vand.u32 2139095040, %v7706_v23  ;;  %v1249_v14 = vand.u32 2147483647, %v1248_v39 }
 0x3cc   : > { %v2167_v9 = vshrl.u32 %v2166_v48, 30  ;;  %v3683_v58 = vpack.c.bf16 %v2104_v57, %v1792_v63  ;;  %v1671_v44 = vsub.s32 4, %v8840_v41  ;;  %v3337_v36 = vsel %vm7696_vm3, %v7144_v31, %v3334_v10 }
 0x3cd   : > { %v1882_v47 = vsel %vm7675_vm0, 0, %v1880_v46  ;;  %vm1171_vm6 = vcmp.lt.s32.totalorder %v7444_v12, 0  ;;  %v1485_v26 = vshrl.u32 %v1484_v42, 23  ;;  %v1252_v38 = vmul.f32 %v1251_v16, %v1249_v14  ;;  %v8850_v42 = vld [vmem:[#allocation25_spill] sm:$0xff] }
 0x3ce   : > { %v2168_v8 = vshll.u32 %v2167_v9, 30  ;;  %v2191_v30 = vsub.s32 4, %v2167_v9  ;;  %3888 = vmatprep.mubr.bf16.mxu1 %v3683_v58  ;;  %vm8842_vm5 = vcmp.lt.s32.totalorder %v8841_v34, 0  ;;  %v1256_v15 = vsel %vm1171_vm6, %v1255_v45, %v7630_v55 }
 0x3cf   : > { %v1672_v35 = vsel %vm8842_vm5, %v1671_v44, %v8840_v41  ;;  %v4741_v4 = vadd.s32 4294967169, %v1485_v26  ;;  %v1488_v11 = vand.u32 8388607, %v8632_v7  ;;  %v1886_v13 = vadd.s32 3, %v1882_v47  ;;  %v8852_v26 = vld [vmem:[#allocation43_spill] sm:$0xff] }
 0x3d0   : > { %v1674_v5 = vsel %vm6574_vm4, 0, %v1672_v35  ;;  %v8844_v60 = vand.u32 2147483647, %v7444_v12  ;;  %vm8635_vm9 = vcmp.lt.s32.totalorder %v7490_v17, 0  ;;  %v7770_v40 = vsub.s32 %v2165_v27, %v2168_v8 }
 0x3d1   : > { %v1253_v59 = vxor.u32 2147483648, %v1252_v38  ;;  %v2192_v55 = vsel %vm8635_vm9, %v2191_v30, %v2167_v9  ;;  %v1491_v10 = vadd.s32 1, %v4741_v4  ;;  %v1678_v19 = vadd.s32 3, %v1674_v5  ;;  %v8853_v4 = vld [vmem:[#allocation41_spill] sm:$0xff] }
 0x3d2   : > { %vm7765_vm0 = vcmp.le.f32.partialorder %v8844_v60, 0.7853982  ;;  %5595 = vcosq.f32 %v3337_v36  ;;  %v2171_v63 = vsub.s32 0, %v7770_v40  ;;  %v8847_v21 = vand.u32 2147483647, %v7490_v17  ;;  %v7783_v45 = vpop.eup %5593 }
 0x3d3   : > { %v1258_v46 = vsel %vm7765_vm0, 0, %v1256_v15  ;;  %5597 = vsinq.f32 %v3337_v36  ;;  %v1489_v27 = vor.u32 8388608, %v1488_v11  ;;  %vm1492_vm10 = vcmp.gt.s32.totalorder %v1491_v10, 0 }
 0x3d4   : > { %vm7779_vm4 = vcmp.le.f32.partialorder %v8847_v21, 0.7853982  ;;  %v7785_v48 = vand.u32 3, %v1886_v13  ;;  %v4766_v16 = vmin.u32 %v2171_v63, %v7770_v40  ;;  %v1983_v14 = vsub.s32 4, %v8850_v42 }
 0x3d5   : > { %v2194_v57 = vsel %vm7779_vm4, 0, %v2192_v55  ;;  %v1254_v9 = vsel %vm1171_vm6, %v1253_v59, %v1252_v38  ;;  %v7793_v58 = vadd.s32 3, %v1258_v46  ;;  %v1493_v41 = vsel %vm1492_vm10, %v1491_v10, 0 }
 0x3d6   : > { %v7795_v44 = vand.u32 3, %v1678_v19  ;;  %5599 = vsinq.f32 %v1881_v29  ;;  %v2161_v36 = vadd.s32 %v7684_v51, %v7702_v2  ;;  %v2173_v47 = vclz %v4766_v16  ;;  %v8854_v51 = vld [vmem:[#allocation19_spill] sm:$0xff] }
 0x3d7   : > { %8851 = vst [vmem:[#allocation31_spill] sm:$0xff] %v7793_v58  ;;  %v1682_v8 = vxor.u32 2147483648, %v8852_v26  ;;  %v7800_v30 = vadd.s32 3, %v2194_v57  ;;  %v1495_v35 = vand.u32 31, %v1493_v41  ;;  %v7802_v15 = vshll.u32 %v1489_v27, 8 }
 0x3d8   : > { %v7809_v25 = vsel %vm7765_vm0, %v7444_v12, %v1254_v9  ;;  %v4767_v29 = vadd.s32 4294967294, %v2173_v47  ;;  %vm8855_vm7 = vcmp.lt.s32.totalorder %v8854_v51, 0  ;;  %v1494_v5 = vshrl.u32 %v1493_v41, 5 }
 0x3d9   : > { %v7814_v2 = vsel %vm8855_vm7, %v1983_v14, %v8850_v42  ;;  %v1496_v13 = vsub.s32 32, %v1495_v35  ;;  %v1498_v60 = vshll.u32 %v8667_v22, %v1495_v35  ;;  %vm1681_vm13 = vcmp.eq.s32.totalorder %v7795_v44, 0 }
 0x3da   : > { %vm4768_vm6 = vcmp.lt.s32.totalorder %v4767_v29, 0  ;;  %v1501_v59 = vshll.u32 %v8662_v62, %v1495_v35  ;;  %v1504_v55 = vshll.u32 %v8663_v52, %v1495_v35  ;;  %v1507_v6 = vshll.u32 %v8668_v61, %v1495_v35 }
 0x3db   : > { %v2176_v10 = vsel %vm4768_vm6, 0, %v4767_v29  ;;  %v1499_v19 = vshrl.u32 %v8662_v62, %v1496_v13  ;;  %v1502_v46 = vshrl.u32 %v8663_v52, %v1496_v13  ;;  %v1510_v63 = vshll.u32 %v8664_v54, %v1495_v35 }
 0x3dc   : > { %v7826_v21 = vpop.eup %5595  ;;  %v2177_v27 = vsub.s32 32, %v2176_v10  ;;  %v2181_v16 = vsub.s32 4294967266, %v2176_v10  ;;  %v1497_v57 = vshrl.u32 %v8667_v22, %v1496_v13  ;;  %v1505_v42 = vshrl.u32 %v8668_v61, %v1496_v13 }
 0x3dd   : > { %v7830_v14 = vpop.eup %5597  ;;  %v1500_v9 = vor.u32 %v1499_v19, %v1498_v60  ;;  %v1503_v41 = vor.u32 %v1502_v46, %v1501_v59  ;;  %v1508_v47 = vshrl.u32 %v8664_v54, %v1496_v13  ;;  %v1511_v29 = vshrl.u32 %v8673_v56, %v1496_v13 }
 0x3de   : > { %v2178_v35 = vshll.u32 %v7770_v40, %v2176_v10  ;;  %v2179_v7 = vshrl.u32 %v2161_v36, %v2177_v27  ;;  %v2182_v38 = vadd.s32 127, %v2181_v16  ;;  %v1506_v11 = vor.u32 %v1505_v42, %v1504_v55 }
 0x3df   : > { %v1509_v12 = vor.u32 %v1508_v47, %v1507_v6  ;;  %v1512_v58 = vor.u32 %v1511_v29, %v1510_v63  ;;  %vm1513_vm6 = vcmp.lt.s32.totalorder %v1494_v5, 1  ;;  %vm1514_vm9 = vcmp.lt.s32.totalorder %v1494_v5, 2 }
 0x3e0   : > { %v7837_v33 = vpop.eup %5599  ;;  %v2180_v60 = vor.u32 %v2179_v7, %v2178_v35  ;;  %v2183_v59 = vshll.u32 %v2182_v38, 23  ;;  %vm1515_vm0 = vcmp.lt.s32.totalorder %v1494_v5, 3  ;;  %vm1516_vm5 = vcmp.lt.s32.totalorder %v1494_v5, 4 }
 0x3e1   : > { %v1517_v13 = vsel %vm1513_vm6, %v1497_v57, %v1500_v9  ;;  %v1518_v19 = vsel %vm1516_vm5, %v1506_v11, 2102212464  ;;  %v1521_v40 = vsel %vm1513_vm6, %v1500_v9, %v1503_v41  ;;  %v1522_v36 = vsel %vm1516_vm5, %v1509_v12, 920167782 }
 0x3e2   : > { %v2184_v10 = vor.u32 4788187, %v2183_v59  ;;  %v1519_v55 = vsel %vm1515_vm0, %v1503_v41, %v1518_v19  ;;  %v1523_v46 = vsel %vm1515_vm0, %v1506_v11, %v1522_v36  ;;  %v1525_v27 = vsel %vm1513_vm6, %v1503_v41, %v1506_v11  ;;  %v8860_v19 = vld [vmem:[#allocation56_spill] sm:$0xff] }
 0x3e3   : > { %v2187_v16 = vcvt.s32.f32 %v2180_v60  ;;  %v1524_v6 = vsel %vm1514_vm9, %v1521_v40, %v1523_v46  ;;  %v1526_v63 = vsel %vm1516_vm5, %v1512_v58, 1326507024  ;;  %v1683_v42 = vsel %vm1681_vm13, %v8853_v4, %v1682_v8 }
 0x3e4   : > { %v2185_v7 = vand.u32 2147483647, %v2184_v10  ;;  %v1527_v38 = vsel %vm1515_vm0, %v1509_v12, %v1526_v63  ;;  %v7844_v47 = vmul.u32.u64.low %v7802_v15, %v1524_v6  ;;  %v7845_v57 = vmul.u32.u64.high %v7802_v15, %v1524_v6, %v7844_v47 }
 0x3e5   : > { %vm1989_vm10 = vweird.f32 %v8854_v51  ;;  %vm1889_vm7 = vcmp.eq.s32.totalorder %v7785_v48, 0  ;;  %v1520_v11 = vsel %vm1514_vm9, %v1517_v13, %v1519_v55  ;;  %v1528_v9 = vsel %vm1514_vm9, %v1525_v27, %v1527_v38  ;;  %v8864_v27 = vld [vmem:[#allocation51_spill] sm:$0xff] }
 0x3e6   : > { %v8856_v58 = vxor.u32 2147483648, %v8853_v4  ;;  %vm8857_vm13 = vcmp.eq.s32.totalorder %v7795_v44, 2  ;;  %v1986_v41 = vsel %vm6759_vm1, 0, %v7814_v2  ;;  %v2188_v29 = vmul.f32 %v2187_v16, %v2185_v7 }
 0x3e7   : > { %v7861_v35 = vmul.u32.u64.low %v7802_v15, %v1528_v9  ;;  %v7862_v60 = vmul.u32.u64.high %v7802_v15, %v1528_v9, %v7861_v35  ;;  %vm8859_vm5 = vcmp.lt.s32.totalorder %v7795_v44, 2  ;;  %v1890_v5 = vxor.u32 2147483648, %v7837_v33 }
 0x3e8   : > { %v1686_v8 = vsel %vm8857_vm13, %v8856_v58, %v8852_v26  ;;  %v1990_v13 = vadd.s32 3, %v1986_v41  ;;  %v1994_v4 = vxor.u32 2147483648, %v8860_v19  ;;  %v7870_v26 = vadd.f32 %v7352_v32, %v7430_v3 }
 0x3e9   : > { %v1687_v59 = vsel %vm8859_vm5, %v1683_v42, %v1686_v8  ;;  %vm1888_vm9 = vcmp.lt.s32.totalorder %v7785_v48, 2  ;;  %v8861_v2 = vxor.u32 2147483648, %v7783_v45  ;;  %vm8862_vm1 = vcmp.eq.s32.totalorder %v7785_v48, 2  ;;  %v5499_v48 = vld [vmem:[#allocation2 + $0x178] sm:$0xff]  }
 0x3ea   : > { %v2189_v36 = vxor.u32 2147483648, %v2188_v29  ;;  %v1536_v44 = vmul.u32 %v7802_v15, %v1520_v11  ;;  %v1539_v10 = vadd.s32 1, %v7845_v57  ;;  %vm8863_vm0 = vweird.f32 %v8841_v34  ;;  %5156 = vmatprep.subr.bf16.mxu0 %v5499_v48 }
 0x3eb   : > { %v1894_v40 = vsel %vm8862_vm1, %v8861_v2, %v7837_v33  ;;  %v1688_v55 = vsel %vm8863_vm0, nan, %v1687_v59  ;;  %v1991_v46 = vand.u32 3, %v1990_v13  ;;  %v1997_v32 = vxor.u32 2147483648, %v8864_v27  ;;  %5157 = vmatpush3.bf16.msra.mxu0 %v5499_v48 }
 0x3ec   : > { %v3044_v16 = vand.u32 2139095040, %v7870_v26  ;;  %vm8865_vm6 = vcmp.lt.s32.totalorder %v7490_v17, 0  ;;  %vm1538_vm13 = vc.u32 %v7862_v60, %v7844_v47  ;;  %v3041_v33 = vand.u32 2147483647, %v7870_v26 }
 0x3ed   : > { %v2190_v6 = vsel %vm8865_vm6, %v2189_v36, %v2188_v29  ;;  %v7891_v15 = vadd.f32 %v7357_v24, %v7430_v3  ;;  %vm1885_vm5 = vweird.f32 %v7440_v50  ;;  %v1540_v63 = vsel %vm1538_vm13, %v1539_v10, %v7845_v57 }
 0x3ee   : > { %v2193_v34 = vsel %vm7779_vm4, %v7490_v17, %v2190_v6  ;;  %vm1992_vm1 = vcmp.lt.s32.totalorder %v1991_v46, 2  ;;  %vm1993_vm0 = vcmp.eq.s32.totalorder %v1991_v46, 0  ;;  %v1541_v42 = vadd.s32 %v1540_v63, %v1536_v44 }
 0x3ef   : > { %5601 = vcosq.f32 %v2193_v34  ;;  %v1995_v7 = vsel %vm1993_vm0, %v8864_v27, %v1994_v4  ;;  %vm1996_vm6 = vcmp.eq.s32.totalorder %v1991_v46, 2  ;;  %v3045_v24 = vshrl.u32 %v3044_v16, 23 }
 0x3f0   : > { %5603 = vsinq.f32 %v2193_v34  ;;  %v1998_v38 = vsel %vm1996_vm6, %v1997_v32, %v8860_v19  ;;  %v2417_v11 = vand.u32 2147483647, %v7891_v15  ;;  %v1891_v39 = vsel %vm1889_vm7, %v7783_v45, %v1890_v5 }
 0x3f1   : > { %v1542_v9 = vadd.s32 536870912, %v1541_v42  ;;  %v1999_v58 = vsel %vm1992_vm1, %v1995_v7, %v1998_v38  ;;  %v3048_v57 = vand.u32 8388607, %v3041_v33  ;;  %v7907_v8 = vand.u32 3, %v7800_v30 }
 0x3f2   : > { %v2000_v12 = vsel %vm1989_vm10, nan, %v1999_v58  ;;  %v4801_v41 = vadd.s32 4294967169, %v3045_v24  ;;  %v2420_v29 = vand.u32 2139095040, %v7891_v15  ;;  %5605 = vcosq.f32 %v7809_v25 }
 0x3f3   : > { %vm1483_vm4 = vcmp.lt.s32.totalorder %v7706_v23, 0  ;;  %v1543_v35 = vshrl.u32 %v1542_v9, 30  ;;  %v3682_v45 = vpack.c.bf16 %v2000_v12, %v1688_v55  ;;  %v1895_v59 = vsel %vm1888_vm9, %v1891_v39, %v1894_v40 }
 0x3f4   : > { %v3049_v5 = vor.u32 8388608, %v3048_v57  ;;  %v3051_v13 = vadd.s32 1, %v4801_v41  ;;  %v7918_v30 = vand.u32 8388607, %v2417_v11  ;;  %v2421_v4 = vshrl.u32 %v2420_v29, 23 }
 0x3f5   : > { %v1544_v51 = vshll.u32 %v1543_v35, 30  ;;  %v1567_v19 = vsub.s32 4, %v1543_v35  ;;  %3889 = vmatmul.mubr.bf16.gmra.mrb[36].mxu1 %v3682_v45  ;;  %v7922_v2 = vadd.f32 %v7400_v1, %v7430_v3  ;;  %5607 = vsinq.f32 %v7809_v25  ;;  %v5500_v25 = vld [vmem:[#allocation2 + $0x180] sm:$0xff]  }
 0x3f6   : > { %vm2201_vm10 = vcmp.eq.s32.totalorder %v7907_v8, 0  ;;  %vm2204_vm7 = vcmp.eq.s32.totalorder %v7907_v8, 2  ;;  %vm3052_vm9 = vcmp.gt.s32.totalorder %v3051_v13, 0  ;;  %v7929_v40 = vsel %vm1885_vm5, nan, %v1895_v59  ;;  %5158 = vmatprep.subr.bf16.mxu0 %v5500_v25 }
 0x3f7   : > { %8866 = vst [vmem:[#allocation30_spill] sm:$0xff] %v7929_v40  ;;  %vm2200_vm13 = vcmp.lt.s32.totalorder %v7907_v8, 2  ;;  %v7934_v36 = vadd.s32 %v7844_v47, %v7862_v60  ;;  %v7936_v1 = vsub.s32 %v1541_v42, %v1544_v51  ;;  %v3053_v44 = vsel %vm3052_vm9, %v3051_v13, 0  ;;  %5159 = vmatpush3.bf16.msra.mxu0 %v5500_v25 }
 0x3f8   : > { %v3055_v10 = vand.u32 31, %v3053_v44  ;;  %v7938_v55 = vshll.u32 %v3049_v5, 8  ;;  %v2425_v46 = vor.u32 8388608, %v7918_v30  ;;  %v8637_v27 = vand.u32 2147483647, %v7922_v2 }
 0x3f9   : > { %v5602_v50 = vpop.eup %5601  ;;  %v1547_v32 = vsub.s32 0, %v7936_v1  ;;  %v7945_v16 = vsel %vm1483_vm4, %v1567_v19, %v1543_v35  ;;  %v4777_v47 = vadd.s32 4294967169, %v2421_v4  ;;  %v3356_v60 = vand.u32 2139095040, %v7922_v2 }
 0x3fa   : > { %v5604_v6 = vpop.eup %5603  ;;  %v2205_v34 = vxor.u32 2147483648, %v5602_v50  ;;  %v3054_v63 = vshrl.u32 %v3053_v44, 5  ;;  %v3056_v42 = vsub.s32 32, %v3055_v10  ;;  %v3058_v7 = vshll.u32 %v8667_v22, %v3055_v10 }
 0x3fb   : > { %v2202_v38 = vxor.u32 2147483648, %v5604_v6  ;;  %v4742_v24 = vmin.u32 %v1547_v32, %v7936_v1  ;;  %v3061_v39 = vshll.u32 %v8662_v62, %v3055_v10  ;;  %v3064_v9 = vshll.u32 %v8663_v52, %v3055_v10 }
 0x3fc   : > { %v2206_v58 = vsel %vm2204_vm7, %v2205_v34, %v5604_v6  ;;  %v3059_v57 = vshrl.u32 %v8662_v62, %v3056_v42  ;;  %v3062_v12 = vshrl.u32 %v8663_v52, %v3056_v42  ;;  %v3067_v41 = vshll.u32 %v8668_v61, %v3055_v10  ;;  %v7957_v29 = vpop.eup %5605 }
 0x3fd   : > { %v2203_v35 = vsel %vm2201_vm10, %v5602_v50, %v2202_v38  ;;  %v1549_v45 = vclz %v4742_v24  ;;  %v3065_v59 = vshrl.u32 %v8668_v61, %v3056_v42  ;;  %v3068_v5 = vshrl.u32 %v8664_v54, %v3056_v42 }
 0x3fe   : > { %v3057_v13 = vshrl.u32 %v8667_v22, %v3056_v42  ;;  %v3070_v51 = vshll.u32 %v8664_v54, %v3055_v10  ;;  %v2427_v19 = vadd.s32 1, %v4777_v47  ;;  %v3357_v4 = vshrl.u32 %v3356_v60, 23 }
 0x3ff   : > { %v4743_v48 = vadd.s32 4294967294, %v1549_v45  ;;  %v3060_v44 = vor.u32 %v3059_v57, %v3058_v7  ;;  %v3063_v32 = vor.u32 %v3062_v12, %v3061_v39  ;;  %v3066_v6 = vor.u32 %v3065_v59, %v3064_v9  ;;  %v7965_v34 = vpop.eup %5607 }
 0x400   : > { %v2207_v50 = vsel %vm2200_vm13, %v2203_v35, %v2206_v58  ;;  %v8867_v38 = vand.u32 2147483647, %v7706_v23  ;;  %v3069_v25 = vor.u32 %v3068_v5, %v3067_v41  ;;  %v3071_v10 = vshrl.u32 %v8673_v56, %v3056_v42 }
 0x401   : > { %vm3073_vm1 = vcmp.lt.s32.totalorder %v3054_v63, 1  ;;  %vm2197_vm0 = vweird.f32 %v7490_v17  ;;  %vm4744_vm6 = vcmp.lt.s32.totalorder %v4743_v48, 0  ;;  %vm3074_vm10 = vcmp.lt.s32.totalorder %v3054_v63, 2 }
 0x402   : > { %vm7971_vm5 = vcmp.le.f32.partialorder %v8867_v38, 0.7853982  ;;  %vm3075_vm7 = vcmp.lt.s32.totalorder %v3054_v63, 3  ;;  %vm3076_vm9 = vcmp.lt.s32.totalorder %v3054_v63, 4  ;;  %v1552_v47 = vsel %vm4744_vm6, 0, %v4743_v48 }
 0x403   : > { %v3072_v60 = vor.u32 %v3071_v10, %v3070_v51  ;;  %v3077_v8 = vsel %vm3073_vm1, %v3057_v13, %v3060_v44  ;;  %v3078_v7 = vsel %vm3076_vm9, %v3066_v6, 2102212464  ;;  %v1553_v39 = vsub.s32 32, %v1552_v47 }
 0x404   : > { %v1557_v9 = vsub.s32 4294967266, %v1552_v47  ;;  %v3079_v58 = vsel %vm3075_vm7, %v3063_v32, %v3078_v7  ;;  %v3081_v57 = vsel %vm3073_vm1, %v3060_v44, %v3063_v32  ;;  %v1554_v42 = vshll.u32 %v7936_v1, %v1552_v47 }
 0x405   : > { %v3082_v12 = vsel %vm3076_vm9, %v3069_v25, 920167782  ;;  %v3085_v41 = vsel %vm3073_vm1, %v3063_v32, %v3066_v6  ;;  %v3086_v35 = vsel %vm3076_vm9, %v3072_v60, 1326507024  ;;  %v1555_v45 = vshrl.u32 %v7934_v36, %v1553_v39 }
 0x406   : > { %v1558_v59 = vadd.s32 127, %v1557_v9  ;;  %v3083_v5 = vsel %vm3075_vm7, %v3066_v6, %v3082_v12  ;;  %v3087_v13 = vsel %vm3075_vm7, %v3069_v25, %v3086_v35  ;;  %v3080_v51 = vsel %vm3074_vm10, %v3077_v8, %v3079_v58 }
 0x407   : > { %v3084_v48 = vsel %vm3074_vm10, %v3081_v57, %v3083_v5  ;;  %v3088_v38 = vsel %vm3074_vm10, %v3085_v41, %v3087_v13  ;;  %vm2428_vm13 = vcmp.gt.s32.totalorder %v2427_v19, 0  ;;  %v1556_v44 = vor.u32 %v1555_v45, %v1554_v42 }
 0x408   : > { %v1559_v1 = vshll.u32 %v1558_v59, 23  ;;  %v7989_v10 = vmul.u32.u64.low %v7938_v55, %v3088_v38  ;;  %v7990_v32 = vmul.u32.u64.high %v7938_v55, %v3088_v38, %v7989_v10  ;;  %v2429_v6 = vsel %vm2428_vm13, %v2427_v19, 0 }
 0x409   : > { %v7993_v36 = vmul.u32.u64.low %v7938_v55, %v3084_v48  ;;  %v7994_v47 = vmul.u32.u64.high %v7938_v55, %v3084_v48, %v7993_v36  ;;  %v7999_v25 = vshll.u32 %v2425_v46, 8  ;;  %v1570_v63 = vsel %vm7971_vm5, 0, %v7945_v16 }
 0x40a   : > { %v1560_v60 = vor.u32 4788187, %v1559_v1  ;;  %v2431_v8 = vand.u32 31, %v2429_v6  ;;  %v8006_v7 = vand.u32 8388607, %v8637_v27  ;;  %v8010_v39 = vsel %vm2197_vm0, nan, %v2207_v50 }
 0x40b   : > { %v1563_v9 = vcvt.s32.f32 %v1556_v44  ;;  %v3096_v19 = vmul.u32 %v7938_v55, %v3080_v51  ;;  %v4813_v30 = vadd.s32 4294967169, %v3357_v4  ;;  %vm3098_vm1 = vc.u32 %v7990_v32, %v7993_v36 }
 0x40c   : > { %v1561_v46 = vand.u32 2147483647, %v1560_v60  ;;  %v2430_v58 = vshrl.u32 %v2429_v6, 5  ;;  %v2432_v57 = vsub.s32 32, %v2431_v8  ;;  %v3099_v16 = vadd.s32 1, %v7994_v47 }
 0x40d   : > { %v2434_v42 = vshll.u32 %v8667_v22, %v2431_v8  ;;  %v2437_v12 = vshll.u32 %v8662_v62, %v2431_v8  ;;  %v2440_v17 = vshll.u32 %v8663_v52, %v2431_v8  ;;  %v2443_v59 = vshll.u32 %v8668_v61, %v2431_v8 }
 0x40e   : > { %v1564_v50 = vmul.f32 %v1563_v9, %v1561_v46  ;;  %v2433_v41 = vshrl.u32 %v8667_v22, %v2432_v57  ;;  %v2435_v55 = vshrl.u32 %v8662_v62, %v2432_v57  ;;  %v2438_v4 = vshrl.u32 %v8663_v52, %v2432_v57 }
 0x40f   : > { %v3100_v35 = vsel %vm3098_vm1, %v3099_v16, %v7994_v47  ;;  %v2441_v45 = vshrl.u32 %v8668_v61, %v2432_v57  ;;  %v2444_v5 = vshrl.u32 %v8664_v54, %v2432_v57  ;;  %vm3043_vm0 = vcmp.lt.s32.totalorder %v7870_v26, 0 }
 0x410   : > { %v1565_v13 = vxor.u32 2147483648, %v1564_v50  ;;  %v3101_v51 = vadd.s32 %v3100_v35, %v3096_v19  ;;  %v2436_v48 = vor.u32 %v2435_v55, %v2434_v42  ;;  %v2439_v38 = vor.u32 %v2438_v4, %v2437_v12 }
 0x411   : > { %v2442_v44 = vor.u32 %v2441_v45, %v2440_v17  ;;  %v2445_v1 = vor.u32 %v2444_v5, %v2443_v59  ;;  %v2446_v10 = vshll.u32 %v8664_v54, %v2431_v8  ;;  %v2447_v6 = vshrl.u32 %v8673_v56, %v2432_v57 }
 0x412   : > { %v8031_v60 = vadd.s32 3, %v1570_v63  ;;  %v3102_v9 = vadd.s32 536870912, %v3101_v51  ;;  %vm2449_vm6 = vcmp.lt.s32.totalorder %v2430_v58, 1  ;;  %vm2451_vm10 = vcmp.lt.s32.totalorder %v2430_v58, 3 }
 0x413   : > { %v2448_v46 = vor.u32 %v2447_v6, %v2446_v10  ;;  %vm2452_vm7 = vcmp.lt.s32.totalorder %v2430_v58, 4  ;;  %v3361_v19 = vor.u32 8388608, %v8006_v7  ;;  %vm8036_vm9 = vcmp.le.f32.partialorder %v3041_v33, 0.7853982  ;;  %v8872_v6 = vld [vmem:[#allocation39_spill] sm:$0xff] }
 0x414   : > { %v3103_v8 = vshrl.u32 %v3102_v9, 30  ;;  %vm2450_vm13 = vcmp.lt.s32.totalorder %v2430_v58, 2  ;;  %v2454_v57 = vsel %vm2452_vm7, %v2442_v44, 2102212464  ;;  %v3363_v42 = vadd.s32 1, %v4813_v30 }
 0x415   : > { %v1566_v63 = vsel %vm1483_vm4, %v1565_v13, %v1564_v50  ;;  %v2453_v12 = vsel %vm2449_vm6, %v2433_v41, %v2436_v48  ;;  %v2457_v17 = vsel %vm2449_vm6, %v2436_v48, %v2439_v38  ;;  %v2458_v7 = vsel %vm2452_vm7, %v2445_v1, 920167782 }
 0x416   : > { %v3104_v55 = vshll.u32 %v3103_v8, 30  ;;  %v3127_v4 = vsub.s32 4, %v3103_v8  ;;  %v2455_v33 = vsel %vm2451_vm10, %v2439_v38, %v2454_v57  ;;  %v2459_v35 = vsel %vm2451_vm10, %v2442_v44, %v2458_v7 }
 0x417   : > { %v2460_v45 = vsel %vm2450_vm13, %v2457_v17, %v2459_v35  ;;  %v2461_v59 = vsel %vm2449_vm6, %v2439_v38, %v2442_v44  ;;  %v2462_v30 = vsel %vm2452_vm7, %v2448_v46, 1326507024  ;;  %v8053_v50 = vadd.f32 %v7523_v49, %v7430_v3 }
 0x418   : > { %v1569_v41 = vsel %vm7971_vm5, %v7706_v23, %v1566_v63  ;;  %v8058_v5 = vsub.s32 %v3101_v51, %v3104_v55  ;;  %v2463_v13 = vsel %vm2451_vm10, %v2445_v1, %v2462_v30  ;;  %vm3364_vm4 = vcmp.gt.s32.totalorder %v3363_v42, 0 }
 0x419   : > { %v2456_v48 = vsel %vm2450_vm13, %v2453_v12, %v2455_v33  ;;  %v2464_v10 = vsel %vm2450_vm13, %v2461_v59, %v2463_v13  ;;  %v8064_v38 = vmul.u32.u64.low %v7999_v25, %v2460_v45  ;;  %v8065_v44 = vmul.u32.u64.high %v7999_v25, %v2460_v45, %v8064_v38 }
 0x41a   : > { %v3107_v3 = vsub.s32 0, %v8058_v5  ;;  %v8071_v49 = vsel %vm3043_vm0, %v3127_v4, %v3103_v8  ;;  %v8074_v24 = vmul.u32.u64.low %v7999_v25, %v2464_v10  ;;  %v8075_v51 = vmul.u32.u64.high %v7999_v25, %v2464_v10, %v8074_v24 }
 0x41b   : > { %5609 = vcosq.f32 %v1569_v41  ;;  %v3097_v58 = vadd.s32 %v7993_v36, %v7990_v32  ;;  %v3365_v1 = vsel %vm3364_vm4, %v3363_v42, 0  ;;  %v2399_v9 = vsub.s32 4, %v8872_v6 }
 0x41c   : > { %5611 = vsinq.f32 %v1569_v41  ;;  %v4802_v46 = vmin.u32 %v3107_v3, %v8058_v5  ;;  %v2472_v57 = vmul.u32 %v7999_v25, %v2456_v48  ;;  %v3367_v63 = vand.u32 31, %v3365_v1 }
 0x41d   : > { %v2475_v12 = vadd.s32 1, %v8065_v44  ;;  %v8086_v17 = vshll.u32 %v3361_v19, 8  ;;  %v8638_v7 = vand.u32 2147483647, %v8053_v50  ;;  %vm2474_vm5 = vc.u32 %v8075_v51, %v8064_v38 }
 0x41e   : > { %v3109_v32 = vclz %v4802_v46  ;;  %v8091_v36 = vshrl.u32 %v3365_v1, 5  ;;  %v3368_v42 = vsub.s32 32, %v3367_v63  ;;  %v3370_v55 = vshll.u32 %v8667_v22, %v3367_v63 }
 0x41f   : > { %v2476_v25 = vsel %vm2474_vm5, %v2475_v12, %v8065_v44  ;;  %v3373_v4 = vshll.u32 %v8662_v62, %v3367_v63  ;;  %v2732_v33 = vand.u32 2139095040, %v8053_v50  ;;  %v3376_v59 = vshll.u32 %v8663_v52, %v3367_v63 }
 0x420   : > { %v4803_v35 = vadd.s32 4294967294, %v3109_v32  ;;  %v2477_v19 = vadd.s32 %v2476_v25, %v2472_v57  ;;  %v3371_v45 = vshrl.u32 %v8662_v62, %v3368_v42  ;;  %vm2419_vm1 = vcmp.lt.s32.totalorder %v7891_v15, 0 }
 0x421   : > { %v3374_v30 = vshrl.u32 %v8663_v52, %v3368_v42  ;;  %v3377_v41 = vshrl.u32 %v8668_v61, %v3368_v42  ;;  %v3379_v13 = vshll.u32 %v8668_v61, %v3367_v63  ;;  %v3380_v48 = vshrl.u32 %v8664_v54, %v3368_v42 }
 0x422   : > { %vm4804_vm6 = vcmp.lt.s32.totalorder %v4803_v35, 0  ;;  %v2478_v10 = vadd.s32 536870912, %v2477_v19  ;;  %v3369_v44 = vshrl.u32 %v8667_v22, %v3368_v42  ;;  %v8107_v3 = vand.u32 8388607, %v8638_v7 }
 0x423   : > { %v3112_v24 = vsel %vm4804_vm6, 0, %v4803_v35  ;;  %v3372_v1 = vor.u32 %v3371_v45, %v3370_v55  ;;  %v3375_v46 = vor.u32 %v3374_v30, %v3373_v4  ;;  %v3382_v57 = vshll.u32 %v8664_v54, %v3367_v63 }
 0x424   : > { %v3113_v12 = vsub.s32 32, %v3112_v24  ;;  %v3117_v32 = vsub.s32 4294967266, %v3112_v24  ;;  %vm8112_vm10 = vcmp.le.f32.partialorder %v2417_v11, 0.7853982  ;;  %v2479_v47 = vshrl.u32 %v2478_v10, 30 }
 0x425   : > { %v3378_v27 = vor.u32 %v3377_v41, %v3376_v59  ;;  %v8116_v8 = vpop.eup %5609  ;;  %v3114_v7 = vshll.u32 %v8058_v5, %v3112_v24  ;;  %v3381_v40 = vor.u32 %v3380_v48, %v3379_v13  ;;  %v3383_v55 = vshrl.u32 %v8673_v56, %v3368_v42 }
 0x426   : > { %vm3385_vm7 = vcmp.lt.s32.totalorder %v8091_v36, 1  ;;  %v8121_v63 = vpop.eup %5611  ;;  %v3115_v4 = vshrl.u32 %v3097_v58, %v3113_v12  ;;  %v3118_v35 = vadd.s32 127, %v3117_v32  ;;  %v2480_v45 = vshll.u32 %v2479_v47, 30 }
 0x427   : > { %v2503_v11 = vsub.s32 4, %v2479_v47  ;;  %v3384_v30 = vor.u32 %v3383_v55, %v3382_v57  ;;  %vm3386_vm13 = vcmp.lt.s32.totalorder %v8091_v36, 2  ;;  %vm3388_vm4 = vcmp.lt.s32.totalorder %v8091_v36, 4 }
 0x428   : > { %vm8875_vm5 = vcmp.lt.s32.totalorder %v6427_v0, 0  ;;  %v3116_v59 = vor.u32 %v3115_v4, %v3114_v7  ;;  %v3119_v41 = vshll.u32 %v3118_v35, 23  ;;  %v8128_v42 = vsub.s32 %v2477_v19, %v2480_v45 }
 0x429   : > { %v2400_v5 = vsel %vm8875_vm5, %v2399_v9, %v8872_v6  ;;  %vm3387_vm6 = vcmp.lt.s32.totalorder %v8091_v36, 3  ;;  %v3389_v58 = vsel %vm3385_vm7, %v3369_v44, %v3372_v1  ;;  %v3390_v13 = vsel %vm3388_vm4, %v3378_v27, 2102212464 }
 0x42a   : > { %v3393_v48 = vsel %vm3385_vm7, %v3372_v1, %v3375_v46  ;;  %v3394_v10 = vsel %vm3388_vm4, %v3381_v40, 920167782  ;;  %v3120_v24 = vor.u32 4788187, %v3119_v41  ;;  %v2483_v6 = vsub.s32 0, %v8128_v42 }
 0x42b   : > { %v2504_v9 = vsel %vm2419_vm1, %v2503_v11, %v2479_v47  ;;  %v3397_v7 = vsel %vm3385_vm7, %v3375_v46, %v3378_v27  ;;  %v3123_v19 = vcvt.s32.f32 %v3116_v59  ;;  %v3395_v44 = vsel %vm3387_vm6, %v3378_v27, %v3394_v10 }
 0x42c   : > { %v3398_v57 = vsel %vm3388_vm4, %v3384_v30, 1326507024  ;;  %v2733_v1 = vshrl.u32 %v2732_v33, 23  ;;  %v3121_v12 = vand.u32 2147483647, %v3120_v24  ;;  %v4778_v32 = vmin.u32 %v2483_v6, %v8128_v42 }
 0x42d   : > { %v3391_v55 = vsel %vm3387_vm6, %v3375_v46, %v3390_v13  ;;  %v3396_v47 = vsel %vm3386_vm13, %v3393_v48, %v3395_v44  ;;  %v2506_v4 = vsel %vm8112_vm10, 0, %v2504_v9  ;;  %v3399_v35 = vsel %vm3387_vm6, %v3381_v40, %v3398_v57 }
 0x42e   : > { %v8158_v27 = vmul.u32.u64.low %v8086_v17, %v3396_v47  ;;  %v8159_v45 = vmul.u32.u64.high %v8086_v17, %v3396_v47, %v8158_v27  ;;  %v3124_v33 = vmul.f32 %v3123_v19, %v3121_v12  ;;  %v2485_v11 = vclz %v4778_v32 }
 0x42f   : > { %v3400_v30 = vsel %vm3386_vm13, %v3397_v7, %v3399_v35  ;;  %v4789_v59 = vadd.s32 4294967169, %v2733_v1  ;;  %v3392_v46 = vsel %vm3386_vm13, %v3389_v58, %v3391_v55  ;;  %v2737_v48 = vor.u32 8388608, %v8107_v3 }
 0x430   : > { %v8166_v41 = vmul.u32.u64.low %v8086_v17, %v3400_v30  ;;  %v8167_v13 = vmul.u32.u64.high %v8086_v17, %v3400_v30, %v8166_v41  ;;  %v3125_v40 = vxor.u32 2147483648, %v3124_v33  ;;  %v4779_v10 = vadd.s32 4294967294, %v2485_v11 }
 0x431   : > { %v2739_v24 = vadd.s32 1, %v4789_v59  ;;  %v2402_v6 = vsel %vm7177_vm8, 0, %v2400_v5  ;;  %v8876_v9 = vsel %vm8036_vm9, 0, %v8071_v49  ;;  %v2473_v36 = vadd.s32 %v8064_v38, %v8075_v51 }
 0x432   : > { %v8176_v7 = vadd.s32 3, %v8876_v9  ;;  %v8180_v58 = vadd.s32 3, %v2506_v4  ;;  %v3411_v19 = vadd.s32 1, %v8159_v45  ;;  %v3126_v3 = vsel %vm3043_vm0, %v3125_v40, %v3124_v33 }
 0x433   : > { %vm4780_vm7 = vcmp.lt.s32.totalorder %v4779_v10, 0  ;;  %v3408_v18 = vmul.u32 %v8086_v17, %v3392_v46  ;;  %vm2740_vm8 = vcmp.gt.s32.totalorder %v2739_v24, 0  ;;  %v3129_v49 = vsel %vm8036_vm9, %v7870_v26, %v3126_v3 }
 0x434   : > { %v2488_v5 = vsel %vm4780_vm7, 0, %v4779_v10  ;;  %vm3410_vm13 = vc.u32 %v8167_v13, %v8158_v27  ;;  %v2406_v44 = vadd.s32 3, %v2402_v6  ;;  %v8190_v57 = vshll.u32 %v2737_v48, 8 }
 0x435   : > { %v2489_v38 = vsub.s32 32, %v2488_v5  ;;  %v2493_v51 = vsub.s32 4294967266, %v2488_v5  ;;  %v2410_v1 = vxor.u32 2147483648, %v7475_v37  ;;  %5613 = vcosq.f32 %v3129_v49 }
 0x436   : > { %v3412_v12 = vsel %vm3410_vm13, %v3411_v19, %v8159_v45  ;;  %v2741_v32 = vsel %vm2740_vm8, %v2739_v24, 0  ;;  %v2413_v17 = vxor.u32 2147483648, %v7297_v20  ;;  %v2490_v55 = vshll.u32 %v8128_v42, %v2488_v5 }
 0x437   : > { %v2491_v16 = vshrl.u32 %v2473_v36, %v2489_v38  ;;  %v2494_v47 = vadd.s32 127, %v2493_v51  ;;  %vm8640_vm0 = vcmp.lt.s32.totalorder %v7922_v2, 0  ;;  %v3413_v4 = vadd.s32 %v3412_v12, %v3408_v18 }
 0x438   : > { %5615 = vsinq.f32 %v3129_v49  ;;  %v8198_v35 = vadd.s32 %v8158_v27, %v8167_v13  ;;  %v2743_v33 = vand.u32 31, %v2741_v32  ;;  %v8200_v11 = vand.u32 3, %v2406_v44 }
 0x439   : > { %v2492_v30 = vor.u32 %v2491_v16, %v2490_v55  ;;  %v2495_v59 = vshll.u32 %v2494_v47, 23  ;;  %v3414_v45 = vadd.s32 536870912, %v3413_v4  ;;  %v2742_v46 = vshrl.u32 %v2741_v32, 5 }
 0x43a   : > { %v2744_v41 = vsub.s32 32, %v2743_v33  ;;  %v2746_v48 = vshll.u32 %v8667_v22, %v2743_v33  ;;  %v2749_v42 = vshll.u32 %v8662_v62, %v2743_v33  ;;  %v2752_v40 = vshll.u32 %v8663_v52, %v2743_v33 }
 0x43b   : > { %v2496_v10 = vor.u32 4788187, %v2495_v59  ;;  %v2499_v24 = vcvt.s32.f32 %v2492_v30  ;;  %v8877_v6 = vand.u32 2147483647, %v7922_v2  ;;  %v3415_v13 = vshrl.u32 %v3414_v45, 30 }
 0x43c   : > { %v2755_v9 = vshll.u32 %v8668_v61, %v2743_v33  ;;  %v2745_v36 = vshrl.u32 %v8667_v22, %v2744_v41  ;;  %v2747_v19 = vshrl.u32 %v8662_v62, %v2744_v41  ;;  %v2750_v3 = vshrl.u32 %v8663_v52, %v2744_v41 }
 0x43d   : > { %vm8207_vm9 = vcmp.le.f32.partialorder %v8877_v6, 0.7853982  ;;  %v2753_v18 = vshrl.u32 %v8668_v61, %v2744_v41  ;;  %v2497_v49 = vand.u32 2147483647, %v2496_v10  ;;  %v3416_v5 = vshll.u32 %v3415_v13, 30 }
 0x43e   : > { %v3439_v44 = vsub.s32 4, %v3415_v13  ;;  %v2756_v38 = vshrl.u32 %v8664_v54, %v2744_v41  ;;  %v2748_v51 = vor.u32 %v2747_v19, %v2746_v48  ;;  %v2751_v12 = vor.u32 %v2750_v3, %v2749_v42 }
 0x43f   : > { %v2754_v32 = vor.u32 %v2753_v18, %v2752_v40  ;;  %v2758_v55 = vshll.u32 %v8664_v54, %v2743_v33  ;;  %v2500_v16 = vmul.f32 %v2499_v24, %v2497_v49  ;;  %v8218_v47 = vsub.s32 %v3413_v4, %v3416_v5  ;;  %v8220_v62 = vpop.eup %5613 }
 0x440   : > { %v2757_v22 = vor.u32 %v2756_v38, %v2755_v9  ;;  %vm2761_vm4 = vcmp.lt.s32.totalorder %v2742_v46, 1  ;;  %v3440_v52 = vsel %vm8640_vm0, %v3439_v44, %v3415_v13  ;;  %v2759_v61 = vshrl.u32 %v8673_v56, %v2744_v41 }
 0x441   : > { %vm2763_vm5 = vcmp.lt.s32.totalorder %v2742_v46, 3  ;;  %vm2409_vm6 = vcmp.eq.s32.totalorder %v8200_v11, 0  ;;  %v2501_v30 = vxor.u32 2147483648, %v2500_v16  ;;  %v3419_v59 = vsub.s32 0, %v8218_v47 }
 0x442   : > { %vm2762_vm7 = vcmp.lt.s32.totalorder %v2742_v46, 2  ;;  %vm2764_vm8 = vcmp.lt.s32.totalorder %v2742_v46, 4  ;;  %v8227_v54 = vpop.eup %5615  ;;  %v2760_v4 = vor.u32 %v2759_v61, %v2758_v55  ;;  %v2765_v33 = vsel %vm2761_vm4, %v2745_v36, %v2748_v51  ;;  %v8880_v55 = vld [vmem:[#allocation55_spill] sm:$0xff] }
 0x443   : > { %v2766_v45 = vsel %vm2764_vm8, %v2754_v32, 2102212464  ;;  %v2769_v48 = vsel %vm2761_vm4, %v2748_v51, %v2751_v12  ;;  %v2502_v56 = vsel %vm2419_vm1, %v2501_v30, %v2500_v16  ;;  %v4814_v41 = vmin.u32 %v3419_v59, %v8218_v47 }
 0x444   : > { %v2767_v42 = vsel %vm2763_vm5, %v2751_v12, %v2766_v45  ;;  %v2770_v40 = vsel %vm2764_vm8, %v2757_v22, 920167782  ;;  %v3442_v10 = vsel %vm8207_vm9, 0, %v3440_v52  ;;  %v2773_v6 = vsel %vm2761_vm4, %v2751_v12, %v2754_v32 }
 0x445   : > { %v2771_v24 = vsel %vm2763_vm5, %v2754_v32, %v2770_v40  ;;  %vm2405_vm13 = vweird.f32 %v6427_v0  ;;  %vm2412_vm0 = vcmp.eq.s32.totalorder %v8200_v11, 2  ;;  %v2505_v13 = vsel %vm8112_vm10, %v7891_v15, %v2502_v56 }
 0x446   : > { %v3421_v9 = vclz %v4814_v41  ;;  %v2772_v36 = vsel %vm2762_vm7, %v2769_v48, %v2771_v24  ;;  %v2774_v19 = vsel %vm2764_vm8, %v2760_v4, 1326507024  ;;  %v2768_v3 = vsel %vm2762_vm7, %v2765_v33, %v2767_v42  ;;  %v8882_v4 = vld [vmem:[#allocation40_spill] sm:$0xff]  ;;  %v8883_v41 = vld [vmem:[#allocation34_spill] sm:$0xff] }
 0x447   : > { %v2775_v18 = vsel %vm2763_vm5, %v2757_v22, %v2774_v19  ;;  %v8251_v49 = vmul.u32.u64.low %v8190_v57, %v2772_v36  ;;  %v8252_v5 = vmul.u32.u64.high %v8190_v57, %v2772_v36, %v8251_v49  ;;  %vm2408_vm1 = vcmp.lt.s32.totalorder %v8200_v11, 2 }
 0x448   : > { %v4815_v44 = vadd.s32 4294967294, %v3421_v9  ;;  %v2776_v38 = vsel %vm2762_vm7, %v2773_v6, %v2775_v18  ;;  %v2411_v25 = vsel %vm2409_vm6, %v7297_v20, %v2410_v1  ;;  %v2414_v32 = vsel %vm2412_vm0, %v2413_v17, %v7475_v37  ;;  %v8887_v9 = vld [vmem:[#allocation24_spill] sm:$0xff] }
 0x449   : > { %v8263_v51 = vmul.u32.u64.low %v8190_v57, %v2776_v38  ;;  %v8264_v12 = vmul.u32.u64.high %v8190_v57, %v2776_v38, %v8263_v51  ;;  %v2711_v16 = vsub.s32 4, %v8880_v55  ;;  %5617 = vcosq.f32 %v2505_v13 }
 0x44a   : > { %vm4816_vm10 = vcmp.lt.s32.totalorder %v4815_v44, 0  ;;  %v8270_v46 = vadd.s32 3, %v3442_v10  ;;  %v2784_v22 = vmul.u32 %v8190_v57, %v2768_v3  ;;  %v2787_v11 = vadd.s32 1, %v8252_v5 }
 0x44b   : > { %v3424_v52 = vsel %vm4816_vm10, 0, %v4815_v44  ;;  %v2415_v1 = vsel %vm2408_vm1, %v2411_v25, %v2414_v32  ;;  %vm8881_vm4 = vcmp.lt.s32.totalorder %v6700_v43, 0  ;;  %v2722_v37 = vxor.u32 2147483648, %v7503_v53  ;;  %v8891_v32 = vld [vmem:[#allocation48_spill] sm:$0xff] }
 0x44c   : > { %v2712_v61 = vsel %vm8881_vm4, %v2711_v16, %v8880_v55  ;;  %v3425_v30 = vsub.s32 32, %v3424_v52  ;;  %v3429_v59 = vsub.s32 4294967266, %v3424_v52  ;;  %v3426_v17 = vshll.u32 %v8218_v47, %v3424_v52 }
 0x44d   : > { %v2714_v20 = vsel %vm7361_vm14, 0, %v2712_v61  ;;  %vm2786_vm0 = vc.u32 %v8264_v12, %v8251_v49  ;;  %v2725_v33 = vxor.u32 2147483648, %v8882_v4  ;;  %vm2731_vm5 = vcmp.lt.s32.totalorder %v8053_v50, 0 }
 0x44e   : > { %v2718_v57 = vadd.s32 3, %v2714_v20  ;;  %v3427_v45 = vshrl.u32 %v8198_v35, %v3425_v30  ;;  %v3430_v48 = vadd.s32 127, %v3429_v59  ;;  %v2788_v56 = vsel %vm2786_vm0, %v2787_v11, %v8252_v5  ;;  %v8889_v5 = vld [vmem:[#allocation64_spill] sm:$0xff]  ;;  %v8892_v59 = vld [vmem:[#allocation35_spill] sm:$0xff] }
 0x44f   : > { %v2295_v28 = vsub.s32 4, %v8883_v41  ;;  %5619 = vsinq.f32 %v2505_v13  ;;  %v2789_v42 = vadd.s32 %v2788_v56, %v2784_v22  ;;  %vm2717_vm14 = vweird.f32 %v6700_v43 }
 0x450   : > { %v2719_v47 = vand.u32 3, %v2718_v57  ;;  %v3428_v40 = vor.u32 %v3427_v45, %v3426_v17  ;;  %v3431_v10 = vshll.u32 %v3430_v48, 23  ;;  %v8884_v24 = vand.u32 2147483647, %v8053_v50  ;;  %v8894_v57 = vld [vmem:[#allocation63_spill] sm:$0xff] }
 0x451   : > { %v2416_v35 = vsel %vm2405_vm13, nan, %v2415_v1  ;;  %vm8888_vm7 = vcmp.lt.s32.totalorder %v8887_v9, 0  ;;  %v2790_v13 = vadd.s32 536870912, %v2789_v42  ;;  %v2306_v44 = vxor.u32 2147483648, %v8889_v5 }
 0x452   : > { %vm8291_vm6 = vcmp.le.f32.partialorder %v8884_v24, 0.7853982  ;;  %v2296_v36 = vsel %vm8888_vm7, %v2295_v28, %v8883_v41  ;;  %vm2720_vm8 = vcmp.lt.s32.totalorder %v2719_v47, 2  ;;  %vm2721_vm1 = vcmp.eq.s32.totalorder %v2719_v47, 0 }
 0x453   : > { %vm2724_vm10 = vcmp.eq.s32.totalorder %v2719_v47, 2  ;;  %v3432_v19 = vor.u32 4788187, %v3431_v10  ;;  %v2723_v3 = vsel %vm2721_vm1, %v8882_v4, %v2722_v37  ;;  %v2791_v38 = vshrl.u32 %v2790_v13, 30  ;;  %v8306_v16 = vpop.eup %5617  ;;  %v8896_v47 = vld [vmem:[#allocation23_spill] sm:$0xff] }
 0x454   : > { %v2726_v18 = vsel %vm2724_vm10, %v2725_v33, %v7503_v53  ;;  %v2298_v0 = vsel %vm7072_vm2, 0, %v2296_v36  ;;  %v2607_v55 = vsub.s32 4, %v8891_v32  ;;  %v3435_v52 = vcvt.s32.f32 %v3428_v40  ;;  %v8897_v36 = vld [vmem:[#allocation13_spill] sm:$0xff] }
 0x455   : > { %v2727_v25 = vsel %vm2720_vm8, %v2723_v3, %v2726_v18  ;;  %v3433_v22 = vand.u32 2147483647, %v3432_v19  ;;  %v2302_v1 = vadd.s32 3, %v2298_v0  ;;  %v2792_v61 = vshll.u32 %v2791_v38, 30  ;;  %v8898_v19 = vld [vmem:[#allocation60_spill] sm:$0xff]  ;;  %v8900_v0 = vld [vmem:[#allocation46_spill] sm:$0xff] }
 0x456   : > { %v2728_v11 = vsel %vm2717_vm14, nan, %v2727_v25  ;;  %v2815_v30 = vsub.s32 4, %v2791_v38  ;;  %vm8893_vm13 = vcmp.lt.s32.totalorder %v8892_v59, 0  ;;  %v2309_v4 = vxor.u32 2147483648, %v8894_v57 }
 0x457   : > { %v3686_v53 = vpack.c.bf16 %v2728_v11, %v2416_v35  ;;  %v2608_v20 = vsel %vm8893_vm13, %v2607_v55, %v8891_v32  ;;  %v3436_v37 = vmul.f32 %v3435_v52, %v3433_v22  ;;  %v2303_v17 = vand.u32 3, %v2302_v1  ;;  %v8902_v22 = vld [vmem:[#allocation44_spill] sm:$0xff] }
 0x458   : > { %v2610_v45 = vsel %vm7191_vm11, 0, %v2608_v20  ;;  %v8318_v48 = vadd.s32 %v8251_v49, %v8264_v12  ;;  %v8320_v43 = vsub.s32 %v2789_v42, %v2792_v61  ;;  %v2816_v56 = vsel %vm2731_vm5, %v2815_v30, %v2791_v38 }
 0x459   : > { %3896 = vmatprep.mubr.bf16.mxu1 %v3686_v53  ;;  %v2614_v41 = vadd.s32 3, %v2610_v45  ;;  %v3437_v28 = vxor.u32 2147483648, %v3436_v37  ;;  %vm2304_vm2 = vcmp.lt.s32.totalorder %v2303_v17, 2  ;;  %vm2305_vm4 = vcmp.eq.s32.totalorder %v2303_v17, 0  ;;  %v8325_v10 = vpop.eup %5619  ;;  %v8904_v53 = vld [vmem:[#allocation21_spill] sm:$0xff] }
 0x45a   : > { %v2618_v40 = vxor.u32 2147483648, %v8896_v47  ;;  %v2795_v24 = vsub.s32 0, %v8320_v43  ;;  %v2818_v49 = vsel %vm8291_vm6, 0, %v2816_v56  ;;  %v2307_v12 = vsel %vm2305_vm4, %v8894_v57, %v2306_v44 }
 0x45b   : > { %vm2308_vm11 = vcmp.eq.s32.totalorder %v2303_v17, 2  ;;  %v2615_v35 = vand.u32 3, %v2614_v41  ;;  %v2621_v13 = vxor.u32 2147483648, %v8897_v36  ;;  %v3023_v3 = vsub.s32 4, %v8898_v19 }
 0x45c   : > { %v2310_v42 = vsel %vm2308_vm11, %v2309_v4, %v8889_v5  ;;  %v4790_v18 = vmin.u32 %v2795_v24, %v8320_v43  ;;  %vm2301_vm0 = vweird.f32 %v8887_v9  ;;  %vm2613_vm14 = vweird.f32 %v8892_v59  ;;  %v8905_v4 = vld [vmem:[#allocation49_spill] sm:$0xff] }
 0x45d   : > { %v2311_v38 = vsel %vm2304_vm2, %v2307_v12, %v2310_v42  ;;  %vm8899_vm7 = vcmp.lt.s32.totalorder %v7922_v2, 0  ;;  %v8339_v51 = vadd.s32 3, %v2818_v49  ;;  %vm2616_vm8 = vcmp.lt.s32.totalorder %v2615_v35, 2  ;;  %v8908_v42 = vld [vmem:[#allocation58_spill] sm:$0xff] }
 0x45e   : > { %v3438_v25 = vsel %vm8899_vm7, %v3437_v28, %v3436_v37  ;;  %vm2617_vm1 = vcmp.eq.s32.totalorder %v2615_v35, 0  ;;  %v2797_v5 = vclz %v4790_v18  ;;  %vm2620_vm10 = vcmp.eq.s32.totalorder %v2615_v35, 2  ;;  %v8351_v37 = vpop.f32.mrb[32].mxu1 }
 0x45f   : > { %v2619_v44 = vsel %vm2617_vm1, %v8897_v36, %v2618_v40  ;;  %vm3029_vm13 = vweird.f32 %v8900_v0  ;;  %v2312_v32 = vsel %vm2301_vm0, nan, %v2311_v38  ;;  %v2622_v55 = vsel %vm2620_vm10, %v2621_v13, %v8896_v47  ;;  %v8357_v56 = vpop.f32.mrb[33].mxu1  ;;  %v8909_v38 = vld [vmem:[#allocation38_spill] sm:$0xff] }
 0x460   : > { %vm8901_vm2 = vcmp.lt.s32.totalorder %v8900_v0, 0  ;;  %v3034_v52 = vxor.u32 2147483648, %v8902_v22  ;;  %v4791_v11 = vadd.s32 4294967294, %v2797_v5  ;;  %v2623_v1 = vsel %vm2616_vm8, %v2619_v44, %v2622_v55  ;;  %v8363_v40 = vpop.f32.mrb[34].mxu1 }
 0x461   : > { %v3024_v9 = vsel %vm8901_vm2, %v3023_v3, %v8898_v19  ;;  %v3335_v20 = vsub.s32 4, %v8904_v53  ;;  %v2624_v17 = vsel %vm2613_vm14, nan, %v2623_v1  ;;  %v3037_v33 = vxor.u32 2147483648, %v8905_v4  ;;  %v8368_v36 = vpop.f32.mrb[35].mxu1 }
 0x462   : > { %v3026_v30 = vsel %vm7420_vm12, 0, %v3024_v9  ;;  %v3346_v45 = vxor.u32 2147483648, %v7830_v14  ;;  %vm4792_vm4 = vcmp.lt.s32.totalorder %v4791_v11, 0  ;;  %v3685_v41 = vpack.c.bf16 %v2624_v17, %v2312_v32 }
 0x463   : > { %v3030_v57 = vadd.s32 3, %v3026_v30  ;;  %vm8906_vm11 = vcmp.lt.s32.totalorder %v7144_v31, 0  ;;  %v3349_v47 = vxor.u32 2147483648, %v7826_v21  ;;  %v2800_v24 = vsel %vm4792_vm4, 0, %v4791_v11 }
 0x464   : > { %v3336_v28 = vsel %vm8906_vm11, %v3335_v20, %v8904_v53  ;;  %v2919_v35 = vsub.s32 4, %v8908_v42  ;;  %v2801_v13 = vsub.s32 32, %v2800_v24  ;;  %v2802_v19 = vshll.u32 %v8320_v43, %v2800_v24  ;;  %3897 = vmatmul.mubr.bf16.gmra.mrb[40].mxu1 %v3685_v41  ;;  %v8913_v41 = vld [vmem:[#allocation36_spill] sm:$0xff] }
 0x465   : > { %v3031_v59 = vand.u32 3, %v3030_v57  ;;  %v3338_v12 = vsel %vm7696_vm3, 0, %v3336_v28  ;;  %v2805_v3 = vsub.s32 4294967266, %v2800_v24  ;;  %vm8910_vm7 = vcmp.lt.s32.totalorder %v8909_v38, 0  ;;  %v8914_v24 = vld [vmem:[#allocation62_spill] sm:$0xff] }
 0x466   : > { %v3342_v18 = vadd.s32 3, %v3338_v12  ;;  %v2920_v5 = vsel %vm8910_vm7, %v2919_v35, %v8908_v42  ;;  %v2803_v44 = vshrl.u32 %v8318_v48, %v2801_v13  ;;  %v3441_v43 = vsel %vm8207_vm9, %v7922_v2, %v3438_v25 }
 0x467   : > { %vm3032_vm12 = vcmp.lt.s32.totalorder %v3031_v59, 2  ;;  %vm3033_vm0 = vcmp.eq.s32.totalorder %v3031_v59, 0  ;;  %vm3036_vm14 = vcmp.eq.s32.totalorder %v3031_v59, 2  ;;  %v2806_v32 = vadd.s32 127, %v2805_v3 }
 0x468   : > { %v3035_v55 = vsel %vm3033_vm0, %v8905_v4, %v3034_v52  ;;  %v3038_v9 = vsel %vm3036_vm14, %v3037_v33, %v8902_v22  ;;  %v3343_v1 = vand.u32 3, %v3342_v18  ;;  %v2922_v30 = vsel %vm7384_vm15, 0, %v2920_v5  ;;  %v8912_v52 = vld [vmem:[#allocation14_spill] sm:$0xff]  ;;  %v8919_v5 = vld [vmem:[#allocation31_spill] sm:$0xff] }
 0x469   : > { %v3039_v11 = vsel %vm3032_vm12, %v3035_v55, %v3038_v9  ;;  %v2804_v53 = vor.u32 %v2803_v44, %v2802_v19  ;;  %v2807_v20 = vshll.u32 %v2806_v32, 23  ;;  %vm3341_vm3 = vweird.f32 %v7144_v31  ;;  %v8917_v31 = vld [vmem:[#allocation15_spill] sm:$0xff]  ;;  %v8920_v32 = vld [vmem:[#allocation26_spill] sm:$0xff] }
 0x46a   : > { %v2926_v17 = vadd.s32 3, %v2922_v30  ;;  %v3040_v48 = vsel %vm3029_vm13, nan, %v3039_v11  ;;  %vm3344_vm8 = vcmp.lt.s32.totalorder %v3343_v1, 2  ;;  %vm3345_vm1 = vcmp.eq.s32.totalorder %v3343_v1, 0  ;;  %v8921_v9 = vld [vmem:[#allocation27_spill] sm:$0xff] }
 0x46b   : > { %vm3348_vm10 = vcmp.eq.s32.totalorder %v3343_v1, 2  ;;  %v2808_v22 = vor.u32 4788187, %v2807_v20  ;;  %v3347_v27 = vsel %vm3345_vm1, %v7826_v21, %v3346_v45  ;;  %v2930_v57 = vxor.u32 2147483648, %v8912_v52 }
 0x46c   : > { %v3350_v25 = vsel %vm3348_vm10, %v3349_v47, %v7830_v14  ;;  %v2927_v33 = vand.u32 3, %v2926_v17  ;;  %v2933_v28 = vxor.u32 2147483648, %v8913_v41  ;;  %v3231_v59 = vsub.s32 4, %v8914_v24  ;;  %v8915_v47 = vld [vmem:[#allocation57_spill] sm:$0xff] }
 0x46d   : > { %v3351_v4 = vsel %vm3344_vm8, %v3347_v27, %v3350_v25  ;;  %5621 = vcosq.f32 %v3441_v43  ;;  %v2809_v49 = vand.u32 2147483647, %v2808_v22  ;;  %v2811_v0 = vcvt.s32.f32 %v2804_v53 }
 0x46e   : > { %v3352_v12 = vsel %vm3341_vm3, nan, %v3351_v4  ;;  %vm2928_vm15 = vcmp.lt.s32.totalorder %v2927_v33, 2  ;;  %vm2929_vm9 = vcmp.eq.s32.totalorder %v2927_v33, 0  ;;  %vm2932_vm13 = vcmp.eq.s32.totalorder %v2927_v33, 2 }
 0x46f   : > { %v3689_v42 = vpack.c.bf16 %v3352_v12, %v3040_v48  ;;  %v2812_v21 = vmul.f32 %v2811_v0, %v2809_v49  ;;  %v2931_v14 = vsel %vm2929_vm9, %v8913_v41, %v2930_v57  ;;  %v2934_v45 = vsel %vm2932_vm13, %v2933_v28, %v8912_v52  ;;  %v8922_v52 = vld [vmem:[#allocation28_spill] sm:$0xff] }
 0x470   : > { %vm8916_vm2 = vcmp.lt.s32.totalorder %v8915_v47, 0  ;;  %5623 = vsinq.f32 %v3441_v43  ;;  %vm2925_vm4 = vweird.f32 %v8909_v38  ;;  %v2935_v13 = vsel %vm2928_vm15, %v2931_v14, %v2934_v45 }
 0x471   : > { %v3232_v35 = vsel %vm8916_vm2, %v3231_v59, %v8914_v24  ;;  %3904 = vmatprep.mubr.bf16.mxu1 %v3689_v42  ;;  %vm8918_vm11 = vnez %v8917_v31  ;;  %v2813_v3 = vxor.u32 2147483648, %v2812_v21  ;;  %vm3237_vm12 = vweird.f32 %v8915_v47 }
 0x472   : > { %v3234_v19 = vsel %vm8918_vm11, 0, %v3232_v35  ;;  %v1263_v44 = vand.u32 3, %v8919_v5  ;;  %v3242_v55 = vxor.u32 2147483648, %v8920_v32  ;;  %v3245_v11 = vxor.u32 2147483648, %v8921_v9 }
 0x473   : > { %v3238_v18 = vadd.s32 3, %v3234_v19  ;;  %v1266_v1 = vxor.u32 2147483648, %v7965_v34  ;;  %v1269_v43 = vxor.u32 2147483648, %v7957_v29  ;;  %v2814_v38 = vsel %vm2731_vm5, %v2813_v3, %v2812_v21 }
 0x474   : > { %v2936_v61 = vsel %vm2925_vm4, nan, %v2935_v13  ;;  %vm1265_vm0 = vcmp.eq.s32.totalorder %v1263_v44, 0  ;;  %v2817_v53 = vsel %vm8291_vm6, %v8053_v50, %v2814_v38  ;;  %vm1268_vm14 = vcmp.eq.s32.totalorder %v1263_v44, 2 }
 0x475   : > { %v3239_v30 = vand.u32 3, %v3238_v18  ;;  %v1267_v20 = vsel %vm1265_vm0, %v7957_v29, %v1266_v1  ;;  %v1575_v17 = vand.u32 3, %v8031_v60  ;;  %5625 = vcosq.f32 %v2817_v53 }
 0x476   : > { %5627 = vsinq.f32 %v2817_v53  ;;  %v1270_v27 = vsel %vm1268_vm14, %v1269_v43, %v7965_v34  ;;  %vm1261_vm5 = vweird.f32 %v8922_v52  ;;  %vm1264_vm6 = vcmp.lt.s32.totalorder %v1263_v44, 2 }
 0x477   : > { %vm3240_vm7 = vcmp.lt.s32.totalorder %v3239_v30, 2  ;;  %vm3241_vm3 = vcmp.eq.s32.totalorder %v3239_v30, 0  ;;  %vm3244_vm8 = vcmp.eq.s32.totalorder %v3239_v30, 2  ;;  %v8416_v25 = vpop.eup %5621  ;;  %v1578_v29 = vxor.u32 2147483648, %v8121_v63 }
 0x478   : > { %v3243_v48 = vsel %vm3241_vm3, %v8921_v9, %v3242_v55  ;;  %v3246_v22 = vsel %vm3244_vm8, %v3245_v11, %v8920_v32  ;;  %v1271_v57 = vsel %vm1264_vm6, %v1267_v20, %v1270_v27  ;;  %vm1577_vm1 = vcmp.eq.s32.totalorder %v1575_v17, 0  ;;  %v5507_v27 = vld [vmem:[#allocation2 + $0x1b8] sm:$0xff]  }
 0x479   : > { %v3247_v6 = vsel %vm3240_vm7, %v3243_v48, %v3246_v22  ;;  %v1581_v4 = vxor.u32 2147483648, %v8116_v8  ;;  %vm1576_vm10 = vcmp.lt.s32.totalorder %v1575_v17, 2  ;;  %v1579_v41 = vsel %vm1577_vm1, %v8116_v8, %v1578_v29  ;;  %v5505_v48 = vld [vmem:[#allocation2 + $0x1a8] sm:$0xff]   ;;  %v5506_v22 = vld [vmem:[#allocation2 + $0x1b0] sm:$0xff]  }
 0x47a   : > { %v3248_v60 = vsel %vm3237_vm12, nan, %v3247_v6  ;;  %vm1580_vm15 = vcmp.eq.s32.totalorder %v1575_v17, 2  ;;  %v5624_v34 = vpop.eup %5623  ;;  %v2511_v24 = vand.u32 3, %v8180_v58  ;;  %v2514_v59 = vxor.u32 2147483648, %v8325_v10  ;;  %v5502_v17 = vld [vmem:[#allocation2 + $0x190] sm:$0xff]   ;;  %v5509_v6 = vld [vmem:[#allocation2 + $0x1c8] sm:$0xff]  }
 0x47b   : > { %v3688_v33 = vpack.c.bf16 %v3248_v60, %v2936_v61  ;;  %v1582_v28 = vsel %vm1580_vm15, %v1581_v4, %v8121_v63  ;;  %v2517_v49 = vxor.u32 2147483648, %v8306_v16  ;;  %v1272_v0 = vsel %vm1261_vm5, nan, %v1271_v57 }
 0x47c   : > { %vm1573_vm9 = vweird.f32 %v7706_v23  ;;  %v1583_v12 = vsel %vm1576_vm10, %v1579_v41, %v1582_v28  ;;  %v2823_v42 = vand.u32 3, %v8339_v51  ;;  %vm3835_vm13 = vcmask 261120  }
 0x47d   : > { %3905 = vmatmul.mubr.bf16.gmra.mrb[44].mxu1 %v3688_v33  ;;  %v1584_v8 = vsel %vm1573_vm9, nan, %v1583_v12  ;;  %vm2513_vm2 = vcmp.eq.s32.totalorder %v2511_v24, 0  ;;  %vm2516_vm4 = vcmp.eq.s32.totalorder %v2511_v24, 2  ;;  %vm2509_vm11 = vweird.f32 %v7891_v15  ;;  %v3986_v12 = vld [vmem:[%s8501_s4 + $0x48] ss:$0 sm:$0xff] }
 0x47e   : > { %v3681_v63 = vpack.c.bf16 %v1584_v8, %v1272_v0  ;;  %v2515_v58 = vsel %vm2513_vm2, %v8306_v16, %v2514_v59  ;;  %v2518_v21 = vsel %vm2516_vm4, %v2517_v49, %v8325_v10  ;;  %vm2512_vm12 = vcmp.lt.s32.totalorder %v2511_v24, 2  ;;  %v8923_v16 = vld [vmem:[#allocation30_spill] sm:$0xff] }
 0x47f   : > { %vm2821_vm0 = vweird.f32 %v8053_v50  ;;  %vm2824_vm14 = vcmp.lt.s32.totalorder %v2823_v42, 2  ;;  %v3135_v23 = vand.u32 3, %v8176_v7  ;;  %v5626_v14 = vpop.eup %5625  ;;  %v2519_v51 = vsel %vm2512_vm12, %v2515_v58, %v2518_v21 }
 0x480   : > { %5160 = vmatprep.mubr.msk.bf16.mxu0 %vm3835_vm13, %v3681_v63  ;;  %vm2825_vm7 = vcmp.eq.s32.totalorder %v2823_v42, 0  ;;  %v3138_v45 = vxor.u32 2147483648, %v8227_v54  ;;  %v3141_v47 = vxor.u32 2147483648, %v8220_v62  ;;  %v5628_v35 = vpop.eup %5627  ;;  %v8924_v13 = vpack.c.bf16 %v8010_v39, %v8923_v16 }
 0x481   : > { %vm2828_vm3 = vcmp.eq.s32.totalorder %v2823_v42, 2  ;;  %v2829_v10 = vxor.u32 2147483648, %v5626_v14  ;;  %vm3137_vm8 = vcmp.eq.s32.totalorder %v3135_v23, 0  ;;  %vm3140_vm5 = vcmp.eq.s32.totalorder %v3135_v23, 2 }
 0x482   : > { %5161 = vmatmul.mubr.msk.bf16.vlgmr.msra.gmra.mrb[16].mxu0 %vm3835_vm13, %v8924_v13  ;;  %v2826_v7 = vxor.u32 2147483648, %v5628_v35  ;;  %v3139_v31 = vsel %vm3137_vm8, %v8220_v62, %v3138_v45  ;;  %v3142_v19 = vsel %vm3140_vm5, %v3141_v47, %v8227_v54  ;;  %v3447_v3 = vand.u32 3, %v8270_v46 }
 0x483   : > { %v2830_v18 = vsel %vm2828_vm3, %v2829_v10, %v5628_v35  ;;  %vm3136_vm6 = vcmp.lt.s32.totalorder %v3135_v23, 2  ;;  %v3450_v5 = vxor.u32 2147483648, %v5624_v34  ;;  %v3453_v44 = vxor.u32 2147483648, %v8416_v25 }
 0x484   : > { %v2520_v39 = vsel %vm2509_vm11, nan, %v2519_v51  ;;  %v2827_v32 = vsel %vm2825_vm7, %v5626_v14, %v2826_v7  ;;  %v3143_v55 = vsel %vm3136_vm6, %v3139_v31, %v3142_v19  ;;  %vm3449_vm1 = vcmp.eq.s32.totalorder %v3447_v3, 0 }
 0x485   : > { %v2831_v9 = vsel %vm2824_vm14, %v2827_v32, %v2830_v18  ;;  %v3451_v62 = vsel %vm3449_vm1, %v8416_v25, %v3450_v5  ;;  %vm3452_vm10 = vcmp.eq.s32.totalorder %v3447_v3, 2  ;;  %v4964_v54 = vadd.f32 %v8357_v56, %v8351_v37  ;;  %v5508_v25 = vld [vmem:[#allocation2 + $0x1c0] sm:$0xff]  }
 0x486   : > { %v2832_v46 = vsel %vm2821_vm0, nan, %v2831_v9  ;;  %vm3448_vm15 = vcmp.lt.s32.totalorder %v3447_v3, 2  ;;  %v3454_v11 = vsel %vm3452_vm10, %v3453_v44, %v5624_v34  ;;  %v8459_v15 = vadd.f32 %v8368_v36, %v8363_v40  ;;  %v5501_v36 = vld [vmem:[#allocation2 + $0x188] sm:$0xff]   ;;  %v5510_v44 = vld [vmem:[#allocation2 + $0x1d0] sm:$0xff]  }
 0x487   : > { %v3687_v1 = vpack.c.bf16 %v2832_v46, %v2520_v39  ;;  %vm3133_vm9 = vweird.f32 %v7870_v26  ;;  %vm3445_vm2 = vweird.f32 %v7922_v2  ;;  %v3455_v43 = vsel %vm3448_vm15, %v3451_v62, %v3454_v11  ;;  %5168 = vmatprep.subr.bf16.mxu1 %v5501_v36  ;;  %v5503_v26 = vld [vmem:[#allocation2 + $0x198] sm:$0xff]   ;;  %v5504_v2 = vld [vmem:[#allocation2 + $0x1a0] sm:$0xff]  }
 0x488   : > { %v3144_v38 = vsel %vm3133_vm9, nan, %v3143_v55  ;;  %v3456_v61 = vsel %vm3445_vm2, nan, %v3455_v43  ;;  %5169 = vmatpush3.bf16.msra.mxu1 %v5501_v36  ;;  %v5516_v36 = vld [vmem:[#allocation2 + $0x200] sm:$0xff]  }
 0x489   : > { %5164 = vmatprep.mubr.msk.bf16.mxu0 %vm3835_vm13, %v3687_v1  ;;  %v3690_v37 = vpack.c.bf16 %v3456_v61, %v3144_v38  ;;  %5170 = vmatprep.subr.bf16.mxu1 %v5502_v17 }
 0x48b   : > { %5165 = vmatmul.mubr.msk.bf16.gmra.mrb[20].mxu0 %vm3835_vm13, %v3690_v37 }
 0x48c   : > { %5171 = vmatpush3.bf16.msra.mxu1 %v5502_v17  ;;  %v5517_v17 = vld [vmem:[#allocation2 + $0x248] sm:$0xff]  }
 0x48d   : > { %5172 = vmatprep.subr.bf16.mxu1 %v5503_v26  ;;  %5216 = vmatprep.subr.bf16.mxu0 %v5517_v17 }
 0x48e   : > { %5217 = vmatpush3.bf16.msra.mxu0 %v5517_v17 }
 0x490   : > { %5173 = vmatpush3.bf16.msra.mxu1 %v5503_v26  ;;  %v5518_v26 = vld [vmem:[#allocation2 + $0x250] sm:$0xff]  }
 0x491   : > { %5174 = vmatprep.subr.bf16.mxu1 %v5504_v2  ;;  %5218 = vmatprep.subr.bf16.mxu0 %v5518_v26 }
 0x492   : > { %5219 = vmatpush3.bf16.msra.mxu0 %v5518_v26 }
 0x494   : > { %5175 = vmatpush3.bf16.msra.mxu1 %v5504_v2  ;;  %v5519_v2 = vld [vmem:[#allocation2 + $0x258] sm:$0xff]  }
 0x495   : > { %5176 = vmatprep.subr.bf16.mxu1 %v5505_v48  ;;  %5220 = vmatprep.subr.bf16.mxu0 %v5519_v2 }
 0x496   : > { %5221 = vmatpush3.bf16.msra.mxu0 %v5519_v2 }
 0x498   : > { %5177 = vmatpush3.bf16.msra.mxu1 %v5505_v48  ;;  %v5520_v48 = vld [vmem:[#allocation2 + $0x260] sm:$0xff]  }
 0x499   : > { %5178 = vmatprep.subr.bf16.mxu1 %v5506_v22  ;;  %5222 = vmatprep.subr.bf16.mxu0 %v5520_v48 }
 0x49a   : > { %5223 = vmatpush3.bf16.msra.mxu0 %v5520_v48 }
 0x49c   : > { %5179 = vmatpush3.bf16.msra.mxu1 %v5506_v22  ;;  %v5521_v22 = vld [vmem:[#allocation2 + $0x268] sm:$0xff]  }
 0x49d   : > { %5180 = vmatprep.subr.bf16.mxu1 %v5507_v27  ;;  %5224 = vmatprep.subr.bf16.mxu0 %v5521_v22 }
 0x49e   : > { %5225 = vmatpush3.bf16.msra.mxu0 %v5521_v22  ;;  %v5528_v22 = vld [vmem:[#allocation2 + $0x220] sm:$0xff]  }
 0x4a0   : > { %5181 = vmatpush3.bf16.msra.mxu1 %v5507_v27  ;;  %v5522_v27 = vld [vmem:[#allocation2 + $0x270] sm:$0xff]  }
 0x4a1   : > { %5182 = vmatprep.subr.bf16.mxu1 %v5508_v25  ;;  %5226 = vmatprep.subr.bf16.mxu0 %v5522_v27 }
 0x4a2   : > { %5227 = vmatpush3.bf16.msra.mxu0 %v5522_v27 }
 0x4a4   : > { %5183 = vmatpush3.bf16.msra.mxu1 %v5508_v25  ;;  %v4023_v25 = vld [vmem:[%s8501_s4 + $0x60] ss:$0 sm:$0xff] }
 0x4a5   : > { %5192 = vmatprep.subr.bf16.mxu1 %v5509_v6 }
 0x4c8   : > { %v4968_v50 = vpop.f32.mrb[36].mxu1 }
 0x4c9   : > { %v4969_v56 = vpop.f32.mrb[37].mxu1 }
 0x4ca   : > { %v4970_v30 = vadd.f32 %v4969_v56, %v4968_v50  ;;  %v4971_v53 = vpop.f32.mrb[38].mxu1  ;;  %v5512_v56 = vld [vmem:[#allocation2 + $0x1e0] sm:$0xff]  }
 0x4cb   : > { %v4972_v20 = vpop.f32.mrb[39].mxu1 }
 0x4cc   : > { %v4973_v40 = vadd.f32 %v4972_v20, %v4971_v53  ;;  %v5513_v53 = vld [vmem:[#allocation2 + $0x1e8] sm:$0xff]   ;;  %v5514_v20 = vld [vmem:[#allocation2 + $0x1f0] sm:$0xff]  }
 0x537   : > { %v4974_v52 = vpop.f32.mrb[40].mxu1 }
 0x538   : > { %v4975_v29 = vpop.f32.mrb[41].mxu1 }
 0x539   : > { %v4976_v60 = vadd.f32 %v4975_v29, %v4974_v52  ;;  %v4977_v57 = vpop.f32.mrb[42].mxu1 }
 0x53a   : > { %v4978_v4 = vpop.f32.mrb[43].mxu1 }
 0x53b   : > { %v4979_v33 = vadd.f32 %v4978_v4, %v4977_v57 }
 0x550   : > { %v4980_v41 = vpop.f32.mrb[44].mxu1 }
 0x551   : > { %v4981_v34 = vpop.f32.mrb[45].mxu1 }
 0x552   : > { %v4982_v28 = vadd.f32 %v4981_v34, %v4980_v41  ;;  %v4983_v24 = vpop.f32.mrb[46].mxu1 }
 0x553   : > { %v4984_v59 = vpop.f32.mrb[47].mxu1 }
 0x554   : > { %v4985_v49 = vadd.f32 %v4984_v59, %v4983_v24 }
 0x555   : > { %v5162_v0 = vpop.f32.mrb[16].mxu0 }
 0x556   : > { %v3956_v42 = vadd.f32 %v5162_v0, %v4970_v30  ;;  %v3947_v8 = vpop.f32.mrb[17].mxu0 }
 0x557   : > { %v3948_v63 = vadd.f32 %v4964_v54, %v3947_v8  ;;  %v5163_v58 = vpop.f32.mrb[18].mxu0 }
 0x558   : > { %v3989_v21 = vadd.f32 %v3986_v12, %v3956_v42  ;;  %v3959_v23 = vadd.f32 %v5163_v58, %v4973_v40  ;;  %v3950_v14 = vpop.f32.mrb[19].mxu0  ;;  %v5515_v40 = vld [vmem:[#allocation2 + $0x1f8] sm:$0xff]  }
 0x559   : > { %v3987_v51 = vadd.f32 %v3986_v12, %v3948_v63  ;;  %v3951_v45 = vadd.f32 %v8459_v15, %v3950_v14  ;;  %v5511_v15 = vld [vmem:[#allocation2 + $0x1d8] sm:$0xff]  }
 0x55a   : > { %v3990_v47 = vadd.f32 %v3986_v12, %v3959_v23  ;;  %v3997_v16 = vmax.f32 %v3989_v21, 0.0 }
 0x55b   : > { %v3988_v35 = vadd.f32 %v3986_v12, %v3951_v45  ;;  %v3995_v10 = vmax.f32 %v3987_v51, 0.0 }
 0x55c   : > { %v3998_v13 = vmax.f32 %v3990_v47, 0.0 }
 0x55d   : > { %v3996_v7 = vmax.f32 %v3988_v35, 0.0 }
 0x55e   : > { %v4004_v31 = vpack.c.bf16 %v3998_v13, %v3997_v16  ;;  %v5166_v19 = vpop.f32.mrb[20].mxu0 }
 0x55f   : > { %v4003_v3 = vpack.c.bf16 %v3996_v7, %v3995_v10  ;;  %v3972_v18 = vadd.f32 %v5166_v19, %v4982_v28  ;;  %v3963_v5 = vpop.f32.mrb[21].mxu0  ;;  %v5523_v10 = vld [vmem:[#allocation2 + $0x278] sm:$0xff]   ;;  %v5524_v7 = vld [vmem:[#allocation2 + $0x280] sm:$0xff]  }
 0x560   : > { %v3964_v39 = vadd.f32 %v4976_v60, %v3963_v5  ;;  %v5167_v32 = vpop.f32.mrb[22].mxu0  ;;  %5228 = vmatprep.subr.bf16.mxu0 %v5523_v10  ;;  %v4165_v19 = vld [vmem:[%s8501_s4 + $0x78] ss:$0 sm:$0xff] }
 0x561   : > { %5184 = vmatprep.mubr.bf16.mxu1 %v4003_v3  ;;  %v3993_v55 = vadd.f32 %v3986_v12, %v3972_v18  ;;  %v3975_v9 = vadd.f32 %v5167_v32, %v4985_v49  ;;  %v3966_v62 = vpop.f32.mrb[23].mxu0  ;;  %5229 = vmatpush3.bf16.msra.mxu0 %v5523_v10 }
 0x562   : > { %5185 = vmatmul.mubr.bf16.vlgmr.msra.gmra.mrb[48].mxu1 %v4004_v31  ;;  %v3991_v54 = vadd.f32 %v3986_v12, %v3964_v39  ;;  %v3967_v46 = vadd.f32 %v4979_v33, %v3966_v62  ;;  %5230 = vmatprep.subr.bf16.mxu0 %v5524_v7  ;;  %v5525_v31 = vld [vmem:[#allocation2 + $0x208] sm:$0xff]  }
 0x563   : > { %5193 = vmatpush3.bf16.msra.mxu1 %v5509_v6  ;;  %v3994_v11 = vadd.f32 %v3986_v12, %v3975_v9  ;;  %v4001_v43 = vmax.f32 %v3993_v55, 0.0 }
 0x564   : > { %5194 = vmatprep.subr.bf16.mxu1 %v5510_v44  ;;  %v3992_v1 = vadd.f32 %v3986_v12, %v3967_v46  ;;  %v3999_v61 = vmax.f32 %v3991_v54, 0.0 }
 0x565   : > { %v4002_v38 = vmax.f32 %v3994_v11, 0.0  ;;  %5231 = vmatpush3.bf16.msra.mxu0 %v5524_v7 }
 0x566   : > { %v4000_v37 = vmax.f32 %v3992_v1, 0.0  ;;  %5240 = vmatprep.subr.bf16.mxu0 %v5525_v31 }
 0x567   : > { %5195 = vmatpush3.bf16.msra.mxu1 %v5510_v44  ;;  %v4006_v50 = vpack.c.bf16 %v4002_v38, %v4001_v43  ;;  %v5526_v43 = vld [vmem:[#allocation2 + $0x210] sm:$0xff]  }
 0x568   : > { %5196 = vmatprep.subr.bf16.mxu1 %v5511_v15  ;;  %v4005_v30 = vpack.c.bf16 %v4000_v37, %v3999_v61 }
 0x56a   : > { %5188 = vmatprep.mubr.bf16.mxu1 %v4005_v30 }
 0x56b   : > { %5197 = vmatpush3.bf16.msra.mxu1 %v5511_v15 }
 0x56c   : > { %5189 = vmatmul.mubr.bf16.gmra.mrb[52].mxu1 %v4006_v50  ;;  %5198 = vmatprep.subr.bf16.mxu1 %v5512_v56 }
 0x56f   : > { %5199 = vmatpush3.bf16.msra.mxu1 %v5512_v56 }
 0x570   : > { %5200 = vmatprep.subr.bf16.mxu1 %v5513_v53 }
 0x573   : > { %5201 = vmatpush3.bf16.msra.mxu1 %v5513_v53 }
 0x574   : > { %5202 = vmatprep.subr.bf16.mxu1 %v5514_v20 }
 0x577   : > { %5203 = vmatpush3.bf16.msra.mxu1 %v5514_v20  ;;  %v5527_v20 = vld [vmem:[#allocation2 + $0x218] sm:$0xff]  }
 0x578   : > { %5204 = vmatprep.subr.bf16.mxu1 %v5515_v40 }
 0x57b   : > { %5205 = vmatpush3.bf16.msra.mxu1 %v5515_v40 }
 0x57c   : > { %5206 = vmatprep.subr.bf16.mxu1 %v5516_v36 }
 0x57f   : > { %5207 = vmatpush3.bf16.msra.mxu1 %v5516_v36 }
 0x635   : > { %v5186_v6 = vpop.f32.mrb[48].mxu1 }
 0x636   : > { %v4115_v52 = vadd.f32 %v5186_v6, %v4023_v25  ;;  %v4106_v29 = vpop.f32.mrb[49].mxu1  ;;  %v8925_v6 = vld [vmem:[#allocation10_spill] sm:$0xff] }
 0x637   : > { %v4107_v60 = vadd.f32 %v4106_v29, %v4023_v25  ;;  %v5187_v57 = vpop.f32.mrb[50].mxu1  ;;  %v5531_v29 = vld [vmem:[#allocation2 + $0x238] sm:$0xff]  }
 0x638   : > { %v4118_v4 = vadd.f32 %v5187_v57, %v4023_v25  ;;  %v4109_v33 = vpop.f32.mrb[51].mxu1  ;;  %v4139_v34 = vmax.f32 %v4115_v52, 0.0  ;;  %v5530_v52 = vld [vmem:[#allocation2 + $0x230] sm:$0xff]   ;;  %v8926_v57 = vld [vmem:[#allocation9_spill] sm:$0xff] }
 0x639   : > { %v4110_v41 = vadd.f32 %v4109_v33, %v4023_v25  ;;  %v4137_v24 = vmax.f32 %v4107_v60, 0.0  ;;  %v5532_v60 = vld [vmem:[#allocation2 + $0x240] sm:$0xff]   ;;  %v8928_v33 = vld [vmem:[#allocation11_spill] sm:$0xff] }
 0x63a   : > { %v4140_v28 = vmax.f32 %v4118_v4, 0.0  ;;  %v8927_v4 = vld [vmem:[#allocation12_spill] sm:$0xff] }
 0x63b   : > { %v4138_v59 = vmax.f32 %v4110_v41, 0.0  ;;  %v4549_v41 = vld [vmem:[%s8501_s4 + $0x90] ss:$0 sm:$0xff] }
 0x63c   : > { %v4146_v49 = vpack.c.bf16 %v4140_v28, %v4139_v34 }
 0x63d   : > { %v4145_v0 = vpack.c.bf16 %v4138_v59, %v4137_v24 }
 0x63f   : > { %v5190_v12 = vpop.f32.mrb[52].mxu1  ;;  %5208 = vmatprep.mubr.bf16.mxu1 %v4145_v0 }
 0x640   : > { %v4131_v42 = vadd.f32 %v5190_v12, %v4023_v25  ;;  %v4122_v8 = vpop.f32.mrb[53].mxu1  ;;  %5209 = vmatmul.mubr.bf16.vlgmr.msra.gmra.mrb[56].mxu1 %v4146_v49 }
 0x641   : > { %v4123_v63 = vadd.f32 %v4122_v8, %v4023_v25  ;;  %v5191_v58 = vpop.f32.mrb[54].mxu1 }
 0x642   : > { %v4134_v21 = vadd.f32 %v5191_v58, %v4023_v25  ;;  %v4125_v23 = vpop.f32.mrb[55].mxu1  ;;  %v4143_v51 = vmax.f32 %v4131_v42, 0.0 }
 0x643   : > { %v4126_v14 = vadd.f32 %v4125_v23, %v4023_v25  ;;  %v4141_v47 = vmax.f32 %v4123_v63, 0.0  ;;  %v5529_v25 = vld [vmem:[#allocation2 + $0x228] sm:$0xff]  }
 0x644   : > { %v4144_v45 = vmax.f32 %v4134_v21, 0.0 }
 0x645   : > { %v4142_v35 = vmax.f32 %v4126_v14, 0.0 }
 0x646   : > { %v4148_v16 = vpack.c.bf16 %v4144_v45, %v4143_v51 }
 0x647   : > { %v4147_v13 = vpack.c.bf16 %v4142_v35, %v4141_v47 }
 0x649   : > { %5212 = vmatprep.mubr.bf16.mxu1 %v4147_v13 }
 0x64a   : > { %5213 = vmatmul.mubr.bf16.gmra.mrb[60].mxu1 %v4148_v16 }
 0x713   : > { %v5210_v3 = vpop.f32.mrb[56].mxu1 }
 0x714   : > { %v4257_v18 = vadd.f32 %v5210_v3, %v4165_v19  ;;  %v4248_v5 = vpop.f32.mrb[57].mxu1 }
 0x715   : > { %v4249_v44 = vadd.f32 %v4248_v5, %v4165_v19  ;;  %v5211_v39 = vpop.f32.mrb[58].mxu1 }
 0x716   : > { %v4260_v32 = vadd.f32 %v5211_v39, %v4165_v19  ;;  %v4251_v55 = vpop.f32.mrb[59].mxu1  ;;  %v4281_v62 = vmax.f32 %v4257_v18, 0.0 }
 0x717   : > { %v4252_v9 = vadd.f32 %v4251_v55, %v4165_v19  ;;  %v4279_v46 = vmax.f32 %v4249_v44, 0.0 }
 0x718   : > { %v4282_v54 = vmax.f32 %v4260_v32, 0.0 }
 0x719   : > { %v4280_v11 = vmax.f32 %v4252_v9, 0.0 }
 0x71a   : > { %v4304_v15 = vpack.c.bf16 %v4282_v54, %v4281_v62 }
 0x71b   : > { %v4303_v1 = vpack.c.bf16 %v4280_v11, %v4279_v46 }
 0x71d   : > { %v5214_v38 = vpop.f32.mrb[60].mxu1  ;;  %5232 = vmatprep.mubr.bf16.mxu0 %v4303_v1 }
 0x71e   : > { %v4273_v61 = vadd.f32 %v5214_v38, %v4165_v19  ;;  %v4264_v37 = vpop.f32.mrb[61].mxu1  ;;  %5233 = vmatmul.mubr.bf16.vlgmr.msra.gmra.mrb[24].mxu0 %v4304_v15 }
 0x71f   : > { %v4265_v50 = vadd.f32 %v4264_v37, %v4165_v19  ;;  %v5215_v56 = vpop.f32.mrb[62].mxu1  ;;  %5241 = vmatpush3.bf16.msra.mxu0 %v5525_v31 }
 0x720   : > { %v4276_v30 = vadd.f32 %v5215_v56, %v4165_v19  ;;  %v4267_v53 = vpop.f32.mrb[63].mxu1  ;;  %5242 = vmatprep.subr.bf16.mxu0 %v5526_v43  ;;  %v4285_v36 = vmax.f32 %v4273_v61, 0.0 }
 0x721   : > { %v4268_v40 = vadd.f32 %v4267_v53, %v4165_v19  ;;  %v4283_v26 = vmax.f32 %v4265_v50, 0.0 }
 0x722   : > { %v4286_v17 = vmax.f32 %v4276_v30, 0.0 }
 0x723   : > { %v4284_v2 = vmax.f32 %v4268_v40, 0.0  ;;  %5243 = vmatpush3.bf16.msra.mxu0 %v5526_v43 }
 0x724   : > { %v4306_v48 = vpack.c.bf16 %v4286_v17, %v4285_v36  ;;  %5244 = vmatprep.subr.bf16.mxu0 %v5527_v20 }
 0x725   : > { %v4305_v27 = vpack.c.bf16 %v4284_v2, %v4283_v26 }
 0x727   : > { %5236 = vmatprep.mubr.bf16.mxu0 %v4305_v27  ;;  %5245 = vmatpush3.bf16.msra.mxu0 %v5527_v20 }
 0x728   : > { %5237 = vmatmul.mubr.bf16.gmra.mrb[28].mxu0 %v4306_v48  ;;  %5246 = vmatprep.subr.bf16.mxu0 %v5528_v22 }
 0x729   : > { %5256 = vmatprep.mubr.bf16.mxu0 %v8925_v6 }
 0x72b   : > { %5247 = vmatpush3.bf16.msra.mxu0 %v5528_v22 }
 0x72c   : > { %5248 = vmatprep.subr.bf16.mxu0 %v5529_v25 }
 0x72f   : > { %5249 = vmatpush3.bf16.msra.mxu0 %v5529_v25 }
 0x730   : > { %5250 = vmatprep.subr.bf16.mxu0 %v5530_v52 }
 0x733   : > { %5251 = vmatpush3.bf16.msra.mxu0 %v5530_v52 }
 0x734   : > { %5252 = vmatprep.subr.bf16.mxu0 %v5531_v29 }
 0x737   : > { %5253 = vmatpush3.bf16.msra.mxu0 %v5531_v29 }
 0x738   : > { %5254 = vmatprep.subr.bf16.mxu0 %v5532_v60 }
 0x73b   : > { %5255 = vmatpush3.bf16.msra.mxu0 %v5532_v60 }
 0x73e   : > { %5257 = vmatmul.mubr.bf16.vlgmr.msra.gmra.mrb[24].mxu0 %v8926_v57 }
 0x73f   : > { %5260 = vmatprep.mubr.bf16.mxu0 %v8927_v4 }
 0x746   : > { %5261 = vmatmul.mubr.bf16.gmra.mrb[28].mxu0 %v8928_v33 }
 0x811   : > { %v5258_v34 = vpop.f32.mrb[24].mxu0 }
 0x812   : > { %v4552_v28 = vadd.f32 %v5258_v34, %v4549_v41  ;;  %v4518_v24 = vpop.f32.mrb[25].mxu0 }
 0x813   : > { %v4550_v59 = vadd.f32 %v4549_v41, %v4518_v24  ;;  %v5259_v49 = vpop.f32.mrb[26].mxu0 }
 0x814   : > { %4560 = vst.msk [vmem:[%s278_s23 + $0x10] sm:$0xff] %vm3835_vm13, %v4552_v28  ;;  %v4553_v0 = vadd.f32 %v5259_v49, %v4549_v41  ;;  %v4521_v12 = vpop.f32.mrb[27].mxu0 }
 0x815   : > { %4558 = vst.msk [vmem:[%s278_s23] sm:$0xff] %vm3835_vm13, %v4550_v59  ;;  %v4551_v42 = vadd.f32 %v4549_v41, %v4521_v12 }
 0x816   : > { %4561 = vst.msk [vmem:[%s278_s23 + $0x18] sm:$0xff] %vm3835_vm13, %v4553_v0 }
 0x817   : > { %4559 = vst.msk [vmem:[%s278_s23 + $0x8] sm:$0xff] %vm3835_vm13, %v4551_v42 }
 0x819   : > { %v5262_v8 = vpop.f32.mrb[28].mxu0 }
 0x81a   : > { %v4556_v63 = vadd.f32 %v5262_v8, %v4549_v41  ;;  %v4534_v58 = vpop.f32.mrb[29].mxu0 }
 0x81b   : > { %v4554_v21 = vadd.f32 %v4549_v41, %v4534_v58  ;;  %v5263_v23 = vpop.f32.mrb[30].mxu0 }
 0x81c   : > { %4564 = vst.msk [vmem:[%s278_s23 + $0x30] sm:$0xff] %vm3835_vm13, %v4556_v63  ;;  %v4557_v14 = vadd.f32 %v5263_v23, %v4549_v41  ;;  %v4537_v51 = vpop.f32.mrb[31].mxu0 }
 0x81d   : > { %4562 = vst.msk [vmem:[%s278_s23 + $0x20] sm:$0xff] %vm3835_vm13, %v4554_v21  ;;  %v4555_v45 = vadd.f32 %v4549_v41, %v4537_v51 }
 0x81e   : > { %4565 = vst.msk [vmem:[%s278_s23 + $0x38] sm:$0xff] %vm3835_vm13, %v4557_v14 }
 0x81f   : > { %4563 = vst.msk [vmem:[%s278_s23 + $0x28] sm:$0xff] %vm3835_vm13, %v4555_v45 }
 0x820 PF: > { %s17_s18 = sadd.s32 1, %s5703_s18  }
 0x821   : > { %p14_p5 = scmp.ge.s32.totalorder %s17_s18, 4  }
 0x823   :  { %16 = sbr.rel (!%p14_p5) target bundleno = 2 (0x2), region = 83 }
 0x82a   :  { %4588 = vsyncpa [#allocation3], 1 }
 0x82b   :  { %4590 = vsyncpa [#allocation3 + $0x1], 1 }
 0x82c   :  { %4591 = vsyncpa [#allocation5], 1 }

</bundles_post_ra>
